<compile_context>
chip_gen: v6e
topology: v6e:2x2x1
jax: 0.10.0
libtpu: 0.0.40
codegen_flags: <defaults>
</compile_context>

<pallas_src>
import functools

import jax
import jax.numpy as jnp
from jax import lax
from jax.experimental import pallas as pl
from jax.experimental.pallas import tpu as pltpu


# ----------------------------------------------------------------------------
# Pallas kernel
# ----------------------------------------------------------------------------
def _gru_kernel(num_layers, hidden_dim, seq_len, b_tile, padding_value,
                x_ref, mask_ref, *rest):
    """Multi-layer GRU over one batch tile.

    x_ref    : (S*Bt, E)  f32, time-major rows (row = t*Bt + b)
    mask_ref : (S*Bt, 1)  i32, 1 where t < T[b], else 0
    rest     : per layer [w_ih_T (in,3H), w_hh_T (H,3H), b_ih (1,3H), b_hh (1,3H)],
               then out_ref (S*Bt, H),
               then scratches gi_r, gi_z, gi_n, y : (S*Bt, H) f32.
    """
    w_refs = rest[: 4 * num_layers]
    out_ref = rest[4 * num_layers]
    gi_r_scr, gi_z_scr, gi_n_scr, y_scr = rest[4 * num_layers + 1:]

    Hd = hidden_dim
    S = seq_len
    Bt = b_tile
    # Full unroll for short sequences; capped unroll for long ones so the
    # LLO scheduler still sees several steps without exploding compile time.
    unroll = True if S <= 64 else 8

    for layer in range(num_layers):
        # ---- loop-invariant weight reads, hoisted out of the time loop ----
        w_ih = w_refs[4 * layer + 0][...]      # (in_dim, 3H)
        w_hh = w_refs[4 * layer + 1][...]      # (H, 3H)
        b_ih = w_refs[4 * layer + 2][...]      # (1, 3H)
        b_hh = w_refs[4 * layer + 3][...]      # (1, 3H)

        # per-gate recurrent weights (split once per layer, not per step)
        w_hr = w_hh[:, 0 * Hd:1 * Hd]
        w_hz = w_hh[:, 1 * Hd:2 * Hd]
        w_hn = w_hh[:, 2 * Hd:3 * Hd]
        b_hn = b_hh[:, 2 * Hd:3 * Hd]

        # ---- hoisted input projection: ONE (S*Bt, in) @ (in, 3H) matmul ----
        x_seq = x_ref[...] if layer == 0 else y_scr[...]   # (S*Bt, in_dim)
        gi = jnp.dot(x_seq, w_ih, preferred_element_type=jnp.float32) + b_ih
        # biases that do not interact with r are folded into the hoisted term
        gi_r_scr[...] = gi[:, 0 * Hd:1 * Hd] + b_hh[:, 0 * Hd:1 * Hd]
        gi_z_scr[...] = gi[:, 1 * Hd:2 * Hd] + b_hh[:, 1 * Hd:2 * Hd]
        gi_n_scr[...] = gi[:, 2 * Hd:3 * Hd]

        # ---- serial recurrence: only h @ W_h* + gate math per step ----
        def step(t, h):
            row = pl.multiple_of(t * Bt, Bt)
            gr = gi_r_scr[pl.ds(row, Bt), :]
            gz = gi_z_scr[pl.ds(row, Bt), :]
            gn = gi_n_scr[pl.ds(row, Bt), :]
            r = jax.nn.sigmoid(
                gr + jnp.dot(h, w_hr, preferred_element_type=jnp.float32))
            z = jax.nn.sigmoid(
                gz + jnp.dot(h, w_hz, preferred_element_type=jnp.float32))
            n = jnp.tanh(
                gn + r * (jnp.dot(h, w_hn, preferred_element_type=jnp.float32)
                          + b_hn))
            h_new = (1.0 - z) * n + z * h
            y_scr[pl.ds(row, Bt), :] = h_new
            return h_new

        h0 = jnp.zeros((Bt, Hd), jnp.float32)
        lax.fori_loop(0, S, step, h0, unroll=unroll)

    # pad_packed_sequence semantics: one bulk masked store at the end
    valid = mask_ref[...] != 0                              # (S*Bt, 1)
    out_ref[...] = jnp.where(valid, y_scr[...], jnp.float32(padding_value))


# ----------------------------------------------------------------------------
# Wrappers
# ----------------------------------------------------------------------------
def recovery_gru(H, T, gru_params, max_seq_len, padding_value, *, b_tile=None):
    """H: (B, S, E) batch-first. Returns (B, max_seq_len, hidden_dim)."""
    B, S, E = H.shape
    assert S == max_seq_len, "kernel assumes H already has total_length timesteps"
    num_layers = len(gru_params)
    Hd = gru_params[0][1].shape[1]             # w_hh: (3H, H)

    if b_tile is None:
        b_tile = B
    assert B % b_tile == 0
    n_bt = B // b_tile
    rows = S * b_tile
    assert rows % 8 == 0 or n_bt == 1

    f32 = jnp.float32
    # Layout plumbing (wrapper-side): rows ordered (tile, t, b_in_tile).
    x_tm = jnp.transpose(H.astype(f32), (1, 0, 2))                 # (S, B, E)
    x_rows = (x_tm.reshape(S, n_bt, b_tile, E)
                  .transpose(1, 0, 2, 3)
                  .reshape(n_bt * rows, E))

    t_idx = jnp.arange(S, dtype=jnp.int32)
    valid = t_idx[None, :, None] < T.astype(jnp.int32).reshape(n_bt, 1, b_tile)
    mask_rows = valid.astype(jnp.int32).reshape(n_bt * rows, 1)

    weight_args = []
    for (w_ih, w_hh, b_ih, b_hh) in gru_params:
        weight_args += [
            jnp.transpose(w_ih).astype(f32),   # (in_dim, 3H)
            jnp.transpose(w_hh).astype(f32),   # (H, 3H)
            b_ih.reshape(1, -1).astype(f32),   # (1, 3H)
            b_hh.reshape(1, -1).astype(f32),   # (1, 3H)
        ]

    kernel = functools.partial(
        _gru_kernel, num_layers, Hd, S, b_tile, float(padding_value))

    in_specs = [
        pl.BlockSpec((rows, E), lambda b: (b, 0)),
        pl.BlockSpec((rows, 1), lambda b: (b, 0)),
    ]
    for w in weight_args:
        in_specs.append(pl.BlockSpec(w.shape, lambda b: (0, 0)))

    out_rows = pl.pallas_call(
        kernel,
        out_shape=jax.ShapeDtypeStruct((n_bt * rows, Hd), f32),
        grid_spec=pltpu.PrefetchScalarGridSpec(
            num_scalar_prefetch=0,
            grid=(n_bt,),
            in_specs=in_specs,
            out_specs=pl.BlockSpec((rows, Hd), lambda b: (b, 0)),
            scratch_shapes=[pltpu.VMEM((rows, Hd), f32) for _ in range(4)],
        ),
        compiler_params=pltpu.CompilerParams(
            dimension_semantics=("parallel",)),
    )(x_rows, mask_rows, *weight_args)

    # Undo the row layout: (n_bt, S, Bt, Hd) -> (B, S, Hd).
    return (out_rows.reshape(n_bt, S, b_tile, Hd)
                    .transpose(0, 2, 1, 3)
                    .reshape(B, S, Hd))


def recovery_rnn_forward(params, H, T, D=None, L=None, History=None,
                         *, max_seq_len, padding_value, b_tile=None):
    """Mirrors RecoveryRNN.forward. Returns X_tilde-like H_o (B, S, F_out)."""
    H_o = recovery_gru(H, T, params["gru"], max_seq_len, padding_value,
                       b_tile=b_tile)
    if D is not None or L is not None:
        # Tiny (B, dyn+lab) matmul: a dedicated pallas_call is launch-overhead
        # dominated, so keep it in XLA; broadcast instead of repeat.
        C = jnp.concatenate([D, L], axis=1).astype(jnp.float32)
        cond = (C @ jnp.transpose(params["cond_w"]).astype(jnp.float32)
                + params["cond_b"].astype(jnp.float32))
        cond_rep = jnp.broadcast_to(
            cond[:, None, :], (H_o.shape[0], H_o.shape[1], cond.shape[-1]))
        H_o = jnp.concatenate([H_o, cond_rep], axis=2)
    if History is not None:
        H_o = jnp.concatenate([H_o, History.astype(H_o.dtype)], axis=2)
    return H_o


# ----------------------------------------------------------------------------
# Deterministic parameter init (matches __init__ shapes / fills)
# ----------------------------------------------------------------------------
def init_params(key, rnn_input_dim, hidden_dim, num_layers,
                conditional=False, dynamic_dim=None, label_dim=None):
    params = {}
    layers = []
    for layer in range(num_layers):
        in_dim = rnn_input_dim if layer == 0 else hidden_dim
        key, k1, k2 = jax.random.split(key, 3)
        lim_ih = (6.0 / (3 * hidden_dim + in_dim)) ** 0.5       # xavier_uniform_
        lim_hh = (6.0 / (3 * hidden_dim + hidden_dim)) ** 0.5
        w_ih = jax.random.uniform(k1, (3 * hidden_dim, in_dim), jnp.float32,
                                  -lim_ih, lim_ih)
        w_hh = jax.random.uniform(k2, (3 * hidden_dim, hidden_dim), jnp.float32,
                                  -lim_hh, lim_hh)
        b_ih = jnp.ones((3 * hidden_dim,), jnp.float32)          # fill_(1)
        b_hh = jnp.zeros((3 * hidden_dim,), jnp.float32)         # fill_(0)
        layers.append((w_ih, w_hh, b_ih, b_hh))
    params["gru"] = layers
    if conditional:
        in_dim = dynamic_dim + label_dim
        key, k1, k2 = jax.random.split(key, 3)
        lim = (1.0 / in_dim) ** 0.5
        params["cond_w"] = jax.random.uniform(k1, (hidden_dim, in_dim),
                                              jnp.float32, -lim, lim)
        params["cond_b"] = jax.random.uniform(k2, (hidden_dim,),
                                              jnp.float32, -lim, lim)
    return params


# ----------------------------------------------------------------------------
# Pure-JAX reference (pack/pad == run-then-mask) for correctness check
# ----------------------------------------------------------------------------
def gru_reference(H, T, gru_params, padding_value):
    B, S, _ = H.shape
    x = H.astype(jnp.float32)
    for (w_ih, w_hh, b_ih, b_hh) in gru_params:
        Hd = w_hh.shape[1]

        def step(h, x_t):
            gi = x_t @ w_ih.T + b_ih
            gh = h @ w_hh.T + b_hh
            r = jax.nn.sigmoid(gi[:, :Hd] + gh[:, :Hd])
            z = jax.nn.sigmoid(gi[:, Hd:2 * Hd] + gh[:, Hd:2 * Hd])
            n = jnp.tanh(gi[:, 2 * Hd:] + r * gh[:, 2 * Hd:])
            h_new = (1.0 - z) * n + z * h
            return h_new, h_new

        h0 = jnp.zeros((B, Hd), jnp.float32)
        _, outs = lax.scan(step, h0, jnp.transpose(x, (1, 0, 2)))
        x = jnp.transpose(outs, (1, 0, 2))
    mask = jnp.arange(S)[None, :, None] < T[:, None, None]
    return jnp.where(mask, x, jnp.float32(padding_value))


# ----------------------------------------------------------------------------
if __name__ == "__main__":
    B = 8
    max_seq_len = 8          # args.max_seq_len (= S of H)
    rnn_input_dim = 16       # args.rnn_input_dim (E)
    hidden_dim = 32          # args.hidden_dim
    num_layers = 2           # args.num_layers
    padding_value = -1.0     # args.padding_value
    dynamic_dim = 4          # args.dynamic_dim
    label_dim = 2            # args.label_dim
    # args.feature_dim is stored by __init__ but unused in forward()

    key = jax.random.PRNGKey(0)
    key, kH, kD, kL, kHist, kp = jax.random.split(key, 6)

    H = jax.random.normal(kH, (B, max_seq_len, rnn_input_dim), jnp.float32)
    T = jnp.array([8, 5, 3, 6, 8, 2, 7, 4], jnp.int32)   # sequence lengths
    D = jax.random.normal(kD, (B, dynamic_dim), jnp.float32)
    L = jax.random.normal(kL, (B, label_dim), jnp.float32)
    History = jax.random.normal(kHist, (B, max_seq_len, 3), jnp.float32)

    params = init_params(kp, rnn_input_dim, hidden_dim, num_layers,
                         conditional=True, dynamic_dim=dynamic_dim,
                         label_dim=label_dim)

    # Plain path (D = L = History = None) -> (B, S, hidden_dim)
    out = recovery_rnn_forward(params, H, T,
                               max_seq_len=max_seq_len,
                               padding_value=padding_value)
    out = jax.block_until_ready(out)
    assert out.shape == (B, max_seq_len, hidden_dim)

    # Correctness vs pure-JAX reference GRU
    ref = jax.block_until_ready(gru_reference(H, T, params["gru"], padding_value))
    assert jnp.allclose(out, ref, rtol=1e-4, atol=1e-4), "mismatch vs reference GRU"

    # Conditional + History path -> (B, S, hidden + hidden + 3)
    out_cond = recovery_rnn_forward(params, H, T, D=D, L=L, History=History,
                                    max_seq_len=max_seq_len,
                                    padding_value=padding_value)
    out_cond = jax.block_until_ready(out_cond)
    assert out_cond.shape == (B, max_seq_len, hidden_dim + hidden_dim + 3)

    print("KERNEL_OK")
</pallas_src>

<mosaic_0001>
module attributes {stable_mosaic.version = 11 : i64} {
  func.func @_gru_kernel(%arg0: i32, %arg1: memref<64x16xf32, #tpu.memory_space<vmem>>, %arg2: memref<64x1xi32, #tpu.memory_space<vmem>>, %arg3: memref<16x96xf32, #tpu.memory_space<vmem>>, %arg4: memref<32x96xf32, #tpu.memory_space<vmem>>, %arg5: memref<1x96xf32, #tpu.memory_space<vmem>>, %arg6: memref<1x96xf32, #tpu.memory_space<vmem>>, %arg7: memref<32x96xf32, #tpu.memory_space<vmem>>, %arg8: memref<32x96xf32, #tpu.memory_space<vmem>>, %arg9: memref<1x96xf32, #tpu.memory_space<vmem>>, %arg10: memref<1x96xf32, #tpu.memory_space<vmem>>, %arg11: memref<64x32xf32, #tpu.memory_space<vmem>>, %arg12: memref<64x32xf32, #tpu.memory_space<vmem>>, %arg13: memref<64x32xf32, #tpu.memory_space<vmem>>, %arg14: memref<64x32xf32, #tpu.memory_space<vmem>>, %arg15: memref<64x32xf32, #tpu.memory_space<vmem>>) attributes {dimension_semantics = [#tpu.dimension_semantics<parallel>], iteration_bounds = array<i64: 1>, scalar_prefetch = 0 : i64, scratch_operands = 4 : i64, tpu.core_type = #tpu.core_type<tc>, window_params = [{transform_indices = @transform_0, window_bounds = array<i64: 64, 16>}, {transform_indices = @transform_1, window_bounds = array<i64: 64, 1>}, {pipeline_mode = #tpu.pipeline_mode<synchronous>, transform_indices = @transform_2, window_bounds = array<i64: 16, 96>}, {pipeline_mode = #tpu.pipeline_mode<synchronous>, transform_indices = @transform_3, window_bounds = array<i64: 32, 96>}, {pipeline_mode = #tpu.pipeline_mode<synchronous>, transform_indices = @transform_4, window_bounds = array<i64: 1, 96>}, {pipeline_mode = #tpu.pipeline_mode<synchronous>, transform_indices = @transform_5, window_bounds = array<i64: 1, 96>}, {pipeline_mode = #tpu.pipeline_mode<synchronous>, transform_indices = @transform_6, window_bounds = array<i64: 32, 96>}, {pipeline_mode = #tpu.pipeline_mode<synchronous>, transform_indices = @transform_7, window_bounds = array<i64: 32, 96>}, {pipeline_mode = #tpu.pipeline_mode<synchronous>, transform_indices = @transform_8, window_bounds = array<i64: 1, 96>}, {pipeline_mode = #tpu.pipeline_mode<synchronous>, transform_indices = @transform_9, window_bounds = array<i64: 1, 96>}, {transform_indices = @transform_10, window_bounds = array<i64: 64, 32>}]} {
    %c0 = arith.constant 0 : index
    %c0_0 = arith.constant 0 : index
    %0 = vector.load %arg3[%c0, %c0_0] : memref<16x96xf32, #tpu.memory_space<vmem>>, vector<16x96xf32>
    %c0_1 = arith.constant 0 : index
    %c0_2 = arith.constant 0 : index
    %1 = vector.load %arg4[%c0_1, %c0_2] : memref<32x96xf32, #tpu.memory_space<vmem>>, vector<32x96xf32>
    %c0_3 = arith.constant 0 : index
    %c0_4 = arith.constant 0 : index
    %2 = vector.load %arg5[%c0_3, %c0_4] : memref<1x96xf32, #tpu.memory_space<vmem>>, vector<1x96xf32>
    %c0_5 = arith.constant 0 : index
    %c0_6 = arith.constant 0 : index
    %3 = vector.load %arg6[%c0_5, %c0_6] : memref<1x96xf32, #tpu.memory_space<vmem>>, vector<1x96xf32>
    %4 = vector.extract_strided_slice %1 {offsets = [0, 0], sizes = [32, 32], strides = [1, 1]} : vector<32x96xf32> to vector<32x32xf32>
    %5 = vector.extract_strided_slice %1 {offsets = [0, 32], sizes = [32, 32], strides = [1, 1]} : vector<32x96xf32> to vector<32x32xf32>
    %6 = vector.extract_strided_slice %1 {offsets = [0, 64], sizes = [32, 32], strides = [1, 1]} : vector<32x96xf32> to vector<32x32xf32>
    %7 = vector.extract_strided_slice %3 {offsets = [0, 64], sizes = [1, 32], strides = [1, 1]} : vector<1x96xf32> to vector<1x32xf32>
    %c0_7 = arith.constant 0 : index
    %c0_8 = arith.constant 0 : index
    %8 = vector.load %arg1[%c0_7, %c0_8] : memref<64x16xf32, #tpu.memory_space<vmem>>, vector<64x16xf32>
    %cst = arith.constant dense<0.000000e+00> : vector<64x96xf32>
    %9 = tpu.matmul %8, %0, %cst {dimension_numbers = #tpu.dot_dimension_numbers<[1], [0], [0], [1], [0, 0, 1, 1], [], []>} : vector<64x16xf32>, vector<16x96xf32>, vector<64x96xf32> -> vector<64x96xf32>
    %10 = vector.broadcast %2 : vector<1x96xf32> to vector<64x96xf32>
    %11 = arith.addf %9, %10 : vector<64x96xf32>
    %12 = vector.extract_strided_slice %11 {offsets = [0, 0], sizes = [64, 32], strides = [1, 1]} : vector<64x96xf32> to vector<64x32xf32>
    %13 = vector.extract_strided_slice %3 {offsets = [0, 0], sizes = [1, 32], strides = [1, 1]} : vector<1x96xf32> to vector<1x32xf32>
    %14 = vector.broadcast %13 : vector<1x32xf32> to vector<64x32xf32>
    %15 = arith.addf %12, %14 : vector<64x32xf32>
    %c0_9 = arith.constant 0 : index
    %c0_10 = arith.constant 0 : index
    %16 = vector.load %arg12[%c0_9, %c0_10] : memref<64x32xf32, #tpu.memory_space<vmem>>, vector<64x32xf32>
    tpu.vector_store %arg12[%c0_9, %c0_10], %15 {strides = array<i32>} : memref<64x32xf32, #tpu.memory_space<vmem>>, vector<64x32xf32>,
    %17 = vector.extract_strided_slice %11 {offsets = [0, 32], sizes = [64, 32], strides = [1, 1]} : vector<64x96xf32> to vector<64x32xf32>
    %18 = vector.extract_strided_slice %3 {offsets = [0, 32], sizes = [1, 32], strides = [1, 1]} : vector<1x96xf32> to vector<1x32xf32>
    %19 = vector.broadcast %18 : vector<1x32xf32> to vector<64x32xf32>
    %20 = arith.addf %17, %19 : vector<64x32xf32>
    %c0_11 = arith.constant 0 : index
    %c0_12 = arith.constant 0 : index
    %21 = vector.load %arg13[%c0_11, %c0_12] : memref<64x32xf32, #tpu.memory_space<vmem>>, vector<64x32xf32>
    tpu.vector_store %arg13[%c0_11, %c0_12], %20 {strides = array<i32>} : memref<64x32xf32, #tpu.memory_space<vmem>>, vector<64x32xf32>,
    %22 = vector.extract_strided_slice %11 {offsets = [0, 64], sizes = [64, 32], strides = [1, 1]} : vector<64x96xf32> to vector<64x32xf32>
    %c0_13 = arith.constant 0 : index
    %c0_14 = arith.constant 0 : index
    %23 = vector.load %arg14[%c0_13, %c0_14] : memref<64x32xf32, #tpu.memory_space<vmem>>, vector<64x32xf32>
    tpu.vector_store %arg14[%c0_13, %c0_14], %22 {strides = array<i32>} : memref<64x32xf32, #tpu.memory_space<vmem>>, vector<64x32xf32>,
    %cst_15 = arith.constant 0.000000e+00 : f32
    %24 = vector.broadcast %cst_15 : f32 to vector<8x32xf32>
    %c0_i32 = arith.constant 0 : i32
    %c8_i32 = arith.constant 8 : i32
    %25 = arith.muli %c0_i32, %c8_i32 : i32
    %26 = tpu.assume_multiple %25, 8 : i32
    %27 = arith.index_cast %26 : i32 to index
    %c0_16 = arith.constant 0 : index
    %28 = vector.load %arg12[%27, %c0_16] : memref<64x32xf32, #tpu.memory_space<vmem>>, vector<8x32xf32>
    %29 = arith.index_cast %26 : i32 to index
    %c0_17 = arith.constant 0 : index
    %30 = vector.load %arg13[%29, %c0_17] : memref<64x32xf32, #tpu.memory_space<vmem>>, vector<8x32xf32>
    %31 = arith.index_cast %26 : i32 to index
    %c0_18 = arith.constant 0 : index
    %32 = vector.load %arg14[%31, %c0_18] : memref<64x32xf32, #tpu.memory_space<vmem>>, vector<8x32xf32>
    %cst_19 = arith.constant dense<0.000000e+00> : vector<8x32xf32>
    %33 = tpu.matmul %24, %4, %cst_19 {dimension_numbers = #tpu.dot_dimension_numbers<[1], [0], [0], [1], [0, 0, 1, 1], [], []>} : vector<8x32xf32>, vector<32x32xf32>, vector<8x32xf32> -> vector<8x32xf32>
    %34 = arith.addf %28, %33 : vector<8x32xf32>
    %35 = arith.negf %34 : vector<8x32xf32>
    %36 = math.exp %35 : vector<8x32xf32>
    %cst_20 = arith.constant 1.000000e+00 : f32
    %37 = vector.broadcast %cst_20 : f32 to vector<8x32xf32>
    %38 = arith.addf %37, %36 : vector<8x32xf32>
    %39 = arith.divf %37, %38 : vector<8x32xf32>
    %cst_21 = arith.constant dense<0.000000e+00> : vector<8x32xf32>
    %40 = tpu.matmul %24, %5, %cst_21 {dimension_numbers = #tpu.dot_dimension_numbers<[1], [0], [0], [1], [0, 0, 1, 1], [], []>} : vector<8x32xf32>, vector<32x32xf32>, vector<8x32xf32> -> vector<8x32xf32>
    %41 = arith.addf %30, %40 : vector<8x32xf32>
    %42 = arith.negf %41 : vector<8x32xf32>
    %43 = math.exp %42 : vector<8x32xf32>
    %cst_22 = arith.constant 1.000000e+00 : f32
    %44 = vector.broadcast %cst_22 : f32 to vector<8x32xf32>
    %45 = arith.addf %44, %43 : vector<8x32xf32>
    %46 = arith.divf %44, %45 : vector<8x32xf32>
    %cst_23 = arith.constant dense<0.000000e+00> : vector<8x32xf32>
    %47 = tpu.matmul %24, %6, %cst_23 {dimension_numbers = #tpu.dot_dimension_numbers<[1], [0], [0], [1], [0, 0, 1, 1], [], []>} : vector<8x32xf32>, vector<32x32xf32>, vector<8x32xf32> -> vector<8x32xf32>
    %48 = vector.broadcast %7 : vector<1x32xf32> to vector<8x32xf32>
    %49 = arith.addf %47, %48 : vector<8x32xf32>
    %50 = arith.mulf %39, %49 : vector<8x32xf32>
    %51 = arith.addf %32, %50 : vector<8x32xf32>
    %52 = math.tanh %51 : vector<8x32xf32>
    %cst_24 = arith.constant 1.000000e+00 : f32
    %53 = vector.broadcast %cst_24 : f32 to vector<8x32xf32>
    %54 = arith.subf %53, %46 : vector<8x32xf32>
    %55 = arith.mulf %54, %52 : vector<8x32xf32>
    %56 = arith.mulf %46, %24 : vector<8x32xf32>
    %57 = arith.addf %55, %56 : vector<8x32xf32>
    %58 = arith.index_cast %26 : i32 to index
    %c0_25 = arith.constant 0 : index
    %59 = vector.load %arg15[%58, %c0_25] : memref<64x32xf32, #tpu.memory_space<vmem>>, vector<8x32xf32>
    tpu.vector_store %arg15[%58, %c0_25], %57 {strides = array<i32>} : memref<64x32xf32, #tpu.memory_space<vmem>>, vector<8x32xf32>,
    %c1_i32 = arith.constant 1 : i32
    %c8_i32_26 = arith.constant 8 : i32
    %60 = arith.muli %c1_i32, %c8_i32_26 : i32
    %61 = tpu.assume_multiple %60, 8 : i32
    %62 = arith.index_cast %61 : i32 to index
    %c0_27 = arith.constant 0 : index
    %63 = vector.load %arg12[%62, %c0_27] : memref<64x32xf32, #tpu.memory_space<vmem>>, vector<8x32xf32>
    %64 = arith.index_cast %61 : i32 to index
    %c0_28 = arith.constant 0 : index
    %65 = vector.load %arg13[%64, %c0_28] : memref<64x32xf32, #tpu.memory_space<vmem>>, vector<8x32xf32>
    %66 = arith.index_cast %61 : i32 to index
    %c0_29 = arith.constant 0 : index
    %67 = vector.load %arg14[%66, %c0_29] : memref<64x32xf32, #tpu.memory_space<vmem>>, vector<8x32xf32>
    %cst_30 = arith.constant dense<0.000000e+00> : vector<8x32xf32>
    %68 = tpu.matmul %57, %4, %cst_30 {dimension_numbers = #tpu.dot_dimension_numbers<[1], [0], [0], [1], [0, 0, 1, 1], [], []>} : vector<8x32xf32>, vector<32x32xf32>, vector<8x32xf32> -> vector<8x32xf32>
    %69 = arith.addf %63, %68 : vector<8x32xf32>
    %70 = arith.negf %69 : vector<8x32xf32>
    %71 = math.exp %70 : vector<8x32xf32>
    %cst_31 = arith.constant 1.000000e+00 : f32
    %72 = vector.broadcast %cst_31 : f32 to vector<8x32xf32>
    %73 = arith.addf %72, %71 : vector<8x32xf32>
    %74 = arith.divf %72, %73 : vector<8x32xf32>
    %cst_32 = arith.constant dense<0.000000e+00> : vector<8x32xf32>
    %75 = tpu.matmul %57, %5, %cst_32 {dimension_numbers = #tpu.dot_dimension_numbers<[1], [0], [0], [1], [0, 0, 1, 1], [], []>} : vector<8x32xf32>, vector<32x32xf32>, vector<8x32xf32> -> vector<8x32xf32>
    %76 = arith.addf %65, %75 : vector<8x32xf32>
    %77 = arith.negf %76 : vector<8x32xf32>
    %78 = math.exp %77 : vector<8x32xf32>
    %cst_33 = arith.constant 1.000000e+00 : f32
    %79 = vector.broadcast %cst_33 : f32 to vector<8x32xf32>
    %80 = arith.addf %79, %78 : vector<8x32xf32>
    %81 = arith.divf %79, %80 : vector<8x32xf32>
    %cst_34 = arith.constant dense<0.000000e+00> : vector<8x32xf32>
    %82 = tpu.matmul %57, %6, %cst_34 {dimension_numbers = #tpu.dot_dimension_numbers<[1], [0], [0], [1], [0, 0, 1, 1], [], []>} : vector<8x32xf32>, vector<32x32xf32>, vector<8x32xf32> -> vector<8x32xf32>
    %83 = vector.broadcast %7 : vector<1x32xf32> to vector<8x32xf32>
    %84 = arith.addf %82, %83 : vector<8x32xf32>
    %85 = arith.mulf %74, %84 : vector<8x32xf32>
    %86 = arith.addf %67, %85 : vector<8x32xf32>
    %87 = math.tanh %86 : vector<8x32xf32>
    %cst_35 = arith.constant 1.000000e+00 : f32
    %88 = vector.broadcast %cst_35 : f32 to vector<8x32xf32>
    %89 = arith.subf %88, %81 : vector<8x32xf32>
    %90 = arith.mulf %89, %87 : vector<8x32xf32>
    %91 = arith.mulf %81, %57 : vector<8x32xf32>
    %92 = arith.addf %90, %91 : vector<8x32xf32>
    %93 = arith.index_cast %61 : i32 to index
    %c0_36 = arith.constant 0 : index
    %94 = vector.load %arg15[%93, %c0_36] : memref<64x32xf32, #tpu.memory_space<vmem>>, vector<8x32xf32>
    tpu.vector_store %arg15[%93, %c0_36], %92 {strides = array<i32>} : memref<64x32xf32, #tpu.memory_space<vmem>>, vector<8x32xf32>,
    %c2_i32 = arith.constant 2 : i32
    %c8_i32_37 = arith.constant 8 : i32
    %95 = arith.muli %c2_i32, %c8_i32_37 : i32
    %96 = tpu.assume_multiple %95, 8 : i32
    %97 = arith.index_cast %96 : i32 to index
    %c0_38 = arith.constant 0 : index
    %98 = vector.load %arg12[%97, %c0_38] : memref<64x32xf32, #tpu.memory_space<vmem>>, vector<8x32xf32>
    %99 = arith.index_cast %96 : i32 to index
    %c0_39 = arith.constant 0 : index
    %100 = vector.load %arg13[%99, %c0_39] : memref<64x32xf32, #tpu.memory_space<vmem>>, vector<8x32xf32>
    %101 = arith.index_cast %96 : i32 to index
    %c0_40 = arith.constant 0 : index
    %102 = vector.load %arg14[%101, %c0_40] : memref<64x32xf32, #tpu.memory_space<vmem>>, vector<8x32xf32>
    %cst_41 = arith.constant dense<0.000000e+00> : vector<8x32xf32>
    %103 = tpu.matmul %92, %4, %cst_41 {dimension_numbers = #tpu.dot_dimension_numbers<[1], [0], [0], [1], [0, 0, 1, 1], [], []>} : vector<8x32xf32>, vector<32x32xf32>, vector<8x32xf32> -> vector<8x32xf32>
    %104 = arith.addf %98, %103 : vector<8x32xf32>
    %105 = arith.negf %104 : vector<8x32xf32>
    %106 = math.exp %105 : vector<8x32xf32>
    %cst_42 = arith.constant 1.000000e+00 : f32
    %107 = vector.broadcast %cst_42 : f32 to vector<8x32xf32>
    %108 = arith.addf %107, %106 : vector<8x32xf32>
    %109 = arith.divf %107, %108 : vector<8x32xf32>
    %cst_43 = arith.constant dense<0.000000e+00> : vector<8x32xf32>
    %110 = tpu.matmul %92, %5, %cst_43 {dimension_numbers = #tpu.dot_dimension_numbers<[1], [0], [0], [1], [0, 0, 1, 1], [], []>} : vector<8x32xf32>, vector<32x32xf32>, vector<8x32xf32> -> vector<8x32xf32>
    %111 = arith.addf %100, %110 : vector<8x32xf32>
    %112 = arith.negf %111 : vector<8x32xf32>
    %113 = math.exp %112 : vector<8x32xf32>
    %cst_44 = arith.constant 1.000000e+00 : f32
    %114 = vector.broadcast %cst_44 : f32 to vector<8x32xf32>
    %115 = arith.addf %114, %113 : vector<8x32xf32>
    %116 = arith.divf %114, %115 : vector<8x32xf32>
    %cst_45 = arith.constant dense<0.000000e+00> : vector<8x32xf32>
    %117 = tpu.matmul %92, %6, %cst_45 {dimension_numbers = #tpu.dot_dimension_numbers<[1], [0], [0], [1], [0, 0, 1, 1], [], []>} : vector<8x32xf32>, vector<32x32xf32>, vector<8x32xf32> -> vector<8x32xf32>
    %118 = vector.broadcast %7 : vector<1x32xf32> to vector<8x32xf32>
    %119 = arith.addf %117, %118 : vector<8x32xf32>
    %120 = arith.mulf %109, %119 : vector<8x32xf32>
    %121 = arith.addf %102, %120 : vector<8x32xf32>
    %122 = math.tanh %121 : vector<8x32xf32>
    %cst_46 = arith.constant 1.000000e+00 : f32
    %123 = vector.broadcast %cst_46 : f32 to vector<8x32xf32>
    %124 = arith.subf %123, %116 : vector<8x32xf32>
    %125 = arith.mulf %124, %122 : vector<8x32xf32>
    %126 = arith.mulf %116, %92 : vector<8x32xf32>
    %127 = arith.addf %125, %126 : vector<8x32xf32>
    %128 = arith.index_cast %96 : i32 to index
    %c0_47 = arith.constant 0 : index
    %129 = vector.load %arg15[%128, %c0_47] : memref<64x32xf32, #tpu.memory_space<vmem>>, vector<8x32xf32>
    tpu.vector_store %arg15[%128, %c0_47], %127 {strides = array<i32>} : memref<64x32xf32, #tpu.memory_space<vmem>>, vector<8x32xf32>,
    %c3_i32 = arith.constant 3 : i32
    %c8_i32_48 = arith.constant 8 : i32
    %130 = arith.muli %c3_i32, %c8_i32_48 : i32
    %131 = tpu.assume_multiple %130, 8 : i32
    %132 = arith.index_cast %131 : i32 to index
    %c0_49 = arith.constant 0 : index
    %133 = vector.load %arg12[%132, %c0_49] : memref<64x32xf32, #tpu.memory_space<vmem>>, vector<8x32xf32>
    %134 = arith.index_cast %131 : i32 to index
    %c0_50 = arith.constant 0 : index
    %135 = vector.load %arg13[%134, %c0_50] : memref<64x32xf32, #tpu.memory_space<vmem>>, vector<8x32xf32>
    %136 = arith.index_cast %131 : i32 to index
    %c0_51 = arith.constant 0 : index
    %137 = vector.load %arg14[%136, %c0_51] : memref<64x32xf32, #tpu.memory_space<vmem>>, vector<8x32xf32>
    %cst_52 = arith.constant dense<0.000000e+00> : vector<8x32xf32>
    %138 = tpu.matmul %127, %4, %cst_52 {dimension_numbers = #tpu.dot_dimension_numbers<[1], [0], [0], [1], [0, 0, 1, 1], [], []>} : vector<8x32xf32>, vector<32x32xf32>, vector<8x32xf32> -> vector<8x32xf32>
    %139 = arith.addf %133, %138 : vector<8x32xf32>
    %140 = arith.negf %139 : vector<8x32xf32>
    %141 = math.exp %140 : vector<8x32xf32>
    %cst_53 = arith.constant 1.000000e+00 : f32
    %142 = vector.broadcast %cst_53 : f32 to vector<8x32xf32>
    %143 = arith.addf %142, %141 : vector<8x32xf32>
    %144 = arith.divf %142, %143 : vector<8x32xf32>
    %cst_54 = arith.constant dense<0.000000e+00> : vector<8x32xf32>
    %145 = tpu.matmul %127, %5, %cst_54 {dimension_numbers = #tpu.dot_dimension_numbers<[1], [0], [0], [1], [0, 0, 1, 1], [], []>} : vector<8x32xf32>, vector<32x32xf32>, vector<8x32xf32> -> vector<8x32xf32>
    %146 = arith.addf %135, %145 : vector<8x32xf32>
    %147 = arith.negf %146 : vector<8x32xf32>
    %148 = math.exp %147 : vector<8x32xf32>
    %cst_55 = arith.constant 1.000000e+00 : f32
    %149 = vector.broadcast %cst_55 : f32 to vector<8x32xf32>
    %150 = arith.addf %149, %148 : vector<8x32xf32>
    %151 = arith.divf %149, %150 : vector<8x32xf32>
    %cst_56 = arith.constant dense<0.000000e+00> : vector<8x32xf32>
    %152 = tpu.matmul %127, %6, %cst_56 {dimension_numbers = #tpu.dot_dimension_numbers<[1], [0], [0], [1], [0, 0, 1, 1], [], []>} : vector<8x32xf32>, vector<32x32xf32>, vector<8x32xf32> -> vector<8x32xf32>
    %153 = vector.broadcast %7 : vector<1x32xf32> to vector<8x32xf32>
    %154 = arith.addf %152, %153 : vector<8x32xf32>
    %155 = arith.mulf %144, %154 : vector<8x32xf32>
    %156 = arith.addf %137, %155 : vector<8x32xf32>
    %157 = math.tanh %156 : vector<8x32xf32>
    %cst_57 = arith.constant 1.000000e+00 : f32
    %158 = vector.broadcast %cst_57 : f32 to vector<8x32xf32>
    %159 = arith.subf %158, %151 : vector<8x32xf32>
    %160 = arith.mulf %159, %157 : vector<8x32xf32>
    %161 = arith.mulf %151, %127 : vector<8x32xf32>
    %162 = arith.addf %160, %161 : vector<8x32xf32>
    %163 = arith.index_cast %131 : i32 to index
    %c0_58 = arith.constant 0 : index
    %164 = vector.load %arg15[%163, %c0_58] : memref<64x32xf32, #tpu.memory_space<vmem>>, vector<8x32xf32>
    tpu.vector_store %arg15[%163, %c0_58], %162 {strides = array<i32>} : memref<64x32xf32, #tpu.memory_space<vmem>>, vector<8x32xf32>,
    %c4_i32 = arith.constant 4 : i32
    %c8_i32_59 = arith.constant 8 : i32
    %165 = arith.muli %c4_i32, %c8_i32_59 : i32
    %166 = tpu.assume_multiple %165, 8 : i32
    %167 = arith.index_cast %166 : i32 to index
    %c0_60 = arith.constant 0 : index
    %168 = vector.load %arg12[%167, %c0_60] : memref<64x32xf32, #tpu.memory_space<vmem>>, vector<8x32xf32>
    %169 = arith.index_cast %166 : i32 to index
    %c0_61 = arith.constant 0 : index
    %170 = vector.load %arg13[%169, %c0_61] : memref<64x32xf32, #tpu.memory_space<vmem>>, vector<8x32xf32>
    %171 = arith.index_cast %166 : i32 to index
    %c0_62 = arith.constant 0 : index
    %172 = vector.load %arg14[%171, %c0_62] : memref<64x32xf32, #tpu.memory_space<vmem>>, vector<8x32xf32>
    %cst_63 = arith.constant dense<0.000000e+00> : vector<8x32xf32>
    %173 = tpu.matmul %162, %4, %cst_63 {dimension_numbers = #tpu.dot_dimension_numbers<[1], [0], [0], [1], [0, 0, 1, 1], [], []>} : vector<8x32xf32>, vector<32x32xf32>, vector<8x32xf32> -> vector<8x32xf32>
    %174 = arith.addf %168, %173 : vector<8x32xf32>
    %175 = arith.negf %174 : vector<8x32xf32>
    %176 = math.exp %175 : vector<8x32xf32>
    %cst_64 = arith.constant 1.000000e+00 : f32
    %177 = vector.broadcast %cst_64 : f32 to vector<8x32xf32>
    %178 = arith.addf %177, %176 : vector<8x32xf32>
    %179 = arith.divf %177, %178 : vector<8x32xf32>
    %cst_65 = arith.constant dense<0.000000e+00> : vector<8x32xf32>
    %180 = tpu.matmul %162, %5, %cst_65 {dimension_numbers = #tpu.dot_dimension_numbers<[1], [0], [0], [1], [0, 0, 1, 1], [], []>} : vector<8x32xf32>, vector<32x32xf32>, vector<8x32xf32> -> vector<8x32xf32>
    %181 = arith.addf %170, %180 : vector<8x32xf32>
    %182 = arith.negf %181 : vector<8x32xf32>
    %183 = math.exp %182 : vector<8x32xf32>
    %cst_66 = arith.constant 1.000000e+00 : f32
    %184 = vector.broadcast %cst_66 : f32 to vector<8x32xf32>
    %185 = arith.addf %184, %183 : vector<8x32xf32>
    %186 = arith.divf %184, %185 : vector<8x32xf32>
    %cst_67 = arith.constant dense<0.000000e+00> : vector<8x32xf32>
    %187 = tpu.matmul %162, %6, %cst_67 {dimension_numbers = #tpu.dot_dimension_numbers<[1], [0], [0], [1], [0, 0, 1, 1], [], []>} : vector<8x32xf32>, vector<32x32xf32>, vector<8x32xf32> -> vector<8x32xf32>
    %188 = vector.broadcast %7 : vector<1x32xf32> to vector<8x32xf32>
    %189 = arith.addf %187, %188 : vector<8x32xf32>
    %190 = arith.mulf %179, %189 : vector<8x32xf32>
    %191 = arith.addf %172, %190 : vector<8x32xf32>
    %192 = math.tanh %191 : vector<8x32xf32>
    %cst_68 = arith.constant 1.000000e+00 : f32
    %193 = vector.broadcast %cst_68 : f32 to vector<8x32xf32>
    %194 = arith.subf %193, %186 : vector<8x32xf32>
    %195 = arith.mulf %194, %192 : vector<8x32xf32>
    %196 = arith.mulf %186, %162 : vector<8x32xf32>
    %197 = arith.addf %195, %196 : vector<8x32xf32>
    %198 = arith.index_cast %166 : i32 to index
    %c0_69 = arith.constant 0 : index
    %199 = vector.load %arg15[%198, %c0_69] : memref<64x32xf32, #tpu.memory_space<vmem>>, vector<8x32xf32>
    tpu.vector_store %arg15[%198, %c0_69], %197 {strides = array<i32>} : memref<64x32xf32, #tpu.memory_space<vmem>>, vector<8x32xf32>,
    %c5_i32 = arith.constant 5 : i32
    %c8_i32_70 = arith.constant 8 : i32
    %200 = arith.muli %c5_i32, %c8_i32_70 : i32
    %201 = tpu.assume_multiple %200, 8 : i32
    %202 = arith.index_cast %201 : i32 to index
    %c0_71 = arith.constant 0 : index
    %203 = vector.load %arg12[%202, %c0_71] : memref<64x32xf32, #tpu.memory_space<vmem>>, vector<8x32xf32>
    %204 = arith.index_cast %201 : i32 to index
    %c0_72 = arith.constant 0 : index
    %205 = vector.load %arg13[%204, %c0_72] : memref<64x32xf32, #tpu.memory_space<vmem>>, vector<8x32xf32>
    %206 = arith.index_cast %201 : i32 to index
    %c0_73 = arith.constant 0 : index
    %207 = vector.load %arg14[%206, %c0_73] : memref<64x32xf32, #tpu.memory_space<vmem>>, vector<8x32xf32>
    %cst_74 = arith.constant dense<0.000000e+00> : vector<8x32xf32>
    %208 = tpu.matmul %197, %4, %cst_74 {dimension_numbers = #tpu.dot_dimension_numbers<[1], [0], [0], [1], [0, 0, 1, 1], [], []>} : vector<8x32xf32>, vector<32x32xf32>, vector<8x32xf32> -> vector<8x32xf32>
    %209 = arith.addf %203, %208 : vector<8x32xf32>
    %210 = arith.negf %209 : vector<8x32xf32>
    %211 = math.exp %210 : vector<8x32xf32>
    %cst_75 = arith.constant 1.000000e+00 : f32
    %212 = vector.broadcast %cst_75 : f32 to vector<8x32xf32>
    %213 = arith.addf %212, %211 : vector<8x32xf32>
    %214 = arith.divf %212, %213 : vector<8x32xf32>
    %cst_76 = arith.constant dense<0.000000e+00> : vector<8x32xf32>
    %215 = tpu.matmul %197, %5, %cst_76 {dimension_numbers = #tpu.dot_dimension_numbers<[1], [0], [0], [1], [0, 0, 1, 1], [], []>} : vector<8x32xf32>, vector<32x32xf32>, vector<8x32xf32> -> vector<8x32xf32>
    %216 = arith.addf %205, %215 : vector<8x32xf32>
    %217 = arith.negf %216 : vector<8x32xf32>
    %218 = math.exp %217 : vector<8x32xf32>
    %cst_77 = arith.constant 1.000000e+00 : f32
    %219 = vector.broadcast %cst_77 : f32 to vector<8x32xf32>
    %220 = arith.addf %219, %218 : vector<8x32xf32>
    %221 = arith.divf %219, %220 : vector<8x32xf32>
    %cst_78 = arith.constant dense<0.000000e+00> : vector<8x32xf32>
    %222 = tpu.matmul %197, %6, %cst_78 {dimension_numbers = #tpu.dot_dimension_numbers<[1], [0], [0], [1], [0, 0, 1, 1], [], []>} : vector<8x32xf32>, vector<32x32xf32>, vector<8x32xf32> -> vector<8x32xf32>
    %223 = vector.broadcast %7 : vector<1x32xf32> to vector<8x32xf32>
    %224 = arith.addf %222, %223 : vector<8x32xf32>
    %225 = arith.mulf %214, %224 : vector<8x32xf32>
    %226 = arith.addf %207, %225 : vector<8x32xf32>
    %227 = math.tanh %226 : vector<8x32xf32>
    %cst_79 = arith.constant 1.000000e+00 : f32
    %228 = vector.broadcast %cst_79 : f32 to vector<8x32xf32>
    %229 = arith.subf %228, %221 : vector<8x32xf32>
    %230 = arith.mulf %229, %227 : vector<8x32xf32>
    %231 = arith.mulf %221, %197 : vector<8x32xf32>
    %232 = arith.addf %230, %231 : vector<8x32xf32>
    %233 = arith.index_cast %201 : i32 to index
    %c0_80 = arith.constant 0 : index
    %234 = vector.load %arg15[%233, %c0_80] : memref<64x32xf32, #tpu.memory_space<vmem>>, vector<8x32xf32>
    tpu.vector_store %arg15[%233, %c0_80], %232 {strides = array<i32>} : memref<64x32xf32, #tpu.memory_space<vmem>>, vector<8x32xf32>,
    %c6_i32 = arith.constant 6 : i32
    %c8_i32_81 = arith.constant 8 : i32
    %235 = arith.muli %c6_i32, %c8_i32_81 : i32
    %236 = tpu.assume_multiple %235, 8 : i32
    %237 = arith.index_cast %236 : i32 to index
    %c0_82 = arith.constant 0 : index
    %238 = vector.load %arg12[%237, %c0_82] : memref<64x32xf32, #tpu.memory_space<vmem>>, vector<8x32xf32>
    %239 = arith.index_cast %236 : i32 to index
    %c0_83 = arith.constant 0 : index
    %240 = vector.load %arg13[%239, %c0_83] : memref<64x32xf32, #tpu.memory_space<vmem>>, vector<8x32xf32>
    %241 = arith.index_cast %236 : i32 to index
    %c0_84 = arith.constant 0 : index
    %242 = vector.load %arg14[%241, %c0_84] : memref<64x32xf32, #tpu.memory_space<vmem>>, vector<8x32xf32>
    %cst_85 = arith.constant dense<0.000000e+00> : vector<8x32xf32>
    %243 = tpu.matmul %232, %4, %cst_85 {dimension_numbers = #tpu.dot_dimension_numbers<[1], [0], [0], [1], [0, 0, 1, 1], [], []>} : vector<8x32xf32>, vector<32x32xf32>, vector<8x32xf32> -> vector<8x32xf32>
    %244 = arith.addf %238, %243 : vector<8x32xf32>
    %245 = arith.negf %244 : vector<8x32xf32>
    %246 = math.exp %245 : vector<8x32xf32>
    %cst_86 = arith.constant 1.000000e+00 : f32
    %247 = vector.broadcast %cst_86 : f32 to vector<8x32xf32>
    %248 = arith.addf %247, %246 : vector<8x32xf32>
    %249 = arith.divf %247, %248 : vector<8x32xf32>
    %cst_87 = arith.constant dense<0.000000e+00> : vector<8x32xf32>
    %250 = tpu.matmul %232, %5, %cst_87 {dimension_numbers = #tpu.dot_dimension_numbers<[1], [0], [0], [1], [0, 0, 1, 1], [], []>} : vector<8x32xf32>, vector<32x32xf32>, vector<8x32xf32> -> vector<8x32xf32>
    %251 = arith.addf %240, %250 : vector<8x32xf32>
    %252 = arith.negf %251 : vector<8x32xf32>
    %253 = math.exp %252 : vector<8x32xf32>
    %cst_88 = arith.constant 1.000000e+00 : f32
    %254 = vector.broadcast %cst_88 : f32 to vector<8x32xf32>
    %255 = arith.addf %254, %253 : vector<8x32xf32>
    %256 = arith.divf %254, %255 : vector<8x32xf32>
    %cst_89 = arith.constant dense<0.000000e+00> : vector<8x32xf32>
    %257 = tpu.matmul %232, %6, %cst_89 {dimension_numbers = #tpu.dot_dimension_numbers<[1], [0], [0], [1], [0, 0, 1, 1], [], []>} : vector<8x32xf32>, vector<32x32xf32>, vector<8x32xf32> -> vector<8x32xf32>
    %258 = vector.broadcast %7 : vector<1x32xf32> to vector<8x32xf32>
    %259 = arith.addf %257, %258 : vector<8x32xf32>
    %260 = arith.mulf %249, %259 : vector<8x32xf32>
    %261 = arith.addf %242, %260 : vector<8x32xf32>
    %262 = math.tanh %261 : vector<8x32xf32>
    %cst_90 = arith.constant 1.000000e+00 : f32
    %263 = vector.broadcast %cst_90 : f32 to vector<8x32xf32>
    %264 = arith.subf %263, %256 : vector<8x32xf32>
    %265 = arith.mulf %264, %262 : vector<8x32xf32>
    %266 = arith.mulf %256, %232 : vector<8x32xf32>
    %267 = arith.addf %265, %266 : vector<8x32xf32>
    %268 = arith.index_cast %236 : i32 to index
    %c0_91 = arith.constant 0 : index
    %269 = vector.load %arg15[%268, %c0_91] : memref<64x32xf32, #tpu.memory_space<vmem>>, vector<8x32xf32>
    tpu.vector_store %arg15[%268, %c0_91], %267 {strides = array<i32>} : memref<64x32xf32, #tpu.memory_space<vmem>>, vector<8x32xf32>,
    %c7_i32 = arith.constant 7 : i32
    %c8_i32_92 = arith.constant 8 : i32
    %270 = arith.muli %c7_i32, %c8_i32_92 : i32
    %271 = tpu.assume_multiple %270, 8 : i32
    %272 = arith.index_cast %271 : i32 to index
    %c0_93 = arith.constant 0 : index
    %273 = vector.load %arg12[%272, %c0_93] : memref<64x32xf32, #tpu.memory_space<vmem>>, vector<8x32xf32>
    %274 = arith.index_cast %271 : i32 to index
    %c0_94 = arith.constant 0 : index
    %275 = vector.load %arg13[%274, %c0_94] : memref<64x32xf32, #tpu.memory_space<vmem>>, vector<8x32xf32>
    %276 = arith.index_cast %271 : i32 to index
    %c0_95 = arith.constant 0 : index
    %277 = vector.load %arg14[%276, %c0_95] : memref<64x32xf32, #tpu.memory_space<vmem>>, vector<8x32xf32>
    %cst_96 = arith.constant dense<0.000000e+00> : vector<8x32xf32>
    %278 = tpu.matmul %267, %4, %cst_96 {dimension_numbers = #tpu.dot_dimension_numbers<[1], [0], [0], [1], [0, 0, 1, 1], [], []>} : vector<8x32xf32>, vector<32x32xf32>, vector<8x32xf32> -> vector<8x32xf32>
    %279 = arith.addf %273, %278 : vector<8x32xf32>
    %280 = arith.negf %279 : vector<8x32xf32>
    %281 = math.exp %280 : vector<8x32xf32>
    %cst_97 = arith.constant 1.000000e+00 : f32
    %282 = vector.broadcast %cst_97 : f32 to vector<8x32xf32>
    %283 = arith.addf %282, %281 : vector<8x32xf32>
    %284 = arith.divf %282, %283 : vector<8x32xf32>
    %cst_98 = arith.constant dense<0.000000e+00> : vector<8x32xf32>
    %285 = tpu.matmul %267, %5, %cst_98 {dimension_numbers = #tpu.dot_dimension_numbers<[1], [0], [0], [1], [0, 0, 1, 1], [], []>} : vector<8x32xf32>, vector<32x32xf32>, vector<8x32xf32> -> vector<8x32xf32>
    %286 = arith.addf %275, %285 : vector<8x32xf32>
    %287 = arith.negf %286 : vector<8x32xf32>
    %288 = math.exp %287 : vector<8x32xf32>
    %cst_99 = arith.constant 1.000000e+00 : f32
    %289 = vector.broadcast %cst_99 : f32 to vector<8x32xf32>
    %290 = arith.addf %289, %288 : vector<8x32xf32>
    %291 = arith.divf %289, %290 : vector<8x32xf32>
    %cst_100 = arith.constant dense<0.000000e+00> : vector<8x32xf32>
    %292 = tpu.matmul %267, %6, %cst_100 {dimension_numbers = #tpu.dot_dimension_numbers<[1], [0], [0], [1], [0, 0, 1, 1], [], []>} : vector<8x32xf32>, vector<32x32xf32>, vector<8x32xf32> -> vector<8x32xf32>
    %293 = vector.broadcast %7 : vector<1x32xf32> to vector<8x32xf32>
    %294 = arith.addf %292, %293 : vector<8x32xf32>
    %295 = arith.mulf %284, %294 : vector<8x32xf32>
    %296 = arith.addf %277, %295 : vector<8x32xf32>
    %297 = math.tanh %296 : vector<8x32xf32>
    %cst_101 = arith.constant 1.000000e+00 : f32
    %298 = vector.broadcast %cst_101 : f32 to vector<8x32xf32>
    %299 = arith.subf %298, %291 : vector<8x32xf32>
    %300 = arith.mulf %299, %297 : vector<8x32xf32>
    %301 = arith.mulf %291, %267 : vector<8x32xf32>
    %302 = arith.addf %300, %301 : vector<8x32xf32>
    %303 = arith.index_cast %271 : i32 to index
    %c0_102 = arith.constant 0 : index
    %304 = vector.load %arg15[%303, %c0_102] : memref<64x32xf32, #tpu.memory_space<vmem>>, vector<8x32xf32>
    tpu.vector_store %arg15[%303, %c0_102], %302 {strides = array<i32>} : memref<64x32xf32, #tpu.memory_space<vmem>>, vector<8x32xf32>,
    %c8_i32_103 = arith.constant 8 : i32
    %c0_104 = arith.constant 0 : index
    %c0_105 = arith.constant 0 : index
    %305 = vector.load %arg7[%c0_104, %c0_105] : memref<32x96xf32, #tpu.memory_space<vmem>>, vector<32x96xf32>
    %c0_106 = arith.constant 0 : index
    %c0_107 = arith.constant 0 : index
    %306 = vector.load %arg8[%c0_106, %c0_107] : memref<32x96xf32, #tpu.memory_space<vmem>>, vector<32x96xf32>
    %c0_108 = arith.constant 0 : index
    %c0_109 = arith.constant 0 : index
    %307 = vector.load %arg9[%c0_108, %c0_109] : memref<1x96xf32, #tpu.memory_space<vmem>>, vector<1x96xf32>
    %c0_110 = arith.constant 0 : index
    %c0_111 = arith.constant 0 : index
    %308 = vector.load %arg10[%c0_110, %c0_111] : memref<1x96xf32, #tpu.memory_space<vmem>>, vector<1x96xf32>
    %309 = vector.extract_strided_slice %306 {offsets = [0, 0], sizes = [32, 32], strides = [1, 1]} : vector<32x96xf32> to vector<32x32xf32>
    %310 = vector.extract_strided_slice %306 {offsets = [0, 32], sizes = [32, 32], strides = [1, 1]} : vector<32x96xf32> to vector<32x32xf32>
    %311 = vector.extract_strided_slice %306 {offsets = [0, 64], sizes = [32, 32], strides = [1, 1]} : vector<32x96xf32> to vector<32x32xf32>
    %312 = vector.extract_strided_slice %308 {offsets = [0, 64], sizes = [1, 32], strides = [1, 1]} : vector<1x96xf32> to vector<1x32xf32>
    %c0_112 = arith.constant 0 : index
    %c0_113 = arith.constant 0 : index
    %313 = vector.load %arg15[%c0_112, %c0_113] : memref<64x32xf32, #tpu.memory_space<vmem>>, vector<64x32xf32>
    %cst_114 = arith.constant dense<0.000000e+00> : vector<64x96xf32>
    %314 = tpu.matmul %313, %305, %cst_114 {dimension_numbers = #tpu.dot_dimension_numbers<[1], [0], [0], [1], [0, 0, 1, 1], [], []>} : vector<64x32xf32>, vector<32x96xf32>, vector<64x96xf32> -> vector<64x96xf32>
    %315 = vector.broadcast %307 : vector<1x96xf32> to vector<64x96xf32>
    %316 = arith.addf %314, %315 : vector<64x96xf32>
    %317 = vector.extract_strided_slice %316 {offsets = [0, 0], sizes = [64, 32], strides = [1, 1]} : vector<64x96xf32> to vector<64x32xf32>
    %318 = vector.extract_strided_slice %308 {offsets = [0, 0], sizes = [1, 32], strides = [1, 1]} : vector<1x96xf32> to vector<1x32xf32>
    %319 = vector.broadcast %318 : vector<1x32xf32> to vector<64x32xf32>
    %320 = arith.addf %317, %319 : vector<64x32xf32>
    %c0_115 = arith.constant 0 : index
    %c0_116 = arith.constant 0 : index
    %321 = vector.load %arg12[%c0_115, %c0_116] : memref<64x32xf32, #tpu.memory_space<vmem>>, vector<64x32xf32>
    tpu.vector_store %arg12[%c0_115, %c0_116], %320 {strides = array<i32>} : memref<64x32xf32, #tpu.memory_space<vmem>>, vector<64x32xf32>,
    %322 = vector.extract_strided_slice %316 {offsets = [0, 32], sizes = [64, 32], strides = [1, 1]} : vector<64x96xf32> to vector<64x32xf32>
    %323 = vector.extract_strided_slice %308 {offsets = [0, 32], sizes = [1, 32], strides = [1, 1]} : vector<1x96xf32> to vector<1x32xf32>
    %324 = vector.broadcast %323 : vector<1x32xf32> to vector<64x32xf32>
    %325 = arith.addf %322, %324 : vector<64x32xf32>
    %c0_117 = arith.constant 0 : index
    %c0_118 = arith.constant 0 : index
    %326 = vector.load %arg13[%c0_117, %c0_118] : memref<64x32xf32, #tpu.memory_space<vmem>>, vector<64x32xf32>
    tpu.vector_store %arg13[%c0_117, %c0_118], %325 {strides = array<i32>} : memref<64x32xf32, #tpu.memory_space<vmem>>, vector<64x32xf32>,
    %327 = vector.extract_strided_slice %316 {offsets = [0, 64], sizes = [64, 32], strides = [1, 1]} : vector<64x96xf32> to vector<64x32xf32>
    %c0_119 = arith.constant 0 : index
    %c0_120 = arith.constant 0 : index
    %328 = vector.load %arg14[%c0_119, %c0_120] : memref<64x32xf32, #tpu.memory_space<vmem>>, vector<64x32xf32>
    tpu.vector_store %arg14[%c0_119, %c0_120], %327 {strides = array<i32>} : memref<64x32xf32, #tpu.memory_space<vmem>>, vector<64x32xf32>,
    %cst_121 = arith.constant 0.000000e+00 : f32
    %329 = vector.broadcast %cst_121 : f32 to vector<8x32xf32>
    %c0_i32_122 = arith.constant 0 : i32
    %c8_i32_123 = arith.constant 8 : i32
    %330 = arith.muli %c0_i32_122, %c8_i32_123 : i32
    %331 = tpu.assume_multiple %330, 8 : i32
    %332 = arith.index_cast %331 : i32 to index
    %c0_124 = arith.constant 0 : index
    %333 = vector.load %arg12[%332, %c0_124] : memref<64x32xf32, #tpu.memory_space<vmem>>, vector<8x32xf32>
    %334 = arith.index_cast %331 : i32 to index
    %c0_125 = arith.constant 0 : index
    %335 = vector.load %arg13[%334, %c0_125] : memref<64x32xf32, #tpu.memory_space<vmem>>, vector<8x32xf32>
    %336 = arith.index_cast %331 : i32 to index
    %c0_126 = arith.constant 0 : index
    %337 = vector.load %arg14[%336, %c0_126] : memref<64x32xf32, #tpu.memory_space<vmem>>, vector<8x32xf32>
    %cst_127 = arith.constant dense<0.000000e+00> : vector<8x32xf32>
    %338 = tpu.matmul %329, %309, %cst_127 {dimension_numbers = #tpu.dot_dimension_numbers<[1], [0], [0], [1], [0, 0, 1, 1], [], []>} : vector<8x32xf32>, vector<32x32xf32>, vector<8x32xf32> -> vector<8x32xf32>
    %339 = arith.addf %333, %338 : vector<8x32xf32>
    %340 = arith.negf %339 : vector<8x32xf32>
    %341 = math.exp %340 : vector<8x32xf32>
    %cst_128 = arith.constant 1.000000e+00 : f32
    %342 = vector.broadcast %cst_128 : f32 to vector<8x32xf32>
    %343 = arith.addf %342, %341 : vector<8x32xf32>
    %344 = arith.divf %342, %343 : vector<8x32xf32>
    %cst_129 = arith.constant dense<0.000000e+00> : vector<8x32xf32>
    %345 = tpu.matmul %329, %310, %cst_129 {dimension_numbers = #tpu.dot_dimension_numbers<[1], [0], [0], [1], [0, 0, 1, 1], [], []>} : vector<8x32xf32>, vector<32x32xf32>, vector<8x32xf32> -> vector<8x32xf32>
    %346 = arith.addf %335, %345 : vector<8x32xf32>
    %347 = arith.negf %346 : vector<8x32xf32>
    %348 = math.exp %347 : vector<8x32xf32>
    %cst_130 = arith.constant 1.000000e+00 : f32
    %349 = vector.broadcast %cst_130 : f32 to vector<8x32xf32>
    %350 = arith.addf %349, %348 : vector<8x32xf32>
    %351 = arith.divf %349, %350 : vector<8x32xf32>
    %cst_131 = arith.constant dense<0.000000e+00> : vector<8x32xf32>
    %352 = tpu.matmul %329, %311, %cst_131 {dimension_numbers = #tpu.dot_dimension_numbers<[1], [0], [0], [1], [0, 0, 1, 1], [], []>} : vector<8x32xf32>, vector<32x32xf32>, vector<8x32xf32> -> vector<8x32xf32>
    %353 = vector.broadcast %312 : vector<1x32xf32> to vector<8x32xf32>
    %354 = arith.addf %352, %353 : vector<8x32xf32>
    %355 = arith.mulf %344, %354 : vector<8x32xf32>
    %356 = arith.addf %337, %355 : vector<8x32xf32>
    %357 = math.tanh %356 : vector<8x32xf32>
    %cst_132 = arith.constant 1.000000e+00 : f32
    %358 = vector.broadcast %cst_132 : f32 to vector<8x32xf32>
    %359 = arith.subf %358, %351 : vector<8x32xf32>
    %360 = arith.mulf %359, %357 : vector<8x32xf32>
    %361 = arith.mulf %351, %329 : vector<8x32xf32>
    %362 = arith.addf %360, %361 : vector<8x32xf32>
    %363 = arith.index_cast %331 : i32 to index
    %c0_133 = arith.constant 0 : index
    %364 = vector.load %arg15[%363, %c0_133] : memref<64x32xf32, #tpu.memory_space<vmem>>, vector<8x32xf32>
    tpu.vector_store %arg15[%363, %c0_133], %362 {strides = array<i32>} : memref<64x32xf32, #tpu.memory_space<vmem>>, vector<8x32xf32>,
    %c1_i32_134 = arith.constant 1 : i32
    %c8_i32_135 = arith.constant 8 : i32
    %365 = arith.muli %c1_i32_134, %c8_i32_135 : i32
    %366 = tpu.assume_multiple %365, 8 : i32
    %367 = arith.index_cast %366 : i32 to index
    %c0_136 = arith.constant 0 : index
    %368 = vector.load %arg12[%367, %c0_136] : memref<64x32xf32, #tpu.memory_space<vmem>>, vector<8x32xf32>
    %369 = arith.index_cast %366 : i32 to index
    %c0_137 = arith.constant 0 : index
    %370 = vector.load %arg13[%369, %c0_137] : memref<64x32xf32, #tpu.memory_space<vmem>>, vector<8x32xf32>
    %371 = arith.index_cast %366 : i32 to index
    %c0_138 = arith.constant 0 : index
    %372 = vector.load %arg14[%371, %c0_138] : memref<64x32xf32, #tpu.memory_space<vmem>>, vector<8x32xf32>
    %cst_139 = arith.constant dense<0.000000e+00> : vector<8x32xf32>
    %373 = tpu.matmul %362, %309, %cst_139 {dimension_numbers = #tpu.dot_dimension_numbers<[1], [0], [0], [1], [0, 0, 1, 1], [], []>} : vector<8x32xf32>, vector<32x32xf32>, vector<8x32xf32> -> vector<8x32xf32>
    %374 = arith.addf %368, %373 : vector<8x32xf32>
    %375 = arith.negf %374 : vector<8x32xf32>
    %376 = math.exp %375 : vector<8x32xf32>
    %cst_140 = arith.constant 1.000000e+00 : f32
    %377 = vector.broadcast %cst_140 : f32 to vector<8x32xf32>
    %378 = arith.addf %377, %376 : vector<8x32xf32>
    %379 = arith.divf %377, %378 : vector<8x32xf32>
    %cst_141 = arith.constant dense<0.000000e+00> : vector<8x32xf32>
    %380 = tpu.matmul %362, %310, %cst_141 {dimension_numbers = #tpu.dot_dimension_numbers<[1], [0], [0], [1], [0, 0, 1, 1], [], []>} : vector<8x32xf32>, vector<32x32xf32>, vector<8x32xf32> -> vector<8x32xf32>
    %381 = arith.addf %370, %380 : vector<8x32xf32>
    %382 = arith.negf %381 : vector<8x32xf32>
    %383 = math.exp %382 : vector<8x32xf32>
    %cst_142 = arith.constant 1.000000e+00 : f32
    %384 = vector.broadcast %cst_142 : f32 to vector<8x32xf32>
    %385 = arith.addf %384, %383 : vector<8x32xf32>
    %386 = arith.divf %384, %385 : vector<8x32xf32>
    %cst_143 = arith.constant dense<0.000000e+00> : vector<8x32xf32>
    %387 = tpu.matmul %362, %311, %cst_143 {dimension_numbers = #tpu.dot_dimension_numbers<[1], [0], [0], [1], [0, 0, 1, 1], [], []>} : vector<8x32xf32>, vector<32x32xf32>, vector<8x32xf32> -> vector<8x32xf32>
    %388 = vector.broadcast %312 : vector<1x32xf32> to vector<8x32xf32>
    %389 = arith.addf %387, %388 : vector<8x32xf32>
    %390 = arith.mulf %379, %389 : vector<8x32xf32>
    %391 = arith.addf %372, %390 : vector<8x32xf32>
    %392 = math.tanh %391 : vector<8x32xf32>
    %cst_144 = arith.constant 1.000000e+00 : f32
    %393 = vector.broadcast %cst_144 : f32 to vector<8x32xf32>
    %394 = arith.subf %393, %386 : vector<8x32xf32>
    %395 = arith.mulf %394, %392 : vector<8x32xf32>
    %396 = arith.mulf %386, %362 : vector<8x32xf32>
    %397 = arith.addf %395, %396 : vector<8x32xf32>
    %398 = arith.index_cast %366 : i32 to index
    %c0_145 = arith.constant 0 : index
    %399 = vector.load %arg15[%398, %c0_145] : memref<64x32xf32, #tpu.memory_space<vmem>>, vector<8x32xf32>
    tpu.vector_store %arg15[%398, %c0_145], %397 {strides = array<i32>} : memref<64x32xf32, #tpu.memory_space<vmem>>, vector<8x32xf32>,
    %c2_i32_146 = arith.constant 2 : i32
    %c8_i32_147 = arith.constant 8 : i32
    %400 = arith.muli %c2_i32_146, %c8_i32_147 : i32
    %401 = tpu.assume_multiple %400, 8 : i32
    %402 = arith.index_cast %401 : i32 to index
    %c0_148 = arith.constant 0 : index
    %403 = vector.load %arg12[%402, %c0_148] : memref<64x32xf32, #tpu.memory_space<vmem>>, vector<8x32xf32>
    %404 = arith.index_cast %401 : i32 to index
    %c0_149 = arith.constant 0 : index
    %405 = vector.load %arg13[%404, %c0_149] : memref<64x32xf32, #tpu.memory_space<vmem>>, vector<8x32xf32>
    %406 = arith.index_cast %401 : i32 to index
    %c0_150 = arith.constant 0 : index
    %407 = vector.load %arg14[%406, %c0_150] : memref<64x32xf32, #tpu.memory_space<vmem>>, vector<8x32xf32>
    %cst_151 = arith.constant dense<0.000000e+00> : vector<8x32xf32>
    %408 = tpu.matmul %397, %309, %cst_151 {dimension_numbers = #tpu.dot_dimension_numbers<[1], [0], [0], [1], [0, 0, 1, 1], [], []>} : vector<8x32xf32>, vector<32x32xf32>, vector<8x32xf32> -> vector<8x32xf32>
    %409 = arith.addf %403, %408 : vector<8x32xf32>
    %410 = arith.negf %409 : vector<8x32xf32>
    %411 = math.exp %410 : vector<8x32xf32>
    %cst_152 = arith.constant 1.000000e+00 : f32
    %412 = vector.broadcast %cst_152 : f32 to vector<8x32xf32>
    %413 = arith.addf %412, %411 : vector<8x32xf32>
    %414 = arith.divf %412, %413 : vector<8x32xf32>
    %cst_153 = arith.constant dense<0.000000e+00> : vector<8x32xf32>
    %415 = tpu.matmul %397, %310, %cst_153 {dimension_numbers = #tpu.dot_dimension_numbers<[1], [0], [0], [1], [0, 0, 1, 1], [], []>} : vector<8x32xf32>, vector<32x32xf32>, vector<8x32xf32> -> vector<8x32xf32>
    %416 = arith.addf %405, %415 : vector<8x32xf32>
    %417 = arith.negf %416 : vector<8x32xf32>
    %418 = math.exp %417 : vector<8x32xf32>
    %cst_154 = arith.constant 1.000000e+00 : f32
    %419 = vector.broadcast %cst_154 : f32 to vector<8x32xf32>
    %420 = arith.addf %419, %418 : vector<8x32xf32>
    %421 = arith.divf %419, %420 : vector<8x32xf32>
    %cst_155 = arith.constant dense<0.000000e+00> : vector<8x32xf32>
    %422 = tpu.matmul %397, %311, %cst_155 {dimension_numbers = #tpu.dot_dimension_numbers<[1], [0], [0], [1], [0, 0, 1, 1], [], []>} : vector<8x32xf32>, vector<32x32xf32>, vector<8x32xf32> -> vector<8x32xf32>
    %423 = vector.broadcast %312 : vector<1x32xf32> to vector<8x32xf32>
    %424 = arith.addf %422, %423 : vector<8x32xf32>
    %425 = arith.mulf %414, %424 : vector<8x32xf32>
    %426 = arith.addf %407, %425 : vector<8x32xf32>
    %427 = math.tanh %426 : vector<8x32xf32>
    %cst_156 = arith.constant 1.000000e+00 : f32
    %428 = vector.broadcast %cst_156 : f32 to vector<8x32xf32>
    %429 = arith.subf %428, %421 : vector<8x32xf32>
    %430 = arith.mulf %429, %427 : vector<8x32xf32>
    %431 = arith.mulf %421, %397 : vector<8x32xf32>
    %432 = arith.addf %430, %431 : vector<8x32xf32>
    %433 = arith.index_cast %401 : i32 to index
    %c0_157 = arith.constant 0 : index
    %434 = vector.load %arg15[%433, %c0_157] : memref<64x32xf32, #tpu.memory_space<vmem>>, vector<8x32xf32>
    tpu.vector_store %arg15[%433, %c0_157], %432 {strides = array<i32>} : memref<64x32xf32, #tpu.memory_space<vmem>>, vector<8x32xf32>,
    %c3_i32_158 = arith.constant 3 : i32
    %c8_i32_159 = arith.constant 8 : i32
    %435 = arith.muli %c3_i32_158, %c8_i32_159 : i32
    %436 = tpu.assume_multiple %435, 8 : i32
    %437 = arith.index_cast %436 : i32 to index
    %c0_160 = arith.constant 0 : index
    %438 = vector.load %arg12[%437, %c0_160] : memref<64x32xf32, #tpu.memory_space<vmem>>, vector<8x32xf32>
    %439 = arith.index_cast %436 : i32 to index
    %c0_161 = arith.constant 0 : index
    %440 = vector.load %arg13[%439, %c0_161] : memref<64x32xf32, #tpu.memory_space<vmem>>, vector<8x32xf32>
    %441 = arith.index_cast %436 : i32 to index
    %c0_162 = arith.constant 0 : index
    %442 = vector.load %arg14[%441, %c0_162] : memref<64x32xf32, #tpu.memory_space<vmem>>, vector<8x32xf32>
    %cst_163 = arith.constant dense<0.000000e+00> : vector<8x32xf32>
    %443 = tpu.matmul %432, %309, %cst_163 {dimension_numbers = #tpu.dot_dimension_numbers<[1], [0], [0], [1], [0, 0, 1, 1], [], []>} : vector<8x32xf32>, vector<32x32xf32>, vector<8x32xf32> -> vector<8x32xf32>
    %444 = arith.addf %438, %443 : vector<8x32xf32>
    %445 = arith.negf %444 : vector<8x32xf32>
    %446 = math.exp %445 : vector<8x32xf32>
    %cst_164 = arith.constant 1.000000e+00 : f32
    %447 = vector.broadcast %cst_164 : f32 to vector<8x32xf32>
    %448 = arith.addf %447, %446 : vector<8x32xf32>
    %449 = arith.divf %447, %448 : vector<8x32xf32>
    %cst_165 = arith.constant dense<0.000000e+00> : vector<8x32xf32>
    %450 = tpu.matmul %432, %310, %cst_165 {dimension_numbers = #tpu.dot_dimension_numbers<[1], [0], [0], [1], [0, 0, 1, 1], [], []>} : vector<8x32xf32>, vector<32x32xf32>, vector<8x32xf32> -> vector<8x32xf32>
    %451 = arith.addf %440, %450 : vector<8x32xf32>
    %452 = arith.negf %451 : vector<8x32xf32>
    %453 = math.exp %452 : vector<8x32xf32>
    %cst_166 = arith.constant 1.000000e+00 : f32
    %454 = vector.broadcast %cst_166 : f32 to vector<8x32xf32>
    %455 = arith.addf %454, %453 : vector<8x32xf32>
    %456 = arith.divf %454, %455 : vector<8x32xf32>
    %cst_167 = arith.constant dense<0.000000e+00> : vector<8x32xf32>
    %457 = tpu.matmul %432, %311, %cst_167 {dimension_numbers = #tpu.dot_dimension_numbers<[1], [0], [0], [1], [0, 0, 1, 1], [], []>} : vector<8x32xf32>, vector<32x32xf32>, vector<8x32xf32> -> vector<8x32xf32>
    %458 = vector.broadcast %312 : vector<1x32xf32> to vector<8x32xf32>
    %459 = arith.addf %457, %458 : vector<8x32xf32>
    %460 = arith.mulf %449, %459 : vector<8x32xf32>
    %461 = arith.addf %442, %460 : vector<8x32xf32>
    %462 = math.tanh %461 : vector<8x32xf32>
    %cst_168 = arith.constant 1.000000e+00 : f32
    %463 = vector.broadcast %cst_168 : f32 to vector<8x32xf32>
    %464 = arith.subf %463, %456 : vector<8x32xf32>
    %465 = arith.mulf %464, %462 : vector<8x32xf32>
    %466 = arith.mulf %456, %432 : vector<8x32xf32>
    %467 = arith.addf %465, %466 : vector<8x32xf32>
    %468 = arith.index_cast %436 : i32 to index
    %c0_169 = arith.constant 0 : index
    %469 = vector.load %arg15[%468, %c0_169] : memref<64x32xf32, #tpu.memory_space<vmem>>, vector<8x32xf32>
    tpu.vector_store %arg15[%468, %c0_169], %467 {strides = array<i32>} : memref<64x32xf32, #tpu.memory_space<vmem>>, vector<8x32xf32>,
    %c4_i32_170 = arith.constant 4 : i32
    %c8_i32_171 = arith.constant 8 : i32
    %470 = arith.muli %c4_i32_170, %c8_i32_171 : i32
    %471 = tpu.assume_multiple %470, 8 : i32
    %472 = arith.index_cast %471 : i32 to index
    %c0_172 = arith.constant 0 : index
    %473 = vector.load %arg12[%472, %c0_172] : memref<64x32xf32, #tpu.memory_space<vmem>>, vector<8x32xf32>
    %474 = arith.index_cast %471 : i32 to index
    %c0_173 = arith.constant 0 : index
    %475 = vector.load %arg13[%474, %c0_173] : memref<64x32xf32, #tpu.memory_space<vmem>>, vector<8x32xf32>
    %476 = arith.index_cast %471 : i32 to index
    %c0_174 = arith.constant 0 : index
    %477 = vector.load %arg14[%476, %c0_174] : memref<64x32xf32, #tpu.memory_space<vmem>>, vector<8x32xf32>
    %cst_175 = arith.constant dense<0.000000e+00> : vector<8x32xf32>
    %478 = tpu.matmul %467, %309, %cst_175 {dimension_numbers = #tpu.dot_dimension_numbers<[1], [0], [0], [1], [0, 0, 1, 1], [], []>} : vector<8x32xf32>, vector<32x32xf32>, vector<8x32xf32> -> vector<8x32xf32>
    %479 = arith.addf %473, %478 : vector<8x32xf32>
    %480 = arith.negf %479 : vector<8x32xf32>
    %481 = math.exp %480 : vector<8x32xf32>
    %cst_176 = arith.constant 1.000000e+00 : f32
    %482 = vector.broadcast %cst_176 : f32 to vector<8x32xf32>
    %483 = arith.addf %482, %481 : vector<8x32xf32>
    %484 = arith.divf %482, %483 : vector<8x32xf32>
    %cst_177 = arith.constant dense<0.000000e+00> : vector<8x32xf32>
    %485 = tpu.matmul %467, %310, %cst_177 {dimension_numbers = #tpu.dot_dimension_numbers<[1], [0], [0], [1], [0, 0, 1, 1], [], []>} : vector<8x32xf32>, vector<32x32xf32>, vector<8x32xf32> -> vector<8x32xf32>
    %486 = arith.addf %475, %485 : vector<8x32xf32>
    %487 = arith.negf %486 : vector<8x32xf32>
    %488 = math.exp %487 : vector<8x32xf32>
    %cst_178 = arith.constant 1.000000e+00 : f32
    %489 = vector.broadcast %cst_178 : f32 to vector<8x32xf32>
    %490 = arith.addf %489, %488 : vector<8x32xf32>
    %491 = arith.divf %489, %490 : vector<8x32xf32>
    %cst_179 = arith.constant dense<0.000000e+00> : vector<8x32xf32>
    %492 = tpu.matmul %467, %311, %cst_179 {dimension_numbers = #tpu.dot_dimension_numbers<[1], [0], [0], [1], [0, 0, 1, 1], [], []>} : vector<8x32xf32>, vector<32x32xf32>, vector<8x32xf32> -> vector<8x32xf32>
    %493 = vector.broadcast %312 : vector<1x32xf32> to vector<8x32xf32>
    %494 = arith.addf %492, %493 : vector<8x32xf32>
    %495 = arith.mulf %484, %494 : vector<8x32xf32>
    %496 = arith.addf %477, %495 : vector<8x32xf32>
    %497 = math.tanh %496 : vector<8x32xf32>
    %cst_180 = arith.constant 1.000000e+00 : f32
    %498 = vector.broadcast %cst_180 : f32 to vector<8x32xf32>
    %499 = arith.subf %498, %491 : vector<8x32xf32>
    %500 = arith.mulf %499, %497 : vector<8x32xf32>
    %501 = arith.mulf %491, %467 : vector<8x32xf32>
    %502 = arith.addf %500, %501 : vector<8x32xf32>
    %503 = arith.index_cast %471 : i32 to index
    %c0_181 = arith.constant 0 : index
    %504 = vector.load %arg15[%503, %c0_181] : memref<64x32xf32, #tpu.memory_space<vmem>>, vector<8x32xf32>
    tpu.vector_store %arg15[%503, %c0_181], %502 {strides = array<i32>} : memref<64x32xf32, #tpu.memory_space<vmem>>, vector<8x32xf32>,
    %c5_i32_182 = arith.constant 5 : i32
    %c8_i32_183 = arith.constant 8 : i32
    %505 = arith.muli %c5_i32_182, %c8_i32_183 : i32
    %506 = tpu.assume_multiple %505, 8 : i32
    %507 = arith.index_cast %506 : i32 to index
    %c0_184 = arith.constant 0 : index
    %508 = vector.load %arg12[%507, %c0_184] : memref<64x32xf32, #tpu.memory_space<vmem>>, vector<8x32xf32>
    %509 = arith.index_cast %506 : i32 to index
    %c0_185 = arith.constant 0 : index
    %510 = vector.load %arg13[%509, %c0_185] : memref<64x32xf32, #tpu.memory_space<vmem>>, vector<8x32xf32>
    %511 = arith.index_cast %506 : i32 to index
    %c0_186 = arith.constant 0 : index
    %512 = vector.load %arg14[%511, %c0_186] : memref<64x32xf32, #tpu.memory_space<vmem>>, vector<8x32xf32>
    %cst_187 = arith.constant dense<0.000000e+00> : vector<8x32xf32>
    %513 = tpu.matmul %502, %309, %cst_187 {dimension_numbers = #tpu.dot_dimension_numbers<[1], [0], [0], [1], [0, 0, 1, 1], [], []>} : vector<8x32xf32>, vector<32x32xf32>, vector<8x32xf32> -> vector<8x32xf32>
    %514 = arith.addf %508, %513 : vector<8x32xf32>
    %515 = arith.negf %514 : vector<8x32xf32>
    %516 = math.exp %515 : vector<8x32xf32>
    %cst_188 = arith.constant 1.000000e+00 : f32
    %517 = vector.broadcast %cst_188 : f32 to vector<8x32xf32>
    %518 = arith.addf %517, %516 : vector<8x32xf32>
    %519 = arith.divf %517, %518 : vector<8x32xf32>
    %cst_189 = arith.constant dense<0.000000e+00> : vector<8x32xf32>
    %520 = tpu.matmul %502, %310, %cst_189 {dimension_numbers = #tpu.dot_dimension_numbers<[1], [0], [0], [1], [0, 0, 1, 1], [], []>} : vector<8x32xf32>, vector<32x32xf32>, vector<8x32xf32> -> vector<8x32xf32>
    %521 = arith.addf %510, %520 : vector<8x32xf32>
    %522 = arith.negf %521 : vector<8x32xf32>
    %523 = math.exp %522 : vector<8x32xf32>
    %cst_190 = arith.constant 1.000000e+00 : f32
    %524 = vector.broadcast %cst_190 : f32 to vector<8x32xf32>
    %525 = arith.addf %524, %523 : vector<8x32xf32>
    %526 = arith.divf %524, %525 : vector<8x32xf32>
    %cst_191 = arith.constant dense<0.000000e+00> : vector<8x32xf32>
    %527 = tpu.matmul %502, %311, %cst_191 {dimension_numbers = #tpu.dot_dimension_numbers<[1], [0], [0], [1], [0, 0, 1, 1], [], []>} : vector<8x32xf32>, vector<32x32xf32>, vector<8x32xf32> -> vector<8x32xf32>
    %528 = vector.broadcast %312 : vector<1x32xf32> to vector<8x32xf32>
    %529 = arith.addf %527, %528 : vector<8x32xf32>
    %530 = arith.mulf %519, %529 : vector<8x32xf32>
    %531 = arith.addf %512, %530 : vector<8x32xf32>
    %532 = math.tanh %531 : vector<8x32xf32>
    %cst_192 = arith.constant 1.000000e+00 : f32
    %533 = vector.broadcast %cst_192 : f32 to vector<8x32xf32>
    %534 = arith.subf %533, %526 : vector<8x32xf32>
    %535 = arith.mulf %534, %532 : vector<8x32xf32>
    %536 = arith.mulf %526, %502 : vector<8x32xf32>
    %537 = arith.addf %535, %536 : vector<8x32xf32>
    %538 = arith.index_cast %506 : i32 to index
    %c0_193 = arith.constant 0 : index
    %539 = vector.load %arg15[%538, %c0_193] : memref<64x32xf32, #tpu.memory_space<vmem>>, vector<8x32xf32>
    tpu.vector_store %arg15[%538, %c0_193], %537 {strides = array<i32>} : memref<64x32xf32, #tpu.memory_space<vmem>>, vector<8x32xf32>,
    %c6_i32_194 = arith.constant 6 : i32
    %c8_i32_195 = arith.constant 8 : i32
    %540 = arith.muli %c6_i32_194, %c8_i32_195 : i32
    %541 = tpu.assume_multiple %540, 8 : i32
    %542 = arith.index_cast %541 : i32 to index
    %c0_196 = arith.constant 0 : index
    %543 = vector.load %arg12[%542, %c0_196] : memref<64x32xf32, #tpu.memory_space<vmem>>, vector<8x32xf32>
    %544 = arith.index_cast %541 : i32 to index
    %c0_197 = arith.constant 0 : index
    %545 = vector.load %arg13[%544, %c0_197] : memref<64x32xf32, #tpu.memory_space<vmem>>, vector<8x32xf32>
    %546 = arith.index_cast %541 : i32 to index
    %c0_198 = arith.constant 0 : index
    %547 = vector.load %arg14[%546, %c0_198] : memref<64x32xf32, #tpu.memory_space<vmem>>, vector<8x32xf32>
    %cst_199 = arith.constant dense<0.000000e+00> : vector<8x32xf32>
    %548 = tpu.matmul %537, %309, %cst_199 {dimension_numbers = #tpu.dot_dimension_numbers<[1], [0], [0], [1], [0, 0, 1, 1], [], []>} : vector<8x32xf32>, vector<32x32xf32>, vector<8x32xf32> -> vector<8x32xf32>
    %549 = arith.addf %543, %548 : vector<8x32xf32>
    %550 = arith.negf %549 : vector<8x32xf32>
    %551 = math.exp %550 : vector<8x32xf32>
    %cst_200 = arith.constant 1.000000e+00 : f32
    %552 = vector.broadcast %cst_200 : f32 to vector<8x32xf32>
    %553 = arith.addf %552, %551 : vector<8x32xf32>
    %554 = arith.divf %552, %553 : vector<8x32xf32>
    %cst_201 = arith.constant dense<0.000000e+00> : vector<8x32xf32>
    %555 = tpu.matmul %537, %310, %cst_201 {dimension_numbers = #tpu.dot_dimension_numbers<[1], [0], [0], [1], [0, 0, 1, 1], [], []>} : vector<8x32xf32>, vector<32x32xf32>, vector<8x32xf32> -> vector<8x32xf32>
    %556 = arith.addf %545, %555 : vector<8x32xf32>
    %557 = arith.negf %556 : vector<8x32xf32>
    %558 = math.exp %557 : vector<8x32xf32>
    %cst_202 = arith.constant 1.000000e+00 : f32
    %559 = vector.broadcast %cst_202 : f32 to vector<8x32xf32>
    %560 = arith.addf %559, %558 : vector<8x32xf32>
    %561 = arith.divf %559, %560 : vector<8x32xf32>
    %cst_203 = arith.constant dense<0.000000e+00> : vector<8x32xf32>
    %562 = tpu.matmul %537, %311, %cst_203 {dimension_numbers = #tpu.dot_dimension_numbers<[1], [0], [0], [1], [0, 0, 1, 1], [], []>} : vector<8x32xf32>, vector<32x32xf32>, vector<8x32xf32> -> vector<8x32xf32>
    %563 = vector.broadcast %312 : vector<1x32xf32> to vector<8x32xf32>
    %564 = arith.addf %562, %563 : vector<8x32xf32>
    %565 = arith.mulf %554, %564 : vector<8x32xf32>
    %566 = arith.addf %547, %565 : vector<8x32xf32>
    %567 = math.tanh %566 : vector<8x32xf32>
    %cst_204 = arith.constant 1.000000e+00 : f32
    %568 = vector.broadcast %cst_204 : f32 to vector<8x32xf32>
    %569 = arith.subf %568, %561 : vector<8x32xf32>
    %570 = arith.mulf %569, %567 : vector<8x32xf32>
    %571 = arith.mulf %561, %537 : vector<8x32xf32>
    %572 = arith.addf %570, %571 : vector<8x32xf32>
    %573 = arith.index_cast %541 : i32 to index
    %c0_205 = arith.constant 0 : index
    %574 = vector.load %arg15[%573, %c0_205] : memref<64x32xf32, #tpu.memory_space<vmem>>, vector<8x32xf32>
    tpu.vector_store %arg15[%573, %c0_205], %572 {strides = array<i32>} : memref<64x32xf32, #tpu.memory_space<vmem>>, vector<8x32xf32>,
    %c7_i32_206 = arith.constant 7 : i32
    %c8_i32_207 = arith.constant 8 : i32
    %575 = arith.muli %c7_i32_206, %c8_i32_207 : i32
    %576 = tpu.assume_multiple %575, 8 : i32
    %577 = arith.index_cast %576 : i32 to index
    %c0_208 = arith.constant 0 : index
    %578 = vector.load %arg12[%577, %c0_208] : memref<64x32xf32, #tpu.memory_space<vmem>>, vector<8x32xf32>
    %579 = arith.index_cast %576 : i32 to index
    %c0_209 = arith.constant 0 : index
    %580 = vector.load %arg13[%579, %c0_209] : memref<64x32xf32, #tpu.memory_space<vmem>>, vector<8x32xf32>
    %581 = arith.index_cast %576 : i32 to index
    %c0_210 = arith.constant 0 : index
    %582 = vector.load %arg14[%581, %c0_210] : memref<64x32xf32, #tpu.memory_space<vmem>>, vector<8x32xf32>
    %cst_211 = arith.constant dense<0.000000e+00> : vector<8x32xf32>
    %583 = tpu.matmul %572, %309, %cst_211 {dimension_numbers = #tpu.dot_dimension_numbers<[1], [0], [0], [1], [0, 0, 1, 1], [], []>} : vector<8x32xf32>, vector<32x32xf32>, vector<8x32xf32> -> vector<8x32xf32>
    %584 = arith.addf %578, %583 : vector<8x32xf32>
    %585 = arith.negf %584 : vector<8x32xf32>
    %586 = math.exp %585 : vector<8x32xf32>
    %cst_212 = arith.constant 1.000000e+00 : f32
    %587 = vector.broadcast %cst_212 : f32 to vector<8x32xf32>
    %588 = arith.addf %587, %586 : vector<8x32xf32>
    %589 = arith.divf %587, %588 : vector<8x32xf32>
    %cst_213 = arith.constant dense<0.000000e+00> : vector<8x32xf32>
    %590 = tpu.matmul %572, %310, %cst_213 {dimension_numbers = #tpu.dot_dimension_numbers<[1], [0], [0], [1], [0, 0, 1, 1], [], []>} : vector<8x32xf32>, vector<32x32xf32>, vector<8x32xf32> -> vector<8x32xf32>
    %591 = arith.addf %580, %590 : vector<8x32xf32>
    %592 = arith.negf %591 : vector<8x32xf32>
    %593 = math.exp %592 : vector<8x32xf32>
    %cst_214 = arith.constant 1.000000e+00 : f32
    %594 = vector.broadcast %cst_214 : f32 to vector<8x32xf32>
    %595 = arith.addf %594, %593 : vector<8x32xf32>
    %596 = arith.divf %594, %595 : vector<8x32xf32>
    %cst_215 = arith.constant dense<0.000000e+00> : vector<8x32xf32>
    %597 = tpu.matmul %572, %311, %cst_215 {dimension_numbers = #tpu.dot_dimension_numbers<[1], [0], [0], [1], [0, 0, 1, 1], [], []>} : vector<8x32xf32>, vector<32x32xf32>, vector<8x32xf32> -> vector<8x32xf32>
    %598 = vector.broadcast %312 : vector<1x32xf32> to vector<8x32xf32>
    %599 = arith.addf %597, %598 : vector<8x32xf32>
    %600 = arith.mulf %589, %599 : vector<8x32xf32>
    %601 = arith.addf %582, %600 : vector<8x32xf32>
    %602 = math.tanh %601 : vector<8x32xf32>
    %cst_216 = arith.constant 1.000000e+00 : f32
    %603 = vector.broadcast %cst_216 : f32 to vector<8x32xf32>
    %604 = arith.subf %603, %596 : vector<8x32xf32>
    %605 = arith.mulf %604, %602 : vector<8x32xf32>
    %606 = arith.mulf %596, %572 : vector<8x32xf32>
    %607 = arith.addf %605, %606 : vector<8x32xf32>
    %608 = arith.index_cast %576 : i32 to index
    %c0_217 = arith.constant 0 : index
    %609 = vector.load %arg15[%608, %c0_217] : memref<64x32xf32, #tpu.memory_space<vmem>>, vector<8x32xf32>
    tpu.vector_store %arg15[%608, %c0_217], %607 {strides = array<i32>} : memref<64x32xf32, #tpu.memory_space<vmem>>, vector<8x32xf32>,
    %c8_i32_218 = arith.constant 8 : i32
    %c0_219 = arith.constant 0 : index
    %c0_220 = arith.constant 0 : index
    %610 = vector.load %arg2[%c0_219, %c0_220] : memref<64x1xi32, #tpu.memory_space<vmem>>, vector<64x1xi32>
    %c0_i32_221 = arith.constant 0 : i32
    %611 = vector.broadcast %c0_i32_221 : i32 to vector<64x1xi32>
    %612 = arith.cmpi ne, %610, %611 : vector<64x1xi32>
    %c0_222 = arith.constant 0 : index
    %c0_223 = arith.constant 0 : index
    %613 = vector.load %arg15[%c0_222, %c0_223] : memref<64x32xf32, #tpu.memory_space<vmem>>, vector<64x32xf32>
    %cst_224 = arith.constant -1.000000e+00 : f32
    %614 = vector.shape_cast %612 : vector<64x1xi1> to vector<64x1xi1>
    %615 = vector.broadcast %614 : vector<64x1xi1> to vector<64x32xi1>
    %616 = vector.broadcast %cst_224 : f32 to vector<64x32xf32>
    %617 = arith.select %615, %613, %616 : vector<64x32xi1>, vector<64x32xf32>
    %c0_225 = arith.constant 0 : index
    %c0_226 = arith.constant 0 : index
    %618 = vector.load %arg11[%c0_225, %c0_226] : memref<64x32xf32, #tpu.memory_space<vmem>>, vector<64x32xf32>
    tpu.vector_store %arg11[%c0_225, %c0_226], %617 {strides = array<i32>} : memref<64x32xf32, #tpu.memory_space<vmem>>, vector<64x32xf32>,
    return
  }
  func.func @transform_0(%arg0: i32) -> (i32, i32) {
    %c0_i32 = arith.constant 0 : i32
    %c0_i32_0 = arith.constant 0 : i32
    return %arg0, %c0_i32 : i32, i32
  }
  func.func @transform_1(%arg0: i32) -> (i32, i32) {
    %c0_i32 = arith.constant 0 : i32
    %c0_i32_0 = arith.constant 0 : i32
    return %arg0, %c0_i32 : i32, i32
  }
  func.func @transform_2(%arg0: i32) -> (i32, i32) {
    %c0_i32 = arith.constant 0 : i32
    %c0_i32_0 = arith.constant 0 : i32
    %c0_i32_1 = arith.constant 0 : i32
    return %c0_i32, %c0_i32_0 : i32, i32
  }
  func.func @transform_3(%arg0: i32) -> (i32, i32) {
    %c0_i32 = arith.constant 0 : i32
    %c0_i32_0 = arith.constant 0 : i32
    %c0_i32_1 = arith.constant 0 : i32
    return %c0_i32, %c0_i32_0 : i32, i32
  }
  func.func @transform_4(%arg0: i32) -> (i32, i32) {
    %c0_i32 = arith.constant 0 : i32
    %c0_i32_0 = arith.constant 0 : i32
    %c0_i32_1 = arith.constant 0 : i32
    return %c0_i32, %c0_i32_0 : i32, i32
  }
  func.func @transform_5(%arg0: i32) -> (i32, i32) {
    %c0_i32 = arith.constant 0 : i32
    %c0_i32_0 = arith.constant 0 : i32
    %c0_i32_1 = arith.constant 0 : i32
    return %c0_i32, %c0_i32_0 : i32, i32
  }
  func.func @transform_6(%arg0: i32) -> (i32, i32) {
    %c0_i32 = arith.constant 0 : i32
    %c0_i32_0 = arith.constant 0 : i32
    %c0_i32_1 = arith.constant 0 : i32
    return %c0_i32, %c0_i32_0 : i32, i32
  }
  func.func @transform_7(%arg0: i32) -> (i32, i32) {
    %c0_i32 = arith.constant 0 : i32
    %c0_i32_0 = arith.constant 0 : i32
    %c0_i32_1 = arith.constant 0 : i32
    return %c0_i32, %c0_i32_0 : i32, i32
  }
  func.func @transform_8(%arg0: i32) -> (i32, i32) {
    %c0_i32 = arith.constant 0 : i32
    %c0_i32_0 = arith.constant 0 : i32
    %c0_i32_1 = arith.constant 0 : i32
    return %c0_i32, %c0_i32_0 : i32, i32
  }
  func.func @transform_9(%arg0: i32) -> (i32, i32) {
    %c0_i32 = arith.constant 0 : i32
    %c0_i32_0 = arith.constant 0 : i32
    %c0_i32_1 = arith.constant 0 : i32
    return %c0_i32, %c0_i32_0 : i32, i32
  }
  func.func @transform_10(%arg0: i32) -> (i32, i32) {
    %c0_i32 = arith.constant 0 : i32
    %c0_i32_0 = arith.constant 0 : i32
    return %arg0, %c0_i32 : i32, i32
  }
}

</mosaic_0001>

<bundles_post_ra>
// kernel: tpu_custom_call.1
= control target key start
LH: loop header
LB: loop body
LE: loop exit
PB: predicated region body
PF: predicated region fallthrough
CT: control target
= control target key end

     0   :  { %vm57_vm0 = vcmask 130048   ;;  %v5619_v3 = vmov 0.0   ;;  %vm5620_vm1 = vmmov 0   ;;  %s5621_s19 = smov 96   ;;  %s5622_s13 = smov 64   ;;  %vm201_vm2 = vcmask 261120   ;;  %s6676_s3 = inlined_call_operand.vmem [shape: f32[32,96], index: 3, kind: input, shape index: {}]   ;;  %s6677_s2 = inlined_call_operand.vmem [shape: f32[16,96], index: 2, kind: input, shape index: {}]   ;;  %s6678_s0 = inlined_call_operand.vmem [shape: f32[64,16], index: 0, kind: input, shape index: {}]   ;;  %s6679_s4 = inlined_call_operand.vmem [shape: f32[1,96], index: 4, kind: input, shape index: {}]   ;;  %s6680_s5 = inlined_call_operand.vmem [shape: f32[1,96], index: 5, kind: input, shape index: {}]   ;;  %s6681_s6 = inlined_call_operand.vmem [shape: f32[32,96], index: 6, kind: input, shape index: {}]   ;;  %s6682_s7 = inlined_call_operand.vmem [shape: f32[32,96], index: 7, kind: input, shape index: {}]   ;;  %s6683_s8 = inlined_call_operand.vmem [shape: f32[1,96], index: 8, kind: input, shape index: {}]   ;;  %s6684_s9 = inlined_call_operand.vmem [shape: f32[1,96], index: 9, kind: input, shape index: {}]   ;;  %s6685_s1 = inlined_call_operand.vmem [shape: s32[64,1], index: 1, kind: input, shape index: {}]   ;;  %s6686_s10 = inlined_call_operand.vmem [shape: f32[64,32], index: 10, kind: output, shape index: {}]  }
   0x1   :  { %v5682_v0 = vld [vmem:[%s6676_s3 + $0x18] sm:$0xff]  ;;  %v36_v1 = vld [vmem:[%s6677_s2 + $0x8] sm:$0xff]  ;;  %4896 = vmatprep.subr.mxu1 %v5619_v3  ;;  %4904 = vmatprep.mubr.msk.f32.mxu1 %vm5620_vm1, %v5619_v3  ;;  %v35_v4 = vld [vmem:[%s6677_s2] sm:$0xff] }
   0x2   :  { %v5690_v2 = vld [vmem:[%s6676_s3 + $0x8] sm:$0xff]  ;;  %383 = vrot.lane.b32.xlu0 %v5682_v0, %s5621_s19  ;;  %4880 = vmatprep.subr.mxu0 %v36_v1  ;;  %v43_v5 = vld [vmem:[%s6678_s0] sm:$0xff]  ;;  %v5708_v6 = vld [vmem:[%s6676_s3 + $0x10] sm:$0xff] }
   0x3   :  { %4881 = vmatpush3.msra.mxu0 %v36_v1  ;;  %379 = vrot.lane.b32.xlu1 %v5690_v2, %s5621_s19  ;;  %v44_v7 = vld [vmem:[%s6678_s0 + $0x8] sm:$0xff]  ;;  %v5717_v8 = vld [vmem:[%s6676_s3] sm:$0xff]  ;;  %v45_v9 = vld [vmem:[%s6678_s0 + $0x10] sm:$0xff] }
   0x4   :  { %4882 = vmatprep.subr.mxu0 %v35_v4  ;;  %4884 = vmatprep.mubr.msk.f32.mxu0 %vm57_vm0, %v43_v5  ;;  %v46_v10 = vld [vmem:[%s6678_s0 + $0x18] sm:$0xff]  ;;  %v47_v11 = vld [vmem:[%s6678_s0 + $0x20] sm:$0xff]  ;;  %v48_v12 = vld [vmem:[%s6678_s0 + $0x28] sm:$0xff] }
   0x5   :  { %4883 = vmatpush3.msra.mxu0 %v35_v4  ;;  %4897 = vmatpush3.msra.mxu1 %v5682_v0  ;;  %v49_v13 = vld [vmem:[%s6678_s0 + $0x30] sm:$0xff]  ;;  %v50_v14 = vld [vmem:[%s6678_s0 + $0x38] sm:$0xff]  ;;  %v4524_v23 = vld [vmem:[%s6679_s4] ss:$0 sm:$0xff] }
   0x6   :  { %381 = vrot.lane.b32.xlu0 %v5708_v6, %s5621_s19  ;;  %4885 = vmatmul.mubr.msk.f32.vlgmr.msra.gmra.mxu0 %vm57_vm0, %v44_v7  ;;  %v4533_v24 = vld [vmem:[%s6680_s5] ss:$0 sm:$0xff] }
   0x7   :  { %377 = vrot.lane.b32.xlu1 %v5717_v8, %s5621_s19  ;;  %4898 = vmatprep.subr.mxu1 %v5619_v3 }
   0x8   :  { %4899 = vmatpush3.msra.mxu1 %v5708_v6  ;;  %4887 = vmatprep.mubr.msk.f32.mxu0 %vm57_vm0, %v45_v9 }
   0x9   :  { %4900 = vmatprep.subr.mxu1 %v5619_v3  ;;  %4918 = vmatprep.subr.mxu0 %v5619_v3 }
   0xa   :  { %472 = vrot.lane.b32.xlu0 %v5682_v0, %s5622_s13  ;;  %4901 = vmatpush3.msra.mxu1 %v5690_v2 }
   0xb   :  { %470 = vrot.lane.b32.xlu1 %v5708_v6, %s5622_s13  ;;  %4902 = vmatprep.subr.mxu1 %v5619_v3 }
   0xc   :  { %4903 = vmatpush3.msra.mxu1 %v5717_v8  ;;  %4888 = vmatmul.mubr.msk.f32.gmra.mxu0 %vm57_vm0, %v46_v10 }
   0xd   :  { %4905 = vmatmul.mubr.f32.vlgmr.msra.gmra.mxu1 %v5619_v3  ;;  %4890 = vmatprep.mubr.msk.f32.mxu0 %vm57_vm0, %v47_v11 }
   0xe   :  { %468 = vrot.lane.b32.xlu0 %v5690_v2, %s5622_s13  ;;  %4907 = vmatprep.subr.mxu1 %v5619_v3 }
   0xf   :  { %466 = vrot.lane.b32.xlu1 %v5717_v8, %s5622_s13  ;;  %4915 = vmatprep.mubr.msk.f32.mxu1 %vm5620_vm1, %v5619_v3 }
  0x10   :  { %4891 = vmatmul.mubr.msk.f32.gmra.mxu0 %vm57_vm0, %v48_v12 }
  0x11   :  { %4893 = vmatprep.mubr.msk.f32.mxu0 %vm57_vm0, %v49_v13 }
  0x14   :  { %4894 = vmatmul.mubr.msk.f32.gmra.mxu0 %vm57_vm0, %v50_v14 }
  0x15   :  { %4926 = vmatprep.mubr.msk.f32.mxu0 %vm5620_vm1, %v5619_v3 }
  0x74   :  { %v5770_v15 = vpop.permute.xlu0 %383 }
  0x75   :  { %v5772_v16 = vpop.permute.xlu1 %379  ;;  %4908 = vmatpush3.msra.mxu1 %v5770_v15 }
  0x76   :  { %4909 = vmatprep.subr.mxu1 %v5619_v3 }
  0x78   :  { %v5776_v17 = vpop.permute.xlu0 %381 }
  0x79   :  { %v5778_v18 = vpop.permute.xlu1 %377  ;;  %4910 = vmatpush3.msra.mxu1 %v5776_v17 }
  0x7a   :  { %4911 = vmatprep.subr.mxu1 %v5619_v3 }
  0x7b   :  { %4912 = vmatpush3.msra.mxu1 %v5772_v16 }
  0x7c   :  { %v5783_v19 = vpop.permute.xlu0 %472  ;;  %4913 = vmatprep.subr.mxu1 %v5619_v3 }
  0x7d   :  { %4919 = vmatpush3.msra.mxu0 %v5783_v19  ;;  %v5787_v20 = vpop.permute.xlu1 %470  ;;  %4914 = vmatpush3.msra.mxu1 %v5778_v18 }
  0x7e   :  { %4920 = vmatprep.subr.mxu0 %v5619_v3  ;;  %4916 = vmatmul.mubr.f32.vlgmr.msra.gmra.mxu1 %v5619_v3 }
  0x7f   :  { %4921 = vmatpush3.msra.mxu0 %v5787_v20  ;;  %4929 = vmatprep.subr.mxu1 %v5619_v3 }
  0x80   :  { %v5794_v21 = vpop.permute.xlu0 %468  ;;  %4922 = vmatprep.subr.mxu0 %v5619_v3  ;;  %4930 = vmatpush3.msra.mxu1 %v5682_v0 }
  0x81   :  { %4923 = vmatpush3.msra.mxu0 %v5794_v21  ;;  %v5799_v22 = vpop.permute.xlu1 %466  ;;  %4931 = vmatprep.subr.mxu1 %v5619_v3 }
  0x82   :  { %4924 = vmatprep.subr.mxu0 %v5619_v3  ;;  %4932 = vmatpush3.msra.mxu1 %v5708_v6 }
  0x83   :  { %4925 = vmatpush3.msra.mxu0 %v5799_v22  ;;  %4933 = vmatprep.subr.mxu1 %v5619_v3 }
  0x84   :  { %4927 = vmatmul.mubr.f32.vlgmr.msra.gmra.mxu0 %v5619_v3  ;;  %4940 = vmatprep.subr.mxu0 %v5619_v3 }
  0x85   :  { %4941 = vmatpush3.msra.mxu0 %v5770_v15  ;;  %4934 = vmatpush3.msra.mxu1 %v5690_v2 }
  0x86   :  { %4942 = vmatprep.subr.mxu0 %v5619_v3  ;;  %4935 = vmatprep.subr.mxu1 %v5619_v3 }
  0x87   :  { %4943 = vmatpush3.msra.mxu0 %v5776_v17  ;;  %4936 = vmatpush3.msra.mxu1 %v5717_v8 }
  0x88   :  { %4944 = vmatprep.subr.mxu0 %v5619_v3  ;;  %4937 = vmatprep.mubr.msk.f32.mxu1 %vm5620_vm1, %v5619_v3 }
  0x89   :  { %4945 = vmatpush3.msra.mxu0 %v5772_v16  ;;  %4948 = vmatprep.mubr.msk.f32.mxu0 %vm5620_vm1, %v5619_v3 }
  0x8a   :  { %4946 = vmatprep.subr.mxu0 %v5619_v3  ;;  %4951 = vmatprep.subr.mxu1 %v5619_v3 }
  0x8b   :  { %4947 = vmatpush3.msra.mxu0 %v5778_v18 }
  0x8c   :  { %4962 = vmatprep.subr.mxu0 %v5619_v3 }
  0xc6   :  { %v4886_v25 = vpop.f32.mrf.mxu0 }
  0xc7   :  { %v154_v26 = vadd.f32 %v4886_v25, %v4524_v23 }
  0xc8   :  { %v148_v27 = vpop.f32.mrf.mxu0 }
  0xc9   :  { %v194_v28 = vadd.f32 %v4533_v24, %v154_v26  ;;  %v149_v29 = vadd.f32 %v4524_v23, %v148_v27 }
  0xcb   :  { %203 = vst.msk [vmem:[#allocation2 + $0x8] sm:$0xff] %vm201_vm2, %v194_v28  ;;  %v193_v30 = vadd.f32 %v4533_v24, %v149_v29  ;;  %258 = vrot.lane.b32.xlu1 %v149_v29, %s5622_s13 }
  0xcc   :  { %v4889_v31 = vpop.f32.mrf.mxu0 }
  0xcd   :  { %202 = vst.msk [vmem:[#allocation2] sm:$0xff] %vm201_vm2, %v193_v30  ;;  %218 = vrot.lane.b32.xlu0 %v193_v30, %s5621_s19  ;;  %v362_v32 = vpop.f32.mrf.mxu1  ;;  %v164_v33 = vadd.f32 %v4889_v31, %v4524_v23 }
  0xce   :  { %v158_v34 = vpop.f32.mrf.mxu0 }
  0xcf   :  { %220 = vrot.lane.b32.xlu1 %v194_v28, %s5621_s19  ;;  %v4906_v35 = vpop.f32.mrf.mxu1  ;;  %v196_v36 = vadd.f32 %v4533_v24, %v164_v33  ;;  %v159_v37 = vadd.f32 %v4524_v23, %v158_v34 }
  0xd0   :  { %v4892_v38 = vpop.f32.mrf.mxu0 }
  0xd1   :  { %478 = vrot.lane.b32.xlu0 %v4533_v24, %s5622_s13  ;;  %205 = vst.msk [vmem:[#allocation2 + $0x18] sm:$0xff] %vm201_vm2, %v196_v36  ;;  %v195_v39 = vadd.f32 %v4533_v24, %v159_v37  ;;  %v174_v40 = vadd.f32 %v4892_v38, %v4524_v23 }
  0xd2   :  { %v168_v41 = vpop.f32.mrf.mxu0 }
  0xd3   :  { %204 = vst.msk [vmem:[#allocation2 + $0x10] sm:$0xff] %vm201_vm2, %v195_v39  ;;  %v198_v42 = vadd.f32 %v4533_v24, %v174_v40  ;;  %v169_v43 = vadd.f32 %v4524_v23, %v168_v41  ;;  %222 = vrot.lane.b32.xlu1 %v195_v39, %s5621_s19 }
  0xd4   :  { %v4895_v44 = vpop.f32.mrf.mxu0  ;;  %v290_v51 = vld [vmem:[#allocation2] sm:$0xff] }
  0xd5   :  { %260 = vrot.lane.b32.xlu0 %v154_v26, %s5622_s13  ;;  %207 = vst.msk [vmem:[#allocation2 + $0x28] sm:$0xff] %vm201_vm2, %v198_v42  ;;  %v197_v45 = vadd.f32 %v4533_v24, %v169_v43  ;;  %v184_v46 = vadd.f32 %v4895_v44, %v4524_v23  ;;  %v366_v52 = vadd.f32 %v362_v32, %v290_v51 }
  0xd6   :  { %v178_v47 = vpop.f32.mrf.mxu0 }
  0xd7   :  { %206 = vst.msk [vmem:[#allocation2 + $0x20] sm:$0xff] %vm201_vm2, %v197_v45  ;;  %v200_v48 = vadd.f32 %v4533_v24, %v184_v46  ;;  %v179_v49 = vadd.f32 %v4524_v23, %v178_v47  ;;  %224 = vrot.lane.b32.xlu1 %v196_v36, %s5621_s19  ;;  %v4534_v53 = vmul.f32 -1.442695, %v366_v52 }
  0xd9   :  { %209 = vst.msk [vmem:[#allocation2 + $0x38] sm:$0xff] %vm201_vm2, %v200_v48  ;;  %v199_v50 = vadd.f32 %v4533_v24, %v179_v49  ;;  %262 = vrot.lane.b32.xlu0 %v159_v37, %s5622_s13  ;;  %5451 = vpow2.f32 %v4534_v53 }
  0xdb   :  { %208 = vst.msk [vmem:[#allocation2 + $0x30] sm:$0xff] %vm201_vm2, %v199_v50  ;;  %226 = vrot.lane.b32.xlu1 %v197_v45, %s5621_s19 }
  0xdd   :  { %264 = vrot.lane.b32.xlu0 %v164_v33, %s5622_s13 }
  0xdf   :  { %228 = vrot.lane.b32.xlu1 %v198_v42, %s5621_s19  ;;  %v560_v42 = vld [vmem:[#allocation2 + $0x8] sm:$0xff] }
  0xe1   :  { %266 = vrot.lane.b32.xlu0 %v169_v43, %s5622_s13 }
  0xe3   :  { %230 = vrot.lane.b32.xlu1 %v199_v50, %s5621_s19 }
  0xe5   :  { %268 = vrot.lane.b32.xlu0 %v174_v40, %s5622_s13 }
  0xe6   :  { %v5452_v58 = vpop.eup %5451 }
  0xe7   :  { %232 = vrot.lane.b32.xlu1 %v200_v48, %s5621_s19  ;;  %v370_v61 = vadd.f32 1.0, %v5452_v58 }
  0xe9   :  { %270 = vrot.lane.b32.xlu0 %v179_v49, %s5622_s13  ;;  %5453 = vrcp.f32 %v370_v61 }
  0xed   :  { %272 = vrot.lane.b32.xlu0 %v184_v46, %s5622_s13 }
  0xf6   :  { %v5454_v25 = vpop.eup %5453 }
 0x13d   :  { %v259_v54 = vpop.permute.xlu1 %258 }
 0x13e   :  { %282 = vst.msk [vmem:[#allocation4] sm:$0xff] %vm201_vm2, %v259_v54  ;;  %v455_v55 = vpop.f32.mrf.mxu1 }
 0x13f   :  { %v219_v56 = vpop.permute.xlu0 %218 }
 0x140   :  { %242 = vst.msk [vmem:[#allocation3] sm:$0xff] %vm201_vm2, %v219_v56  ;;  %v4917_v57 = vpop.f32.mrf.mxu1 }
 0x141   :  { %v221_v59 = vpop.permute.xlu1 %220 }
 0x142   :  { %243 = vst.msk [vmem:[#allocation3 + $0x8] sm:$0xff] %vm201_vm2, %v221_v59 }
 0x143   :  { %v5858_v60 = vpop.permute.xlu0 %478 }
 0x144   :  { %v547_v62 = vpop.f32.mrf.mxu0 }
 0x145   :  { %v223_v63 = vpop.permute.xlu1 %222  ;;  %v548_v23 = vadd.f32 %v547_v62, %v5858_v60  ;;  %v292_v30 = vld [vmem:[#allocation4] sm:$0xff] }
 0x146   :  { %v4928_v1 = vpop.f32.mrf.mxu0  ;;  %244 = vst.msk [vmem:[#allocation3 + $0x10] sm:$0xff] %vm201_vm2, %v223_v63 }
 0x147   :  { %v291_v4 = vld [vmem:[#allocation3] sm:$0xff]  ;;  %v261_v5 = vpop.permute.xlu0 %260  ;;  %v551_v27 = vmul.f32 %v5454_v25, %v548_v23 }
 0x148   :  { %v459_v7 = vadd.f32 %v455_v55, %v291_v4  ;;  %283 = vst.msk [vmem:[#allocation4 + $0x8] sm:$0xff] %vm201_vm2, %v261_v5 }
 0x149   :  { %v225_v9 = vpop.permute.xlu1 %224  ;;  %v552_v32 = vadd.f32 %v551_v27, %v292_v30  ;;  %v562_v49 = vld [vmem:[#allocation3 + $0x8] sm:$0xff] }
 0x14a   :  { %v4535_v10 = vmul.f32 -1.442695, %v459_v7  ;;  %245 = vst.msk [vmem:[#allocation3 + $0x18] sm:$0xff] %vm201_vm2, %v225_v9 }
 0x14b   :  { %v263_v11 = vpop.permute.xlu0 %262 }
 0x14c   :  { %5455 = vpow2.f32 %v4535_v10  ;;  %284 = vst.msk [vmem:[#allocation4 + $0x10] sm:$0xff] %vm201_vm2, %v263_v11  ;;  %v802_v11 = vld [vmem:[#allocation2 + $0x10] sm:$0xff] }
 0x14d   :  { %v227_v12 = vpop.permute.xlu1 %226 }
 0x14e   :  { %246 = vst.msk [vmem:[#allocation3 + $0x20] sm:$0xff] %vm201_vm2, %v227_v12 }
 0x14f   :  { %v265_v13 = vpop.permute.xlu0 %264  ;;  %v564_v62 = vld [vmem:[#allocation4 + $0x8] sm:$0xff] }
 0x150   :  { %285 = vst.msk [vmem:[#allocation4 + $0x18] sm:$0xff] %vm201_vm2, %v265_v13 }
 0x151   :  { %v229_v14 = vpop.permute.xlu1 %228 }
 0x152   :  { %247 = vst.msk [vmem:[#allocation3 + $0x28] sm:$0xff] %vm201_vm2, %v229_v14 }
 0x153   :  { %v267_v24 = vpop.permute.xlu0 %266 }
 0x154   :  { %286 = vst.msk [vmem:[#allocation4 + $0x20] sm:$0xff] %vm201_vm2, %v267_v24 }
 0x155   :  { %v231_v26 = vpop.permute.xlu1 %230 }
 0x156   :  { %248 = vst.msk [vmem:[#allocation3 + $0x30] sm:$0xff] %vm201_vm2, %v231_v26  ;;  %v804_v26 = vld [vmem:[#allocation3 + $0x10] sm:$0xff] }
 0x157   :  { %v269_v28 = vpop.permute.xlu0 %268 }
 0x158   :  { %287 = vst.msk [vmem:[#allocation4 + $0x28] sm:$0xff] %vm201_vm2, %v269_v28 }
 0x159   :  { %v5456_v29 = vpop.eup %5455  ;;  %v233_v31 = vpop.permute.xlu1 %232 }
 0x15a   :  { %v463_v33 = vadd.f32 1.0, %v5456_v29  ;;  %249 = vst.msk [vmem:[#allocation3 + $0x38] sm:$0xff] %vm201_vm2, %v233_v31 }
 0x15b   :  { %v271_v34 = vpop.permute.xlu0 %270 }
 0x15c   :  { %5457 = vrcp.f32 %v463_v33  ;;  %288 = vst.msk [vmem:[#allocation4 + $0x30] sm:$0xff] %vm201_vm2, %v271_v34 }
 0x15d   :  { %5459 = vtanh.f32 %v552_v32 }
 0x15f   :  { %v273_v35 = vpop.permute.xlu0 %272 }
 0x160   :  { %289 = vst.msk [vmem:[#allocation4 + $0x38] sm:$0xff] %vm201_vm2, %v273_v35 }
 0x169   :  { %v5458_v36 = vpop.eup %5457 }
 0x16a   :  { %v554_v37 = vsub.f32 1.0, %v5458_v36  ;;  %v5460_v38 = vpop.eup %5459  ;;  %v556_v40 = vmul.f32 0.0, %v5458_v36 }
 0x16c   :  { %v555_v39 = vmul.f32 %v5460_v38, %v554_v37  ;;  %v806_v38 = vld [vmem:[#allocation4 + $0x10] sm:$0xff] }
 0x16e   :  { %v557_v41 = vadd.f32 %v556_v40, %v555_v39 }
 0x170   :  { %558 = vst.msk [vmem:[#allocation5] sm:$0xff] %vm201_vm2, %v557_v41  ;;  %4938 = vmatmul.mubr.msk.f32.vlgmr.msra.gmra.mxu1 %vm201_vm2, %v557_v41  ;;  %4949 = vmatmul.mubr.msk.f32.vlgmr.msra.gmra.mxu0 %vm201_vm2, %v557_v41 }
 0x171   :  { %4952 = vmatpush3.msra.mxu1 %v5783_v19  ;;  %4959 = vmatprep.mubr.msk.f32.mxu1 %vm5620_vm1, %v5619_v3 }
 0x172   :  { %4953 = vmatprep.subr.mxu1 %v5619_v3  ;;  %4963 = vmatpush3.msra.mxu0 %v5682_v0 }
 0x173   :  { %4954 = vmatpush3.msra.mxu1 %v5787_v20  ;;  %4964 = vmatprep.subr.mxu0 %v5619_v3 }
 0x174   :  { %4955 = vmatprep.subr.mxu1 %v5619_v3  ;;  %4965 = vmatpush3.msra.mxu0 %v5708_v6 }
 0x175   :  { %4956 = vmatpush3.msra.mxu1 %v5794_v21  ;;  %4966 = vmatprep.subr.mxu0 %v5619_v3 }
 0x176   :  { %4957 = vmatprep.subr.mxu1 %v5619_v3  ;;  %4967 = vmatpush3.msra.mxu0 %v5690_v2 }
 0x177   :  { %4958 = vmatpush3.msra.mxu1 %v5799_v22  ;;  %4968 = vmatprep.subr.mxu0 %v5619_v3 }
 0x178   :  { %4960 = vmatmul.mubr.msk.f32.vlgmr.msra.gmra.mxu1 %vm201_vm2, %v557_v41  ;;  %4973 = vmatprep.subr.mxu1 %v5619_v3 }
 0x179   :  { %4974 = vmatpush3.msra.mxu1 %v5770_v15  ;;  %4969 = vmatpush3.msra.mxu0 %v5717_v8 }
 0x17a   :  { %4975 = vmatprep.subr.mxu1 %v5619_v3  ;;  %4970 = vmatprep.mubr.msk.f32.mxu0 %vm5620_vm1, %v5619_v3 }
 0x17b   :  { %4976 = vmatpush3.msra.mxu1 %v5776_v17  ;;  %4981 = vmatprep.mubr.msk.f32.mxu1 %vm5620_vm1, %v5619_v3 }
 0x17c   :  { %4977 = vmatprep.subr.mxu1 %v5619_v3  ;;  %4984 = vmatprep.subr.mxu0 %v5619_v3 }
 0x17d   :  { %4978 = vmatpush3.msra.mxu1 %v5772_v16 }
 0x17e   :  { %4979 = vmatprep.subr.mxu1 %v5619_v3 }
 0x17f   :  { %4980 = vmatpush3.msra.mxu1 %v5778_v18 }
 0x180   :  { %4995 = vmatprep.subr.mxu1 %v5619_v3 }
 0x230   :  { %v634_v43 = vpop.f32.mrf.mxu1  ;;  %v711_v44 = vpop.f32.mrf.mxu0 }
 0x231   :  { %v638_v45 = vadd.f32 %v634_v43, %v560_v42  ;;  %v715_v50 = vadd.f32 %v711_v44, %v562_v49 }
 0x232   :  { %v4939_v46 = vpop.f32.mrf.mxu1  ;;  %v4950_v47 = vpop.f32.mrf.mxu0 }
 0x233   :  { %v4537_v48 = vmul.f32 -1.442695, %v638_v45  ;;  %v4539_v53 = vmul.f32 -1.442695, %v715_v50  ;;  %v1044_v46 = vld [vmem:[#allocation2 + $0x18] sm:$0xff] }
 0x235   :  { %5461 = vpow2.f32 %v4537_v48 }
 0x236   :  { %5463 = vpow2.f32 %v4539_v53  ;;  %v1046_v53 = vld [vmem:[#allocation3 + $0x18] sm:$0xff] }
 0x238   :  { %v788_v51 = vpop.f32.mrf.mxu1 }
 0x239   :  { %v789_v58 = vadd.f32 %v788_v51, %v5858_v60 }
 0x23a   :  { %v4961_v52 = vpop.f32.mrf.mxu1 }
 0x242   :  { %v5462_v54 = vpop.eup %5461 }
 0x243   :  { %v642_v55 = vadd.f32 1.0, %v5462_v54  ;;  %v5464_v56 = vpop.eup %5463 }
 0x244   :  { %v719_v57 = vadd.f32 1.0, %v5464_v56 }
 0x245   :  { %5465 = vrcp.f32 %v642_v55 }
 0x246   :  { %5467 = vrcp.f32 %v719_v57 }
 0x252   :  { %v5466_v59 = vpop.eup %5465 }
 0x253   :  { %v792_v61 = vmul.f32 %v5466_v59, %v789_v58  ;;  %v5468_v1 = vpop.eup %5467 }
 0x254   :  { %v795_v4 = vsub.f32 1.0, %v5468_v1  ;;  %v797_v9 = vmul.f32 %v5468_v1, %v557_v41 }
 0x255   :  { %v793_v63 = vadd.f32 %v792_v61, %v564_v62 }
 0x257   :  { %5469 = vtanh.f32 %v793_v63 }
 0x264   :  { %v5470_v5 = vpop.eup %5469 }
 0x265   :  { %v796_v7 = vmul.f32 %v5470_v5, %v795_v4  ;;  %v1048_v5 = vld [vmem:[#allocation4 + $0x18] sm:$0xff] }
 0x267   :  { %v798_v10 = vadd.f32 %v797_v9, %v796_v7 }
 0x269   :  { %800 = vst.msk [vmem:[#allocation5 + $0x8] sm:$0xff] %vm201_vm2, %v798_v10  ;;  %4971 = vmatmul.mubr.msk.f32.vlgmr.msra.gmra.mxu0 %vm201_vm2, %v798_v10  ;;  %4982 = vmatmul.mubr.msk.f32.vlgmr.msra.gmra.mxu1 %vm201_vm2, %v798_v10 }
 0x26a   :  { %4985 = vmatpush3.msra.mxu0 %v5783_v19  ;;  %4992 = vmatprep.mubr.msk.f32.mxu0 %vm5620_vm1, %v5619_v3 }
 0x26b   :  { %4986 = vmatprep.subr.mxu0 %v5619_v3  ;;  %4996 = vmatpush3.msra.mxu1 %v5682_v0 }
 0x26c   :  { %4987 = vmatpush3.msra.mxu0 %v5787_v20  ;;  %4997 = vmatprep.subr.mxu1 %v5619_v3 }
 0x26d   :  { %4988 = vmatprep.subr.mxu0 %v5619_v3  ;;  %4998 = vmatpush3.msra.mxu1 %v5708_v6 }
 0x26e   :  { %4989 = vmatpush3.msra.mxu0 %v5794_v21  ;;  %4999 = vmatprep.subr.mxu1 %v5619_v3 }
 0x26f   :  { %4990 = vmatprep.subr.mxu0 %v5619_v3  ;;  %5000 = vmatpush3.msra.mxu1 %v5690_v2 }
 0x270   :  { %4991 = vmatpush3.msra.mxu0 %v5799_v22  ;;  %5001 = vmatprep.subr.mxu1 %v5619_v3 }
 0x271   :  { %4993 = vmatmul.mubr.msk.f32.vlgmr.msra.gmra.mxu0 %vm201_vm2, %v798_v10  ;;  %5006 = vmatprep.subr.mxu0 %v5619_v3 }
 0x272   :  { %5007 = vmatpush3.msra.mxu0 %v5770_v15  ;;  %5002 = vmatpush3.msra.mxu1 %v5717_v8 }
 0x273   :  { %5008 = vmatprep.subr.mxu0 %v5619_v3  ;;  %5003 = vmatprep.mubr.msk.f32.mxu1 %vm5620_vm1, %v5619_v3 }
 0x274   :  { %5009 = vmatpush3.msra.mxu0 %v5776_v17  ;;  %5014 = vmatprep.mubr.msk.f32.mxu0 %vm5620_vm1, %v5619_v3 }
 0x275   :  { %5010 = vmatprep.subr.mxu0 %v5619_v3  ;;  %5017 = vmatprep.subr.mxu1 %v5619_v3 }
 0x276   :  { %5011 = vmatpush3.msra.mxu0 %v5772_v16 }
 0x277   :  { %5012 = vmatprep.subr.mxu0 %v5619_v3 }
 0x278   :  { %5013 = vmatpush3.msra.mxu0 %v5778_v18 }
 0x279   :  { %5028 = vmatprep.subr.mxu0 %v5619_v3 }
 0x329   :  { %v876_v12 = vpop.f32.mrf.mxu0  ;;  %v953_v13 = vpop.f32.mrf.mxu1 }
 0x32a   :  { %v880_v14 = vadd.f32 %v876_v12, %v802_v11  ;;  %v957_v27 = vadd.f32 %v953_v13, %v804_v26 }
 0x32b   :  { %v4972_v23 = vpop.f32.mrf.mxu0  ;;  %v4983_v24 = vpop.f32.mrf.mxu1 }
 0x32c   :  { %v4542_v25 = vmul.f32 -1.442695, %v880_v14  ;;  %v4544_v30 = vmul.f32 -1.442695, %v957_v27  ;;  %v1286_v23 = vld [vmem:[#allocation2 + $0x20] sm:$0xff] }
 0x32e   :  { %5471 = vpow2.f32 %v4542_v25 }
 0x32f   :  { %5473 = vpow2.f32 %v4544_v30  ;;  %v1288_v30 = vld [vmem:[#allocation3 + $0x20] sm:$0xff] }
 0x331   :  { %v1030_v28 = vpop.f32.mrf.mxu0 }
 0x332   :  { %v1031_v35 = vadd.f32 %v1030_v28, %v5858_v60 }
 0x333   :  { %v4994_v29 = vpop.f32.mrf.mxu0 }
 0x33b   :  { %v5472_v31 = vpop.eup %5471 }
 0x33c   :  { %v884_v32 = vadd.f32 1.0, %v5472_v31  ;;  %v5474_v33 = vpop.eup %5473 }
 0x33d   :  { %v961_v34 = vadd.f32 1.0, %v5474_v33 }
 0x33e   :  { %5475 = vrcp.f32 %v884_v32 }
 0x33f   :  { %5477 = vrcp.f32 %v961_v34 }
 0x34b   :  { %v5476_v36 = vpop.eup %5475 }
 0x34c   :  { %v1034_v37 = vmul.f32 %v5476_v36, %v1031_v35  ;;  %v5478_v40 = vpop.eup %5477 }
 0x34d   :  { %v1037_v41 = vsub.f32 1.0, %v5478_v40  ;;  %v1039_v44 = vmul.f32 %v5478_v40, %v798_v10 }
 0x34e   :  { %v1035_v39 = vadd.f32 %v1034_v37, %v806_v38 }
 0x350   :  { %5479 = vtanh.f32 %v1035_v39 }
 0x35d   :  { %v5480_v42 = vpop.eup %5479 }
 0x35e   :  { %v1038_v43 = vmul.f32 %v5480_v42, %v1037_v41  ;;  %v1290_v42 = vld [vmem:[#allocation4 + $0x20] sm:$0xff] }
 0x360   :  { %v1040_v45 = vadd.f32 %v1039_v44, %v1038_v43 }
 0x362   :  { %1042 = vst.msk [vmem:[#allocation5 + $0x10] sm:$0xff] %vm201_vm2, %v1040_v45  ;;  %5004 = vmatmul.mubr.msk.f32.vlgmr.msra.gmra.mxu1 %vm201_vm2, %v1040_v45  ;;  %5015 = vmatmul.mubr.msk.f32.vlgmr.msra.gmra.mxu0 %vm201_vm2, %v1040_v45 }
 0x363   :  { %5018 = vmatpush3.msra.mxu1 %v5783_v19  ;;  %5025 = vmatprep.mubr.msk.f32.mxu1 %vm5620_vm1, %v5619_v3 }
 0x364   :  { %5019 = vmatprep.subr.mxu1 %v5619_v3  ;;  %5029 = vmatpush3.msra.mxu0 %v5682_v0 }
 0x365   :  { %5020 = vmatpush3.msra.mxu1 %v5787_v20  ;;  %5030 = vmatprep.subr.mxu0 %v5619_v3 }
 0x366   :  { %5021 = vmatprep.subr.mxu1 %v5619_v3  ;;  %5031 = vmatpush3.msra.mxu0 %v5708_v6 }
 0x367   :  { %5022 = vmatpush3.msra.mxu1 %v5794_v21  ;;  %5032 = vmatprep.subr.mxu0 %v5619_v3 }
 0x368   :  { %5023 = vmatprep.subr.mxu1 %v5619_v3  ;;  %5033 = vmatpush3.msra.mxu0 %v5690_v2 }
 0x369   :  { %5024 = vmatpush3.msra.mxu1 %v5799_v22  ;;  %5034 = vmatprep.subr.mxu0 %v5619_v3 }
 0x36a   :  { %5026 = vmatmul.mubr.msk.f32.vlgmr.msra.gmra.mxu1 %vm201_vm2, %v1040_v45  ;;  %5039 = vmatprep.subr.mxu1 %v5619_v3 }
 0x36b   :  { %5040 = vmatpush3.msra.mxu1 %v5770_v15  ;;  %5035 = vmatpush3.msra.mxu0 %v5717_v8 }
 0x36c   :  { %5041 = vmatprep.subr.mxu1 %v5619_v3  ;;  %5036 = vmatprep.mubr.msk.f32.mxu0 %vm5620_vm1, %v5619_v3 }
 0x36d   :  { %5042 = vmatpush3.msra.mxu1 %v5776_v17  ;;  %5047 = vmatprep.mubr.msk.f32.mxu1 %vm5620_vm1, %v5619_v3 }
 0x36e   :  { %5043 = vmatprep.subr.mxu1 %v5619_v3  ;;  %5050 = vmatprep.subr.mxu0 %v5619_v3 }
 0x36f   :  { %5044 = vmatpush3.msra.mxu1 %v5772_v16 }
 0x370   :  { %5045 = vmatprep.subr.mxu1 %v5619_v3 }
 0x371   :  { %5046 = vmatpush3.msra.mxu1 %v5778_v18 }
 0x372   :  { %5061 = vmatprep.subr.mxu1 %v5619_v3 }
 0x422   :  { %v1118_v47 = vpop.f32.mrf.mxu1  ;;  %v1195_v48 = vpop.f32.mrf.mxu0 }
 0x423   :  { %v1122_v49 = vadd.f32 %v1118_v47, %v1044_v46  ;;  %v1199_v54 = vadd.f32 %v1195_v48, %v1046_v53  ;;  %v1530_v53 = vld [vmem:[#allocation3 + $0x28] sm:$0xff] }
 0x424   :  { %v5005_v50 = vpop.f32.mrf.mxu1  ;;  %v5016_v51 = vpop.f32.mrf.mxu0 }
 0x425   :  { %v4547_v52 = vmul.f32 -1.442695, %v1122_v49  ;;  %v4549_v57 = vmul.f32 -1.442695, %v1199_v54 }
 0x427   :  { %5481 = vpow2.f32 %v4547_v52 }
 0x428   :  { %5483 = vpow2.f32 %v4549_v57 }
 0x42a   :  { %v1272_v55 = vpop.f32.mrf.mxu1 }
 0x42b   :  { %v1273_v63 = vadd.f32 %v1272_v55, %v5858_v60 }
 0x42c   :  { %v5027_v56 = vpop.f32.mrf.mxu1 }
 0x434   :  { %v5482_v58 = vpop.eup %5481 }
 0x435   :  { %v1126_v59 = vadd.f32 1.0, %v5482_v58  ;;  %v5484_v61 = vpop.eup %5483 }
 0x436   :  { %v1203_v62 = vadd.f32 1.0, %v5484_v61 }
 0x437   :  { %5485 = vrcp.f32 %v1126_v59 }
 0x438   :  { %5487 = vrcp.f32 %v1203_v62 }
 0x444   :  { %v5486_v1 = vpop.eup %5485 }
 0x445   :  { %v1276_v4 = vmul.f32 %v5486_v1, %v1273_v63  ;;  %v5488_v9 = vpop.eup %5487 }
 0x446   :  { %v1279_v10 = vsub.f32 1.0, %v5488_v9  ;;  %v1281_v13 = vmul.f32 %v5488_v9, %v1040_v45 }
 0x447   :  { %v1277_v7 = vadd.f32 %v1276_v4, %v1048_v5  ;;  %v1532_v5 = vld [vmem:[#allocation4 + $0x28] sm:$0xff] }
 0x449   :  { %5489 = vtanh.f32 %v1277_v7 }
 0x456   :  { %v5490_v11 = vpop.eup %5489 }
 0x457   :  { %v1280_v12 = vmul.f32 %v5490_v11, %v1279_v10 }
 0x459   :  { %v1282_v14 = vadd.f32 %v1281_v13, %v1280_v12 }
 0x45b   :  { %1284 = vst.msk [vmem:[#allocation5 + $0x18] sm:$0xff] %vm201_vm2, %v1282_v14  ;;  %5037 = vmatmul.mubr.msk.f32.vlgmr.msra.gmra.mxu0 %vm201_vm2, %v1282_v14  ;;  %5048 = vmatmul.mubr.msk.f32.vlgmr.msra.gmra.mxu1 %vm201_vm2, %v1282_v14 }
 0x45c   :  { %5051 = vmatpush3.msra.mxu0 %v5783_v19  ;;  %5058 = vmatprep.mubr.msk.f32.mxu0 %vm5620_vm1, %v5619_v3 }
 0x45d   :  { %5052 = vmatprep.subr.mxu0 %v5619_v3  ;;  %5062 = vmatpush3.msra.mxu1 %v5682_v0 }
 0x45e   :  { %5053 = vmatpush3.msra.mxu0 %v5787_v20  ;;  %5063 = vmatprep.subr.mxu1 %v5619_v3 }
 0x45f   :  { %5054 = vmatprep.subr.mxu0 %v5619_v3  ;;  %5064 = vmatpush3.msra.mxu1 %v5708_v6 }
 0x460   :  { %5055 = vmatpush3.msra.mxu0 %v5794_v21  ;;  %5065 = vmatprep.subr.mxu1 %v5619_v3 }
 0x461   :  { %5056 = vmatprep.subr.mxu0 %v5619_v3  ;;  %5066 = vmatpush3.msra.mxu1 %v5690_v2 }
 0x462   :  { %5057 = vmatpush3.msra.mxu0 %v5799_v22  ;;  %5067 = vmatprep.subr.mxu1 %v5619_v3 }
 0x463   :  { %5059 = vmatmul.mubr.msk.f32.vlgmr.msra.gmra.mxu0 %vm201_vm2, %v1282_v14  ;;  %5072 = vmatprep.subr.mxu0 %v5619_v3 }
 0x464   :  { %5073 = vmatpush3.msra.mxu0 %v5770_v15  ;;  %5068 = vmatpush3.msra.mxu1 %v5717_v8 }
 0x465   :  { %5074 = vmatprep.subr.mxu0 %v5619_v3  ;;  %5069 = vmatprep.mubr.msk.f32.mxu1 %vm5620_vm1, %v5619_v3 }
 0x466   :  { %5075 = vmatpush3.msra.mxu0 %v5776_v17  ;;  %5080 = vmatprep.mubr.msk.f32.mxu0 %vm5620_vm1, %v5619_v3 }
 0x467   :  { %5076 = vmatprep.subr.mxu0 %v5619_v3  ;;  %5083 = vmatprep.subr.mxu1 %v5619_v3 }
 0x468   :  { %5077 = vmatpush3.msra.mxu0 %v5772_v16 }
 0x469   :  { %5078 = vmatprep.subr.mxu0 %v5619_v3 }
 0x46a   :  { %5079 = vmatpush3.msra.mxu0 %v5778_v18 }
 0x46b   :  { %5094 = vmatprep.subr.mxu0 %v5619_v3 }
 0x51b   :  { %v1360_v24 = vpop.f32.mrf.mxu0  ;;  %v1437_v25 = vpop.f32.mrf.mxu1 }
 0x51c   :  { %v1364_v26 = vadd.f32 %v1360_v24, %v1286_v23  ;;  %v1441_v31 = vadd.f32 %v1437_v25, %v1288_v30  ;;  %v5611_v23 = vld [vmem:[%s6676_s3 + $0x18] sm:$0xff]  ;;  %v5612_v24 = vld [vmem:[%s6676_s3 + $0x10] sm:$0xff]  ;;  %v5613_v25 = vld [vmem:[%s6676_s3 + $0x8] sm:$0xff] }
 0x51d   :  { %v5038_v27 = vpop.f32.mrf.mxu0  ;;  %v5049_v28 = vpop.f32.mrf.mxu1 }
 0x51e   :  { %v4552_v29 = vmul.f32 -1.442695, %v1364_v26  ;;  %v4554_v34 = vmul.f32 -1.442695, %v1441_v31  ;;  %v5614_v26 = vld [vmem:[%s6676_s3] sm:$0xff]  ;;  %v1770_v28 = vld [vmem:[#allocation2 + $0x30] sm:$0xff] }
 0x51f   :  { %v6121_v27 = vld [vmem:[%s6682_s7] sm:$0xff] }
 0x520   :  { %5491 = vpow2.f32 %v4552_v29 }
 0x521   :  { %5493 = vpow2.f32 %v4554_v34 }
 0x523   :  { %v1514_v32 = vpop.f32.mrf.mxu0 }
 0x524   :  { %v1515_v39 = vadd.f32 %v1514_v32, %v5858_v60 }
 0x525   :  { %v5060_v33 = vpop.f32.mrf.mxu0 }
 0x52d   :  { %v5492_v35 = vpop.eup %5491 }
 0x52e   :  { %v1368_v36 = vadd.f32 1.0, %v5492_v35  ;;  %v5494_v37 = vpop.eup %5493  ;;  %v1772_v35 = vld [vmem:[#allocation3 + $0x30] sm:$0xff] }
 0x52f   :  { %v1445_v38 = vadd.f32 1.0, %v5494_v37 }
 0x530   :  { %5495 = vrcp.f32 %v1368_v36 }
 0x531   :  { %5497 = vrcp.f32 %v1445_v38 }
 0x53d   :  { %v5496_v40 = vpop.eup %5495 }
 0x53e   :  { %v1518_v41 = vmul.f32 %v5496_v40, %v1515_v39  ;;  %v5498_v44 = vpop.eup %5497 }
 0x53f   :  { %v1521_v45 = vsub.f32 1.0, %v5498_v44  ;;  %v1523_v48 = vmul.f32 %v5498_v44, %v1282_v14 }
 0x540   :  { %v1519_v43 = vadd.f32 %v1518_v41, %v1290_v42 }
 0x542   :  { %5499 = vtanh.f32 %v1519_v43 }
 0x54f   :  { %v5500_v46 = vpop.eup %5499 }
 0x550   :  { %v1522_v47 = vmul.f32 %v5500_v46, %v1521_v45 }
 0x552   :  { %v1524_v49 = vadd.f32 %v1523_v48, %v1522_v47  ;;  %v1774_v47 = vld [vmem:[#allocation4 + $0x30] sm:$0xff] }
 0x554   :  { %1526 = vst.msk [vmem:[#allocation5 + $0x20] sm:$0xff] %vm201_vm2, %v1524_v49  ;;  %5070 = vmatmul.mubr.msk.f32.vlgmr.msra.gmra.mxu1 %vm201_vm2, %v1524_v49  ;;  %5081 = vmatmul.mubr.msk.f32.vlgmr.msra.gmra.mxu0 %vm201_vm2, %v1524_v49 }
 0x555   :  { %5084 = vmatpush3.msra.mxu1 %v5783_v19  ;;  %5091 = vmatprep.mubr.msk.f32.mxu1 %vm5620_vm1, %v5619_v3 }
 0x556   :  { %5085 = vmatprep.subr.mxu1 %v5619_v3  ;;  %5095 = vmatpush3.msra.mxu0 %v5682_v0  ;;  %v1528_v0 = vld [vmem:[#allocation2 + $0x28] sm:$0xff] }
 0x557   :  { %5086 = vmatpush3.msra.mxu1 %v5787_v20  ;;  %5096 = vmatprep.subr.mxu0 %v5619_v3 }
 0x558   :  { %5087 = vmatprep.subr.mxu1 %v5619_v3  ;;  %5097 = vmatpush3.msra.mxu0 %v5708_v6 }
 0x559   :  { %5088 = vmatpush3.msra.mxu1 %v5794_v21  ;;  %5098 = vmatprep.subr.mxu0 %v5619_v3 }
 0x55a   :  { %5089 = vmatprep.subr.mxu1 %v5619_v3  ;;  %5099 = vmatpush3.msra.mxu0 %v5690_v2 }
 0x55b   :  { %5090 = vmatpush3.msra.mxu1 %v5799_v22  ;;  %5100 = vmatprep.subr.mxu0 %v5619_v3 }
 0x55c   :  { %5092 = vmatmul.mubr.msk.f32.vlgmr.msra.gmra.mxu1 %vm201_vm2, %v1524_v49  ;;  %5105 = vmatprep.subr.mxu1 %v5619_v3 }
 0x55d   :  { %5106 = vmatpush3.msra.mxu1 %v5770_v15  ;;  %5101 = vmatpush3.msra.mxu0 %v5717_v8 }
 0x55e   :  { %5107 = vmatprep.subr.mxu1 %v5619_v3  ;;  %5102 = vmatprep.mubr.msk.f32.mxu0 %vm5620_vm1, %v5619_v3 }
 0x55f   :  { %5108 = vmatpush3.msra.mxu1 %v5776_v17  ;;  %5113 = vmatprep.mubr.msk.f32.mxu1 %vm5620_vm1, %v5619_v3 }
 0x560   :  { %5109 = vmatprep.subr.mxu1 %v5619_v3  ;;  %5116 = vmatprep.subr.mxu0 %v5619_v3 }
 0x561   :  { %5110 = vmatpush3.msra.mxu1 %v5772_v16 }
 0x562   :  { %5111 = vmatprep.subr.mxu1 %v5619_v3 }
 0x563   :  { %5112 = vmatpush3.msra.mxu1 %v5778_v18 }
 0x564   :  { %5127 = vmatprep.subr.mxu1 %v5619_v3 }
 0x614   :  { %v1602_v2 = vpop.f32.mrf.mxu1  ;;  %v1679_v6 = vpop.f32.mrf.mxu0 }
 0x615   :  { %v1606_v8 = vadd.f32 %v1602_v2, %v1528_v0  ;;  %v1683_v54 = vadd.f32 %v1679_v6, %v1530_v53  ;;  %v2254_v53 = vld [vmem:[%s6681_s6 + $0x8] sm:$0xff] }
 0x616   :  { %v5071_v50 = vpop.f32.mrf.mxu1  ;;  %v5082_v51 = vpop.f32.mrf.mxu0 }
 0x617   :  { %v4557_v52 = vmul.f32 -1.442695, %v1606_v8  ;;  %v4559_v57 = vmul.f32 -1.442695, %v1683_v54  ;;  %v2255_v51 = vld [vmem:[%s6681_s6 + $0x10] sm:$0xff] }
 0x618   :  { %v2265_v54 = vld [vmem:[#allocation5 + $0x10] sm:$0xff] }
 0x619   :  { %5501 = vpow2.f32 %v4557_v52  ;;  %v2263_v52 = vld [vmem:[#allocation5] sm:$0xff] }
 0x61a   :  { %5503 = vpow2.f32 %v4559_v57 }
 0x61c   :  { %v1756_v55 = vpop.f32.mrf.mxu1 }
 0x61d   :  { %v1757_v63 = vadd.f32 %v1756_v55, %v5858_v60 }
 0x61e   :  { %v5093_v56 = vpop.f32.mrf.mxu1 }
 0x626   :  { %v5502_v58 = vpop.eup %5501 }
 0x627   :  { %v1610_v59 = vadd.f32 1.0, %v5502_v58  ;;  %v5504_v61 = vpop.eup %5503 }
 0x628   :  { %v1687_v62 = vadd.f32 1.0, %v5504_v61 }
 0x629   :  { %5505 = vrcp.f32 %v1610_v59 }
 0x62a   :  { %5507 = vrcp.f32 %v1687_v62 }
 0x636   :  { %v5506_v1 = vpop.eup %5505 }
 0x637   :  { %v1760_v4 = vmul.f32 %v5506_v1, %v1757_v63  ;;  %v5508_v9 = vpop.eup %5507 }
 0x638   :  { %v1763_v10 = vsub.f32 1.0, %v5508_v9  ;;  %v1765_v13 = vmul.f32 %v5508_v9, %v1524_v49 }
 0x639   :  { %v1761_v7 = vadd.f32 %v1760_v4, %v1532_v5  ;;  %v2012_v5 = vld [vmem:[#allocation2 + $0x38] sm:$0xff] }
 0x63b   :  { %5509 = vtanh.f32 %v1761_v7 }
 0x648   :  { %v5510_v11 = vpop.eup %5509 }
 0x649   :  { %v1764_v12 = vmul.f32 %v5510_v11, %v1763_v10 }
 0x64b   :  { %v6049_v14 = vadd.f32 %v1765_v13, %v1764_v12 }
 0x64d   :  { %1768 = vst.msk [vmem:[#allocation5 + $0x28] sm:$0xff] %vm201_vm2, %v6049_v14  ;;  %5103 = vmatmul.mubr.msk.f32.vlgmr.msra.gmra.mxu0 %vm201_vm2, %v6049_v14  ;;  %5114 = vmatmul.mubr.msk.f32.vlgmr.msra.gmra.mxu1 %vm201_vm2, %v6049_v14 }
 0x64e   :  { %5117 = vmatpush3.msra.mxu0 %v5783_v19  ;;  %5124 = vmatprep.mubr.msk.f32.mxu0 %vm5620_vm1, %v5619_v3 }
 0x64f   :  { %5118 = vmatprep.subr.mxu0 %v5619_v3  ;;  %5128 = vmatpush3.msra.mxu1 %v5611_v23 }
 0x650   :  { %5119 = vmatpush3.msra.mxu0 %v5787_v20  ;;  %5129 = vmatprep.subr.mxu1 %v5619_v3 }
 0x651   :  { %5120 = vmatprep.subr.mxu0 %v5619_v3  ;;  %5130 = vmatpush3.msra.mxu1 %v5612_v24  ;;  %v6233_v24 = vld [vmem:[%s6683_s8] ss:$0 sm:$0xff] }
 0x652   :  { %5121 = vmatpush3.msra.mxu0 %v5794_v21  ;;  %5131 = vmatprep.subr.mxu1 %v5619_v3 }
 0x653   :  { %5122 = vmatprep.subr.mxu0 %v5619_v3  ;;  %5132 = vmatpush3.msra.mxu1 %v5613_v25 }
 0x654   :  { %5123 = vmatpush3.msra.mxu0 %v5799_v22  ;;  %5133 = vmatprep.subr.mxu1 %v5619_v3  ;;  %v2268_v56 = vld [vmem:[#allocation5 + $0x28] sm:$0xff] }
 0x655   :  { %5125 = vmatmul.mubr.msk.f32.vlgmr.msra.gmra.mxu0 %vm201_vm2, %v6049_v14  ;;  %5138 = vmatprep.subr.mxu0 %v5619_v3 }
 0x656   :  { %5139 = vmatpush3.msra.mxu0 %v5770_v15  ;;  %5134 = vmatpush3.msra.mxu1 %v5614_v26  ;;  %v2256_v15 = vld [vmem:[%s6681_s6 + $0x18] sm:$0xff]  ;;  %v6238_v26 = vld [vmem:[%s6684_s9] ss:$0 sm:$0xff] }
 0x657   :  { %5140 = vmatprep.subr.mxu0 %v5619_v3  ;;  %5135 = vmatprep.mubr.msk.f32.mxu1 %vm5620_vm1, %v5619_v3 }
 0x658   :  { %5141 = vmatpush3.msra.mxu0 %v5776_v17  ;;  %5146 = vmatprep.mubr.msk.f32.mxu0 %vm5620_vm1, %v5619_v3  ;;  %v6102_v17 = vld [vmem:[%s6682_s7 + $0x18] sm:$0xff] }
 0x659   :  { %5142 = vmatprep.subr.mxu0 %v5619_v3  ;;  %5149 = vmatprep.subr.mxu1 %v5619_v3 }
 0x65a   :  { %5143 = vmatpush3.msra.mxu0 %v5772_v16  ;;  %2598 = vrot.lane.b32.xlu1 %v6102_v17, %s5621_s19  ;;  %v6109_v16 = vld [vmem:[%s6682_s7 + $0x10] sm:$0xff] }
 0x65b   :  { %5144 = vmatprep.subr.mxu0 %v5619_v3  ;;  %2596 = vrot.lane.b32.xlu0 %v6109_v16, %s5621_s19 }
 0x65c   :  { %5145 = vmatpush3.msra.mxu0 %v5778_v18  ;;  %v6116_v18 = vld [vmem:[%s6682_s7 + $0x8] sm:$0xff] }
 0x65d   :  { %5160 = vmatprep.subr.mxu0 %v2256_v15 }
 0x65e   :  { %2594 = vrot.lane.b32.xlu1 %v6116_v18, %s5621_s19 }
 0x65f   :  { %2592 = vrot.lane.b32.xlu0 %v6121_v27, %s5621_s19 }
 0x662   :  { %2687 = vrot.lane.b32.xlu1 %v6102_v17, %s5622_s13 }
 0x663   :  { %2685 = vrot.lane.b32.xlu0 %v6109_v16, %s5622_s13 }
 0x666   :  { %2683 = vrot.lane.b32.xlu1 %v6116_v18, %s5622_s13 }
 0x667   :  { %2681 = vrot.lane.b32.xlu0 %v6121_v27, %s5622_s13 }
 0x6cc   :  { %v6179_v55 = vpop.permute.xlu1 %2598 }
 0x6cd   :  { %v6184_v58 = vpop.permute.xlu0 %2596 }
 0x6d0   :  { %v6193_v59 = vpop.permute.xlu1 %2594 }
 0x6d1   :  { %v6197_v61 = vpop.permute.xlu0 %2592 }
 0x6d4   :  { %v6214_v62 = vpop.permute.xlu1 %2687 }
 0x6d5   :  { %v6216_v63 = vpop.permute.xlu0 %2685 }
 0x6d8   :  { %v6221_v1 = vpop.permute.xlu1 %2683 }
 0x6d9   :  { %v6224_v4 = vpop.permute.xlu0 %2681 }
 0x70d   :  { %v1844_v29 = vpop.f32.mrf.mxu0  ;;  %v1921_v30 = vpop.f32.mrf.mxu1 }
 0x70e   :  { %v1848_v31 = vadd.f32 %v1844_v29, %v1770_v28  ;;  %v1925_v36 = vadd.f32 %v1921_v30, %v1772_v35 }
 0x70f   :  { %v5104_v32 = vpop.f32.mrf.mxu0  ;;  %v5115_v33 = vpop.f32.mrf.mxu1 }
 0x710   :  { %v4562_v34 = vmul.f32 -1.442695, %v1848_v31  ;;  %v4564_v39 = vmul.f32 -1.442695, %v1925_v36 }
 0x712   :  { %5511 = vpow2.f32 %v4562_v34 }
 0x713   :  { %5513 = vpow2.f32 %v4564_v39 }
 0x715   :  { %v1998_v37 = vpop.f32.mrf.mxu0 }
 0x716   :  { %v1999_v44 = vadd.f32 %v1998_v37, %v5858_v60 }
 0x717   :  { %v5126_v38 = vpop.f32.mrf.mxu0 }
 0x71f   :  { %v5512_v40 = vpop.eup %5511 }
 0x720   :  { %v1852_v41 = vadd.f32 1.0, %v5512_v40  ;;  %v5514_v42 = vpop.eup %5513 }
 0x721   :  { %v1929_v43 = vadd.f32 1.0, %v5514_v42 }
 0x722   :  { %5515 = vrcp.f32 %v1852_v41 }
 0x723   :  { %5517 = vrcp.f32 %v1929_v43 }
 0x72f   :  { %v5516_v45 = vpop.eup %5515 }
 0x730   :  { %v2002_v46 = vmul.f32 %v5516_v45, %v1999_v44  ;;  %v5518_v49 = vpop.eup %5517 }
 0x731   :  { %v2005_v0 = vsub.f32 1.0, %v5518_v49  ;;  %v2007_v8 = vmul.f32 %v5518_v49, %v6049_v14  ;;  %v2014_v14 = vld [vmem:[#allocation3 + $0x38] sm:$0xff] }
 0x732   :  { %v2003_v48 = vadd.f32 %v2002_v46, %v1774_v47 }
 0x734   :  { %5519 = vtanh.f32 %v2003_v48 }
 0x741   :  { %v5520_v2 = vpop.eup %5519 }
 0x742   :  { %v2006_v6 = vmul.f32 %v5520_v2, %v2005_v0 }
 0x744   :  { %v6137_v50 = vadd.f32 %v2007_v8, %v2006_v6 }
 0x746   :  { %2010 = vst.msk [vmem:[#allocation5 + $0x30] sm:$0xff] %vm201_vm2, %v6137_v50  ;;  %5136 = vmatmul.mubr.msk.f32.vlgmr.msra.gmra.mxu1 %vm201_vm2, %v6137_v50  ;;  %5147 = vmatmul.mubr.msk.f32.vlgmr.msra.gmra.mxu0 %vm201_vm2, %v6137_v50 }
 0x747   :  { %5150 = vmatpush3.msra.mxu1 %v5783_v19  ;;  %5161 = vmatpush3.msra.mxu0 %v2256_v15  ;;  %v2253_v19 = vld [vmem:[%s6681_s6] sm:$0xff] }
 0x748   :  { %5151 = vmatprep.subr.mxu1 %v5619_v3  ;;  %5162 = vmatprep.subr.mxu0 %v2255_v51 }
 0x749   :  { %5168 = vmatprep.mubr.msk.f32.mxu0 %vm201_vm2, %v2263_v52  ;;  %5152 = vmatpush3.msra.mxu1 %v5787_v20  ;;  %v2264_v20 = vld [vmem:[#allocation5 + $0x8] sm:$0xff] }
 0x74a   :  { %5163 = vmatpush3.msra.mxu0 %v2255_v51  ;;  %5153 = vmatprep.subr.mxu1 %v5619_v3 }
 0x74b   :  { %5164 = vmatprep.subr.mxu0 %v2254_v53  ;;  %5154 = vmatpush3.msra.mxu1 %v5794_v21  ;;  %v2266_v21 = vld [vmem:[#allocation5 + $0x18] sm:$0xff] }
 0x74c   :  { %5165 = vmatpush3.msra.mxu0 %v2254_v53  ;;  %5155 = vmatprep.subr.mxu1 %v5619_v3 }
 0x74d   :  { %5166 = vmatprep.subr.mxu0 %v2253_v19  ;;  %5156 = vmatpush3.msra.mxu1 %v5799_v22  ;;  %v2267_v22 = vld [vmem:[#allocation5 + $0x20] sm:$0xff]  ;;  %v2269_v57 = vld [vmem:[#allocation5 + $0x30] sm:$0xff] }
 0x74e   :  { %5157 = vmatprep.mubr.msk.f32.mxu1 %vm5620_vm1, %v5619_v3  ;;  %5167 = vmatpush3.msra.mxu0 %v2253_v19 }
 0x74f   :  { %5158 = vmatmul.mubr.msk.f32.vlgmr.msra.gmra.mxu1 %vm201_vm2, %v6137_v50  ;;  %5169 = vmatmul.mubr.msk.f32.vlgmr.msra.gmra.mxu0 %vm201_vm2, %v2264_v20  ;;  %v2016_v20 = vld [vmem:[#allocation4 + $0x38] sm:$0xff] }
 0x750   :  { %5171 = vmatprep.mubr.msk.f32.mxu0 %vm201_vm2, %v2265_v54  ;;  %5180 = vmatprep.subr.mxu1 %v5619_v3 }
 0x751   :  { %5181 = vmatpush3.msra.mxu1 %v6102_v17  ;;  %5188 = vmatprep.mubr.msk.f32.mxu1 %vm5620_vm1, %v5619_v3 }
 0x752   :  { %5182 = vmatprep.subr.mxu1 %v5619_v3  ;;  %5202 = vmatprep.subr.mxu0 %v5619_v3 }
 0x753   :  { %5172 = vmatmul.mubr.msk.f32.gmra.mxu0 %vm201_vm2, %v2266_v21  ;;  %5183 = vmatpush3.msra.mxu1 %v6109_v16 }
 0x754   :  { %5174 = vmatprep.mubr.msk.f32.mxu0 %vm201_vm2, %v2267_v22  ;;  %5184 = vmatprep.subr.mxu1 %v5619_v3 }
 0x755   :  { %5185 = vmatpush3.msra.mxu1 %v6116_v18  ;;  %5203 = vmatpush3.msra.mxu0 %v6214_v62 }
 0x756   :  { %5186 = vmatprep.subr.mxu1 %v5619_v3  ;;  %5204 = vmatprep.subr.mxu0 %v5619_v3 }
 0x757   :  { %5175 = vmatmul.mubr.msk.f32.gmra.mxu0 %vm201_vm2, %v2268_v56  ;;  %5187 = vmatpush3.msra.mxu1 %v6121_v27 }
 0x758   :  { %5177 = vmatprep.mubr.msk.f32.mxu0 %vm201_vm2, %v2269_v57  ;;  %5189 = vmatmul.mubr.f32.vlgmr.msra.gmra.mxu1 %v5619_v3 }
 0x759   :  { %5191 = vmatprep.subr.mxu1 %v5619_v3  ;;  %5199 = vmatprep.mubr.msk.f32.mxu1 %vm5620_vm1, %v5619_v3 }
 0x75a   :  { %5192 = vmatpush3.msra.mxu1 %v6179_v55  ;;  %5205 = vmatpush3.msra.mxu0 %v6216_v63 }
 0x75b   :  { %5193 = vmatprep.subr.mxu1 %v5619_v3  ;;  %5206 = vmatprep.subr.mxu0 %v5619_v3 }
 0x75c   :  { %5194 = vmatpush3.msra.mxu1 %v6184_v58  ;;  %5207 = vmatpush3.msra.mxu0 %v6221_v1 }
 0x75d   :  { %5195 = vmatprep.subr.mxu1 %v5619_v3  ;;  %5208 = vmatprep.subr.mxu0 %v5619_v3 }
 0x75e   :  { %5196 = vmatpush3.msra.mxu1 %v6193_v59  ;;  %5209 = vmatpush3.msra.mxu0 %v6224_v4 }
 0x75f   :  { %5197 = vmatprep.subr.mxu1 %v5619_v3  ;;  %5224 = vmatprep.subr.mxu0 %v5619_v3 }
 0x760   :  { %5198 = vmatpush3.msra.mxu1 %v6197_v61 }
 0x761   :  { %5200 = vmatmul.mubr.f32.vlgmr.msra.gmra.mxu1 %v5619_v3  ;;  %5213 = vmatprep.subr.mxu1 %v5619_v3 }
 0x762   :  { %5214 = vmatpush3.msra.mxu1 %v6102_v17  ;;  %5221 = vmatprep.mubr.msk.f32.mxu1 %vm5620_vm1, %v5619_v3 }
 0x763   :  { %5215 = vmatprep.subr.mxu1 %v5619_v3 }
 0x764   :  { %5216 = vmatpush3.msra.mxu1 %v6109_v16 }
 0x765   :  { %5217 = vmatprep.subr.mxu1 %v5619_v3 }
 0x766   :  { %5218 = vmatpush3.msra.mxu1 %v6116_v18 }
 0x767   :  { %5219 = vmatprep.subr.mxu1 %v5619_v3 }
 0x768   :  { %5220 = vmatpush3.msra.mxu1 %v6121_v27 }
 0x769   :  { %5235 = vmatprep.subr.mxu1 %v5619_v3 }
 0x806   :  { %v2086_v7 = vpop.f32.mrf.mxu1  ;;  %v2163_v9 = vpop.f32.mrf.mxu0 }
 0x807   :  { %v2090_v10 = vadd.f32 %v2086_v7, %v2012_v5  ;;  %v2167_v23 = vadd.f32 %v2163_v9, %v2014_v14 }
 0x808   :  { %v5137_v11 = vpop.f32.mrf.mxu1  ;;  %v5148_v12 = vpop.f32.mrf.mxu0 }
 0x809   :  { %v4567_v13 = vmul.f32 -1.442695, %v2090_v10  ;;  %v4569_v29 = vmul.f32 -1.442695, %v2167_v23  ;;  %v5623_v23 = vmov 0  }
 0x80a   :  { %5449 = vset.pattern.permute.xlu0 %v5623_v23  ;;  %5450 = vset.pattern.permute.xlu1 %v5623_v23 }
 0x80b   :  { %5521 = vpow2.f32 %v4567_v13 }
 0x80c   :  { %5523 = vpow2.f32 %v4569_v29 }
 0x80f   :  { %v2240_v25 = vpop.f32.mrf.mxu1  ;;  %v5170_v15 = vpop.f32.mrf.mxu0 }
 0x810   :  { %v2373_v28 = vadd.f32 %v5170_v15, %v6233_v24  ;;  %v2241_v52 = vadd.f32 %v2240_v25, %v5858_v60 }
 0x811   :  { %v5159_v30 = vpop.f32.mrf.mxu1  ;;  %v2367_v31 = vpop.f32.mrf.mxu0 }
 0x812   :  { %v2413_v32 = vadd.f32 %v6238_v26, %v2373_v28  ;;  %v2368_v33 = vadd.f32 %v6233_v24, %v2367_v31 }
 0x813   :  { %v5173_v34 = vpop.f32.mrf.mxu0 }
 0x814   :  { %2421 = vst.msk [vmem:[#allocation2 + $0x8] sm:$0xff] %vm201_vm2, %v2413_v32  ;;  %v2412_v35 = vadd.f32 %v6238_v26, %v2368_v33  ;;  %v2383_v36 = vadd.f32 %v5173_v34, %v6233_v24  ;;  %2476 = vrot.lane.b32.xlu0 %v2368_v33, %s5622_s13 }
 0x815   :  { %v2377_v37 = vpop.f32.mrf.mxu0 }
 0x816   :  { %2420 = vst.msk [vmem:[#allocation2] sm:$0xff] %vm201_vm2, %v2412_v35  ;;  %v2415_v38 = vadd.f32 %v6238_v26, %v2383_v36  ;;  %v2378_v39 = vadd.f32 %v6233_v24, %v2377_v37  ;;  %2436 = vrot.lane.b32.xlu1 %v2412_v35, %s5621_s19 }
 0x817   :  { %v5176_v40 = vpop.f32.mrf.mxu0 }
 0x818   :  { %v5522_v41 = vpop.eup %5521  ;;  %2423 = vst.msk [vmem:[#allocation2 + $0x18] sm:$0xff] %vm201_vm2, %v2415_v38  ;;  %v2414_v42 = vadd.f32 %v6238_v26, %v2378_v39  ;;  %v2393_v43 = vadd.f32 %v5176_v40, %v6233_v24  ;;  %2438 = vrot.lane.b32.xlu0 %v2413_v32, %s5621_s19  ;;  %v6255_v44 = vpop.f32.mrf.mxu1 }
 0x819   :  { %v2094_v45 = vadd.f32 1.0, %v5522_v41  ;;  %v2387_v46 = vpop.f32.mrf.mxu0  ;;  %v5524_v6 = vpop.eup %5523 }
 0x81a   :  { %2422 = vst.msk [vmem:[#allocation2 + $0x10] sm:$0xff] %vm201_vm2, %v2414_v42  ;;  %v2417_v47 = vadd.f32 %v6238_v26, %v2393_v43  ;;  %v2388_v48 = vadd.f32 %v6233_v24, %v2387_v46  ;;  %2693 = vrot.lane.b32.xlu1 %v6238_v26, %s5622_s13  ;;  %v5190_v49 = vpop.f32.mrf.mxu1  ;;  %v2171_v51 = vadd.f32 1.0, %v5524_v6  ;;  %v4440_v6 = vld [vmem:[%s6685_s1] sm:$0xff] }
 0x81b   :  { %5525 = vrcp.f32 %v2094_v45  ;;  %vm4448_vm3 = vcmp.ne.s32.totalorder %v4440_v6, 0 }
 0x81c   :  { %2425 = vst.msk [vmem:[#allocation2 + $0x28] sm:$0xff] %vm201_vm2, %v2417_v47  ;;  %v2416_v0 = vadd.f32 %v6238_v26, %v2388_v48  ;;  %2440 = vrot.lane.b32.xlu0 %v2414_v42, %s5621_s19  ;;  %5527 = vrcp.f32 %v2171_v51 }
 0x81d   :  { %v2508_v32 = vld [vmem:[#allocation2] sm:$0xff] }
 0x81e   :  { %2424 = vst.msk [vmem:[#allocation2 + $0x20] sm:$0xff] %vm201_vm2, %v2416_v0  ;;  %2478 = vrot.lane.b32.xlu1 %v2373_v28, %s5622_s13  ;;  %v2581_v33 = vadd.f32 %v6255_v44, %v2508_v32 }
 0x820   :  { %2442 = vrot.lane.b32.xlu0 %v2415_v38, %s5621_s19  ;;  %v4581_v34 = vmul.f32 -1.442695, %v2581_v33 }
 0x821   :  { %v6268_v2 = vpop.f32.mrf.mxu1 }
 0x822   :  { %2480 = vrot.lane.b32.xlu1 %v2378_v39, %s5622_s13 }
 0x823   :  { %v5201_v8 = vpop.f32.mrf.mxu1 }
 0x824   :  { %2444 = vrot.lane.b32.xlu0 %v2416_v0, %s5621_s19 }
 0x826   :  { %2482 = vrot.lane.b32.xlu1 %v2383_v36, %s5622_s13 }
 0x828   :  { %v5526_v53 = vpop.eup %5525  ;;  %2446 = vrot.lane.b32.xlu0 %v2417_v47, %s5621_s19 }
 0x829   :  { %v2244_v19 = vmul.f32 %v5526_v53, %v2241_v52  ;;  %v5528_v21 = vpop.eup %5527  ;;  %v4441_v52 = vld [vmem:[%s6685_s1 + $0x8] sm:$0xff] }
 0x82a   :  { %2484 = vrot.lane.b32.xlu1 %v2388_v48, %s5622_s13  ;;  %v2247_v22 = vsub.f32 1.0, %v5528_v21  ;;  %v2249_v57 = vmul.f32 %v5528_v21, %v6137_v50  ;;  %vm4449_vm4 = vcmp.ne.s32.totalorder %v4441_v52, 0  ;;  %v3012_v52 = vld [vmem:[#allocation2 + $0x10] sm:$0xff] }
 0x82b   :  { %v2245_v54 = vadd.f32 %v2244_v19, %v2016_v20  ;;  %v4465_v53 = vsel %vm4449_vm4, 1, %v5623_v23 }
 0x82d   :  { %5529 = vtanh.f32 %v2245_v54 }
 0x82e   :  { %2486 = vrot.lane.b32.xlu1 %v2393_v43, %s5622_s13  ;;  %5531 = vpow2.f32 %v4581_v34 }
 0x83a   :  { %v5530_v56 = vpop.eup %5529 }
 0x83b   :  { %v2248_v5 = vmul.f32 %v5530_v56, %v2247_v22  ;;  %v5532_v38 = vpop.eup %5531 }
 0x83c   :  { %v2585_v39 = vadd.f32 1.0, %v5532_v38 }
 0x83d   :  { %v2250_v7 = vadd.f32 %v2249_v57, %v2248_v5 }
 0x83f   :  { %2252 = vst.msk [vmem:[#allocation5 + $0x38] sm:$0xff] %vm201_vm2, %v2250_v7 }
 0x846   :  { %v2270_v60 = vld [vmem:[#allocation5 + $0x38] sm:$0xff] }
 0x847   :  { %5178 = vmatmul.mubr.msk.f32.gmra.mxu0 %vm201_vm2, %v2270_v60 }
 0x848   :  { %5210 = vmatprep.mubr.msk.f32.mxu0 %vm5620_vm1, %v5619_v3 }
 0x84b   :  { %5211 = vmatmul.mubr.f32.vlgmr.msra.gmra.mxu0 %v5619_v3 }
 0x84c   :  { %5225 = vmatpush3.msra.mxu0 %v6179_v55  ;;  %5232 = vmatprep.mubr.msk.f32.mxu0 %vm5620_vm1, %v5619_v3 }
 0x84d   :  { %5226 = vmatprep.subr.mxu0 %v5619_v3 }
 0x84e   :  { %5227 = vmatpush3.msra.mxu0 %v6184_v58 }
 0x84f   :  { %5228 = vmatprep.subr.mxu0 %v5619_v3 }
 0x850   :  { %5229 = vmatpush3.msra.mxu0 %v6193_v59 }
 0x851   :  { %5230 = vmatprep.subr.mxu0 %v5619_v3 }
 0x852   :  { %5231 = vmatpush3.msra.mxu0 %v6197_v61 }
 0x853   :  { %5246 = vmatprep.subr.mxu0 %v5619_v3 }
 0x886   :  { %v2477_v50 = vpop.permute.xlu0 %2476 }
 0x887   :  { %2500 = vst.msk [vmem:[#allocation4] sm:$0xff] %vm201_vm2, %v2477_v50 }
 0x888   :  { %v2437_v9 = vpop.permute.xlu1 %2436 }
 0x889   :  { %2460 = vst.msk [vmem:[#allocation3] sm:$0xff] %vm201_vm2, %v2437_v9 }
 0x88a   :  { %v2439_v10 = vpop.permute.xlu0 %2438 }
 0x88b   :  { %2461 = vst.msk [vmem:[#allocation3 + $0x8] sm:$0xff] %vm201_vm2, %v2439_v10 }
 0x88c   :  { %v6296_v11 = vpop.permute.xlu1 %2693 }
 0x88e   :  { %v2441_v12 = vpop.permute.xlu0 %2440 }
 0x88f   :  { %2462 = vst.msk [vmem:[#allocation3 + $0x10] sm:$0xff] %vm201_vm2, %v2441_v12  ;;  %v4442_v12 = vld [vmem:[%s6685_s1 + $0x10] sm:$0xff] }
 0x890   :  { %v2479_v13 = vpop.permute.xlu1 %2478  ;;  %v2509_v35 = vld [vmem:[#allocation3] sm:$0xff]  ;;  %vm4450_vm6 = vcmp.ne.s32.totalorder %v4442_v12, 0 }
 0x891   :  { %2501 = vst.msk [vmem:[#allocation4 + $0x8] sm:$0xff] %vm201_vm2, %v2479_v13  ;;  %v2674_v36 = vadd.f32 %v6268_v2, %v2509_v35  ;;  %v4466_v13 = vsel %vm4450_vm6, 1, %v5623_v23 }
 0x892   :  { %v2443_v14 = vpop.permute.xlu0 %2442  ;;  %v2775_v32 = vld [vmem:[#allocation3 + $0x8] sm:$0xff] }
 0x893   :  { %2463 = vst.msk [vmem:[#allocation3 + $0x18] sm:$0xff] %vm201_vm2, %v2443_v14  ;;  %v4582_v37 = vmul.f32 -1.442695, %v2674_v36  ;;  %v2774_v14 = vld [vmem:[#allocation2 + $0x8] sm:$0xff] }
 0x894   :  { %v2481_v25 = vpop.permute.xlu1 %2480 }
 0x895   :  { %2502 = vst.msk [vmem:[#allocation4 + $0x10] sm:$0xff] %vm201_vm2, %v2481_v25  ;;  %5533 = vpow2.f32 %v4582_v37 }
 0x896   :  { %v2445_v15 = vpop.permute.xlu0 %2444  ;;  %5535 = vrcp.f32 %v2585_v39 }
 0x897   :  { %2464 = vst.msk [vmem:[#allocation3 + $0x20] sm:$0xff] %vm201_vm2, %v2445_v15 }
 0x898   :  { %v2483_v28 = vpop.permute.xlu1 %2482 }
 0x899   :  { %2503 = vst.msk [vmem:[#allocation4 + $0x18] sm:$0xff] %vm201_vm2, %v2483_v28 }
 0x89a   :  { %v2447_v29 = vpop.permute.xlu0 %2446 }
 0x89b   :  { %2465 = vst.msk [vmem:[#allocation3 + $0x28] sm:$0xff] %vm201_vm2, %v2447_v29 }
 0x89c   :  { %v2485_v30 = vpop.permute.xlu1 %2484 }
 0x89d   :  { %2504 = vst.msk [vmem:[#allocation4 + $0x20] sm:$0xff] %vm201_vm2, %v2485_v30 }
 0x8a0   :  { %v2487_v31 = vpop.permute.xlu1 %2486 }
 0x8a1   :  { %2505 = vst.msk [vmem:[#allocation4 + $0x28] sm:$0xff] %vm201_vm2, %v2487_v31 }
 0x8a2   :  { %v5534_v40 = vpop.eup %5533 }
 0x8a3   :  { %v2678_v45 = vadd.f32 1.0, %v5534_v40  ;;  %v5536_v0 = vpop.eup %5535 }
 0x8a5   :  { %5537 = vrcp.f32 %v2678_v45  ;;  %v2776_v45 = vld [vmem:[#allocation4 + $0x8] sm:$0xff] }
 0x8b2   :  { %v5538_v19 = vpop.eup %5537 }
 0x8b3   :  { %v2769_v20 = vsub.f32 1.0, %v5538_v19  ;;  %v2771_v22 = vmul.f32 0.0, %v5538_v19 }
 0x907   :  { %v5179_v41 = vpop.f32.mrf.mxu0 }
 0x908   :  { %v2403_v42 = vadd.f32 %v5179_v41, %v6233_v24 }
 0x909   :  { %v2397_v43 = vpop.f32.mrf.mxu0 }
 0x90a   :  { %v2419_v46 = vadd.f32 %v6238_v26, %v2403_v42  ;;  %v2398_v44 = vadd.f32 %v6233_v24, %v2397_v43  ;;  %v2510_v24 = vld [vmem:[#allocation4] sm:$0xff] }
 0x90b   :  { %v2762_v47 = vpop.f32.mrf.mxu0 }
 0x90c   :  { %2427 = vst.msk [vmem:[#allocation2 + $0x38] sm:$0xff] %vm201_vm2, %v2419_v46  ;;  %v2418_v48 = vadd.f32 %v6238_v26, %v2398_v44  ;;  %v2763_v49 = vadd.f32 %v2762_v47, %v6296_v11  ;;  %2488 = vrot.lane.b32.xlu1 %v2398_v44, %s5622_s13  ;;  %v4464_v26 = vsel %vm4448_vm3, 1, %v5623_v23 }
 0x90d   :  { %v5212_v2 = vpop.f32.mrf.mxu0 }
 0x90e   :  { %2426 = vst.msk [vmem:[#allocation2 + $0x30] sm:$0xff] %vm201_vm2, %v2418_v48  ;;  %v2766_v8 = vmul.f32 %v5536_v0, %v2763_v49  ;;  %2448 = vrot.lane.b32.xlu0 %v2418_v48, %s5621_s19 }
 0x910   :  { %v2767_v51 = vadd.f32 %v2766_v8, %v2510_v24  ;;  %2490 = vrot.lane.b32.xlu1 %v2403_v42, %s5622_s13 }
 0x912   :  { %5539 = vtanh.f32 %v2767_v51  ;;  %2450 = vrot.lane.b32.xlu0 %v2419_v46, %s5621_s19  ;;  %v4443_v51 = vld [vmem:[%s6685_s1 + $0x18] sm:$0xff] }
 0x913   :  { %vm4451_vm8 = vcmp.ne.s32.totalorder %v4443_v51, 0  ;;  %v3252_v51 = vld [vmem:[#allocation4 + $0x18] sm:$0xff] }
 0x914   :  { %4476 = vperm.xlu1 %5450, %v4465_v53  }
 0x916   :  { %4473 = vperm.xlu0 %5449, %v4464_v26   ;;  %v4467_v26 = vsel %vm4451_vm8, 1, %v5623_v23 }
 0x918   :  { %4479 = vperm.xlu1 %5450, %v4466_v13  }
 0x91a   :  { %4482 = vperm.xlu0 %5449, %v4467_v26  }
 0x91f   :  { %v5540_v54 = vpop.eup %5539 }
 0x920   :  { %v2770_v21 = vmul.f32 %v5540_v54, %v2769_v20 }
 0x922   :  { %v6330_v56 = vadd.f32 %v2771_v22, %v2770_v21 }
 0x924   :  { %2773 = vst.msk [vmem:[#allocation5] sm:$0xff] %vm201_vm2, %v6330_v56  ;;  %5222 = vmatmul.mubr.msk.f32.vlgmr.msra.gmra.mxu1 %vm201_vm2, %v6330_v56  ;;  %5233 = vmatmul.mubr.msk.f32.vlgmr.msra.gmra.mxu0 %vm201_vm2, %v6330_v56 }
 0x925   :  { %5236 = vmatpush3.msra.mxu1 %v6214_v62  ;;  %5243 = vmatprep.mubr.msk.f32.mxu1 %vm5620_vm1, %v5619_v3 }
 0x926   :  { %5237 = vmatprep.subr.mxu1 %v5619_v3  ;;  %5247 = vmatpush3.msra.mxu0 %v6102_v17 }
 0x927   :  { %5238 = vmatpush3.msra.mxu1 %v6216_v63  ;;  %5248 = vmatprep.subr.mxu0 %v5619_v3 }
 0x928   :  { %5239 = vmatprep.subr.mxu1 %v5619_v3  ;;  %5249 = vmatpush3.msra.mxu0 %v6109_v16 }
 0x929   :  { %5240 = vmatpush3.msra.mxu1 %v6221_v1  ;;  %5250 = vmatprep.subr.mxu0 %v5619_v3 }
 0x92a   :  { %5241 = vmatprep.subr.mxu1 %v5619_v3  ;;  %5251 = vmatpush3.msra.mxu0 %v6116_v18 }
 0x92b   :  { %5242 = vmatpush3.msra.mxu1 %v6224_v4  ;;  %5252 = vmatprep.subr.mxu0 %v5619_v3  ;;  %v4456_v9 = vld [vmem:[#allocation5] sm:$0xff] }
 0x92c   :  { %5244 = vmatmul.mubr.msk.f32.vlgmr.msra.gmra.mxu1 %vm201_vm2, %v6330_v56  ;;  %5257 = vmatprep.subr.mxu1 %v5619_v3 }
 0x92d   :  { %5258 = vmatpush3.msra.mxu1 %v6179_v55  ;;  %5253 = vmatpush3.msra.mxu0 %v6121_v27 }
 0x92e   :  { %5259 = vmatprep.subr.mxu1 %v5619_v3  ;;  %5254 = vmatprep.mubr.msk.f32.mxu0 %vm5620_vm1, %v5619_v3 }
 0x92f   :  { %5260 = vmatpush3.msra.mxu1 %v6184_v58  ;;  %5265 = vmatprep.mubr.msk.f32.mxu1 %vm5620_vm1, %v5619_v3 }
 0x930   :  { %5261 = vmatprep.subr.mxu1 %v5619_v3  ;;  %5268 = vmatprep.subr.mxu0 %v5619_v3 }
 0x931   :  { %5262 = vmatpush3.msra.mxu1 %v6193_v59 }
 0x932   :  { %5263 = vmatprep.subr.mxu1 %v5619_v3 }
 0x933   :  { %5264 = vmatpush3.msra.mxu1 %v6197_v61 }
 0x934   :  { %5279 = vmatprep.subr.mxu1 %v5619_v3 }
 0x97e   :  { %v2489_v57 = vpop.permute.xlu1 %2488 }
 0x97f   :  { %2506 = vst.msk [vmem:[#allocation4 + $0x30] sm:$0xff] %vm201_vm2, %v2489_v57 }
 0x980   :  { %v2449_v5 = vpop.permute.xlu0 %2448 }
 0x981   :  { %2466 = vst.msk [vmem:[#allocation3 + $0x30] sm:$0xff] %vm201_vm2, %v2449_v5 }
 0x982   :  { %v2491_v7 = vpop.permute.xlu1 %2490 }
 0x983   :  { %2507 = vst.msk [vmem:[#allocation4 + $0x38] sm:$0xff] %vm201_vm2, %v2491_v7 }
 0x984   :  { %v2451_v60 = vpop.permute.xlu0 %2450 }
 0x985   :  { %2467 = vst.msk [vmem:[#allocation3 + $0x38] sm:$0xff] %vm201_vm2, %v2451_v60 }
 0x98f   :  { %v4477_v6 = vpop.permute.xlu1 %4476 }
 0x990   :  { %vm4497_vm7 = vcmp.eq.s32.totalorder %v4477_v6, 1 }
 0x991   :  { %v4474_v50 = vpop.permute.xlu0 %4473 }
 0x992   :  { %vm4496_vm5 = vcmp.eq.s32.totalorder %v4474_v50, 1 }
 0x993   :  { %v4504_v10 = vsel %vm4496_vm5, %v4456_v9, -1.0 }
 0x994   :  { %4512 = vst.msk [vmem:[%s6686_s10] sm:$0xff] %vm201_vm2, %v4504_v10 }
 0x9e4   :  { %v2846_v25 = vpop.f32.mrf.mxu1  ;;  %v2923_v15 = vpop.f32.mrf.mxu0 }
 0x9e5   :  { %v2850_v28 = vadd.f32 %v2846_v25, %v2774_v14  ;;  %v2927_v33 = vadd.f32 %v2923_v15, %v2775_v32  ;;  %v3014_v15 = vld [vmem:[#allocation4 + $0x10] sm:$0xff] }
 0x9e6   :  { %v5223_v29 = vpop.f32.mrf.mxu1  ;;  %v5234_v30 = vpop.f32.mrf.mxu0 }
 0x9e7   :  { %v4584_v31 = vmul.f32 -1.442695, %v2850_v28  ;;  %v4586_v36 = vmul.f32 -1.442695, %v2927_v33 }
 0x9e9   :  { %5541 = vpow2.f32 %v4584_v31 }
 0x9ea   :  { %5543 = vpow2.f32 %v4586_v36 }
 0x9ec   :  { %v3000_v34 = vpop.f32.mrf.mxu1 }
 0x9ed   :  { %v3001_v41 = vadd.f32 %v3000_v34, %v6296_v11 }
 0x9ee   :  { %v5245_v35 = vpop.f32.mrf.mxu1 }
 0x9ef   :  { %v4480_v35 = vpop.permute.xlu1 %4479 }
 0x9f0   :  { %vm4498_vm9 = vcmp.eq.s32.totalorder %v4480_v35, 1 }
 0x9f6   :  { %v5542_v37 = vpop.eup %5541 }
 0x9f7   :  { %v2854_v38 = vadd.f32 1.0, %v5542_v37  ;;  %v5544_v39 = vpop.eup %5543 }
 0x9f8   :  { %v2931_v40 = vadd.f32 1.0, %v5544_v39 }
 0x9f9   :  { %5545 = vrcp.f32 %v2854_v38 }
 0x9fa   :  { %5547 = vrcp.f32 %v2931_v40 }
 0xa06   :  { %v5546_v42 = vpop.eup %5545 }
 0xa07   :  { %v3004_v43 = vmul.f32 %v5546_v42, %v3001_v41  ;;  %v5548_v44 = vpop.eup %5547 }
 0xa08   :  { %v3007_v47 = vsub.f32 1.0, %v5548_v44  ;;  %v3009_v0 = vmul.f32 %v5548_v44, %v6330_v56  ;;  %v3013_v56 = vld [vmem:[#allocation3 + $0x10] sm:$0xff] }
 0xa09   :  { %v3005_v46 = vadd.f32 %v3004_v43, %v2776_v45  ;;  %v3251_v43 = vld [vmem:[#allocation3 + $0x18] sm:$0xff] }
 0xa0b   :  { %5549 = vtanh.f32 %v3005_v46 }
 0xa18   :  { %v5550_v48 = vpop.eup %5549 }
 0xa19   :  { %v3008_v49 = vmul.f32 %v5550_v48, %v3007_v47 }
 0xa1b   :  { %v6384_v2 = vadd.f32 %v3009_v0, %v3008_v49 }
 0xa1d   :  { %3011 = vst.msk [vmem:[#allocation5 + $0x8] sm:$0xff] %vm201_vm2, %v6384_v2  ;;  %5255 = vmatmul.mubr.msk.f32.vlgmr.msra.gmra.mxu0 %vm201_vm2, %v6384_v2  ;;  %5266 = vmatmul.mubr.msk.f32.vlgmr.msra.gmra.mxu1 %vm201_vm2, %v6384_v2 }
 0xa1e   :  { %5269 = vmatpush3.msra.mxu0 %v6214_v62  ;;  %5276 = vmatprep.mubr.msk.f32.mxu0 %vm5620_vm1, %v5619_v3 }
 0xa1f   :  { %5270 = vmatprep.subr.mxu0 %v5619_v3  ;;  %5280 = vmatpush3.msra.mxu1 %v6102_v17 }
 0xa20   :  { %5271 = vmatpush3.msra.mxu0 %v6216_v63  ;;  %5281 = vmatprep.subr.mxu1 %v5619_v3 }
 0xa21   :  { %5272 = vmatprep.subr.mxu0 %v5619_v3  ;;  %5282 = vmatpush3.msra.mxu1 %v6109_v16 }
 0xa22   :  { %5273 = vmatpush3.msra.mxu0 %v6221_v1  ;;  %5283 = vmatprep.subr.mxu1 %v5619_v3 }
 0xa23   :  { %5274 = vmatprep.subr.mxu0 %v5619_v3  ;;  %5284 = vmatpush3.msra.mxu1 %v6116_v18 }
 0xa24   :  { %v4457_v8 = vld [vmem:[#allocation5 + $0x8] sm:$0xff]  ;;  %5275 = vmatpush3.msra.mxu0 %v6224_v4  ;;  %5285 = vmatprep.subr.mxu1 %v5619_v3 }
 0xa25   :  { %v4505_v24 = vsel %vm4497_vm7, %v4457_v8, -1.0  ;;  %5277 = vmatmul.mubr.msk.f32.vlgmr.msra.gmra.mxu0 %vm201_vm2, %v6384_v2  ;;  %5290 = vmatprep.subr.mxu0 %v5619_v3 }
 0xa26   :  { %4513 = vst.msk [vmem:[%s6686_s10 + $0x8] sm:$0xff] %vm201_vm2, %v4505_v24  ;;  %5291 = vmatpush3.msra.mxu0 %v6179_v55  ;;  %5286 = vmatpush3.msra.mxu1 %v6121_v27 }
 0xa27   :  { %5292 = vmatprep.subr.mxu0 %v5619_v3  ;;  %5287 = vmatprep.mubr.msk.f32.mxu1 %vm5620_vm1, %v5619_v3 }
 0xa28   :  { %5293 = vmatpush3.msra.mxu0 %v6184_v58  ;;  %5298 = vmatprep.mubr.msk.f32.mxu0 %vm5620_vm1, %v5619_v3 }
 0xa29   :  { %5294 = vmatprep.subr.mxu0 %v5619_v3  ;;  %5301 = vmatprep.subr.mxu1 %v5619_v3 }
 0xa2a   :  { %5295 = vmatpush3.msra.mxu0 %v6193_v59 }
 0xa2b   :  { %5296 = vmatprep.subr.mxu0 %v5619_v3 }
 0xa2c   :  { %5297 = vmatpush3.msra.mxu0 %v6197_v61 }
 0xa2d   :  { %5312 = vmatprep.subr.mxu0 %v5619_v3 }
 0xadd   :  { %v3084_v53 = vpop.f32.mrf.mxu0  ;;  %v3161_v19 = vpop.f32.mrf.mxu1 }
 0xade   :  { %v3088_v20 = vadd.f32 %v3084_v53, %v3012_v52  ;;  %v3165_v57 = vadd.f32 %v3161_v19, %v3013_v56  ;;  %v6499_v56 = vld [vmem:[%s6682_s7 + $0x18] sm:$0xff] }
 0xadf   :  { %v5256_v54 = vpop.f32.mrf.mxu0  ;;  %v5267_v21 = vpop.f32.mrf.mxu1 }
 0xae0   :  { %v4589_v22 = vmul.f32 -1.442695, %v3088_v20  ;;  %v4591_v60 = vmul.f32 -1.442695, %v3165_v57  ;;  %v6508_v57 = vld [vmem:[%s6682_s7 + $0x10] sm:$0xff] }
 0xae2   :  { %5551 = vpow2.f32 %v4589_v22  ;;  %v4483_v22 = vpop.permute.xlu0 %4482 }
 0xae3   :  { %5553 = vpow2.f32 %v4591_v60  ;;  %vm4499_vm11 = vcmp.eq.s32.totalorder %v4483_v22, 1 }
 0xae5   :  { %v3238_v5 = vpop.f32.mrf.mxu0 }
 0xae6   :  { %v3239_v13 = vadd.f32 %v3238_v5, %v6296_v11  ;;  %v6517_v5 = vld [vmem:[%s6682_s7 + $0x8] sm:$0xff] }
 0xae7   :  { %v5278_v7 = vpop.f32.mrf.mxu0 }
 0xaef   :  { %v5552_v50 = vpop.eup %5551 }
 0xaf0   :  { %v3092_v9 = vadd.f32 1.0, %v5552_v50  ;;  %v5554_v10 = vpop.eup %5553  ;;  %v6533_v50 = vld [vmem:[%s6682_s7] sm:$0xff] }
 0xaf1   :  { %v3169_v12 = vadd.f32 1.0, %v5554_v10 }
 0xaf2   :  { %5555 = vrcp.f32 %v3092_v9  ;;  %v4445_v9 = vld [vmem:[%s6685_s1 + $0x28] sm:$0xff] }
 0xaf3   :  { %5557 = vrcp.f32 %v3169_v12  ;;  %vm4453_vm12 = vcmp.ne.s32.totalorder %v4445_v9, 0  ;;  %v3488_v12 = vld [vmem:[#allocation2 + $0x20] sm:$0xff] }
 0xaf4   :  { %v4469_v10 = vsel %vm4453_vm12, 1, %v5623_v23 }
 0xaf5   :  { %4488 = vperm.xlu0 %5449, %v4469_v10  }
 0xaff   :  { %v5556_v14 = vpop.eup %5555 }
 0xb00   :  { %v3242_v25 = vmul.f32 %v5556_v14, %v3239_v13  ;;  %v5558_v29 = vpop.eup %5557 }
 0xb01   :  { %v3245_v30 = vsub.f32 1.0, %v5558_v29  ;;  %v3247_v33 = vmul.f32 %v5558_v29, %v6384_v2 }
 0xb02   :  { %v3243_v28 = vadd.f32 %v3242_v25, %v3014_v15 }
 0xb04   :  { %5559 = vtanh.f32 %v3243_v28 }
 0xb11   :  { %v5560_v31 = vpop.eup %5559 }
 0xb12   :  { %v3246_v32 = vmul.f32 %v5560_v31, %v3245_v30  ;;  %v3489_v30 = vld [vmem:[#allocation3 + $0x20] sm:$0xff] }
 0xb14   :  { %v6434_v34 = vadd.f32 %v3247_v33, %v3246_v32 }
 0xb16   :  { %3249 = vst.msk [vmem:[#allocation5 + $0x10] sm:$0xff] %vm201_vm2, %v6434_v34  ;;  %5288 = vmatmul.mubr.msk.f32.vlgmr.msra.gmra.mxu1 %vm201_vm2, %v6434_v34  ;;  %5299 = vmatmul.mubr.msk.f32.vlgmr.msra.gmra.mxu0 %vm201_vm2, %v6434_v34 }
 0xb17   :  { %5302 = vmatpush3.msra.mxu1 %v6214_v62  ;;  %5309 = vmatprep.mubr.msk.f32.mxu1 %vm5620_vm1, %v5619_v3 }
 0xb18   :  { %5303 = vmatprep.subr.mxu1 %v5619_v3  ;;  %5313 = vmatpush3.msra.mxu0 %v6102_v17 }
 0xb19   :  { %5304 = vmatpush3.msra.mxu1 %v6216_v63  ;;  %5314 = vmatprep.subr.mxu0 %v5619_v3 }
 0xb1a   :  { %5305 = vmatprep.subr.mxu1 %v5619_v3  ;;  %5315 = vmatpush3.msra.mxu0 %v6109_v16  ;;  %v4444_v16 = vld [vmem:[%s6685_s1 + $0x20] sm:$0xff] }
 0xb1b   :  { %5306 = vmatpush3.msra.mxu1 %v6221_v1  ;;  %5316 = vmatprep.subr.mxu0 %v5619_v3  ;;  %vm4452_vm10 = vcmp.ne.s32.totalorder %v4444_v16, 0 }
 0xb1c   :  { %5307 = vmatprep.subr.mxu1 %v5619_v3  ;;  %5317 = vmatpush3.msra.mxu0 %v6116_v18  ;;  %v4468_v18 = vsel %vm4452_vm10, 1, %v5623_v23 }
 0xb1d   :  { %v4458_v36 = vld [vmem:[#allocation5 + $0x10] sm:$0xff]  ;;  %5308 = vmatpush3.msra.mxu1 %v6224_v4  ;;  %5318 = vmatprep.subr.mxu0 %v5619_v3 }
 0xb1e   :  { %v4506_v17 = vsel %vm4498_vm9, %v4458_v36, -1.0  ;;  %5310 = vmatmul.mubr.msk.f32.vlgmr.msra.gmra.mxu1 %vm201_vm2, %v6434_v34  ;;  %5323 = vmatprep.subr.mxu1 %v5619_v3 }
 0xb1f   :  { %4514 = vst.msk [vmem:[%s6686_s10 + $0x10] sm:$0xff] %vm201_vm2, %v4506_v17  ;;  %5324 = vmatpush3.msra.mxu1 %v6179_v55  ;;  %5319 = vmatpush3.msra.mxu0 %v6121_v27  ;;  %v3250_v27 = vld [vmem:[#allocation2 + $0x18] sm:$0xff] }
 0xb20   :  { %5325 = vmatprep.subr.mxu1 %v5619_v3  ;;  %5320 = vmatprep.mubr.msk.f32.mxu0 %vm5620_vm1, %v5619_v3 }
 0xb21   :  { %5326 = vmatpush3.msra.mxu1 %v6184_v58  ;;  %5331 = vmatprep.mubr.msk.f32.mxu1 %vm5620_vm1, %v5619_v3 }
 0xb22   :  { %5327 = vmatprep.subr.mxu1 %v5619_v3  ;;  %5334 = vmatprep.subr.mxu0 %v5619_v3 }
 0xb23   :  { %5328 = vmatpush3.msra.mxu1 %v6193_v59  ;;  %4485 = vperm.xlu1 %5450, %v4468_v18  }
 0xb24   :  { %5329 = vmatprep.subr.mxu1 %v5619_v3 }
 0xb25   :  { %5330 = vmatpush3.msra.mxu1 %v6197_v61 }
 0xb26   :  { %5345 = vmatprep.subr.mxu1 %v5619_v3 }
 0xbd6   :  { %v3322_v37 = vpop.f32.mrf.mxu1  ;;  %v3399_v38 = vpop.f32.mrf.mxu0 }
 0xbd7   :  { %v3326_v39 = vadd.f32 %v3322_v37, %v3250_v27  ;;  %v3403_v45 = vadd.f32 %v3399_v38, %v3251_v43  ;;  %v3490_v38 = vld [vmem:[#allocation4 + $0x20] sm:$0xff] }
 0xbd8   :  { %v5289_v40 = vpop.f32.mrf.mxu1  ;;  %v5300_v41 = vpop.f32.mrf.mxu0 }
 0xbd9   :  { %v4594_v42 = vmul.f32 -1.442695, %v3326_v39  ;;  %v4596_v47 = vmul.f32 -1.442695, %v3403_v45 }
 0xbdb   :  { %5561 = vpow2.f32 %v4594_v42 }
 0xbdc   :  { %5563 = vpow2.f32 %v4596_v47 }
 0xbde   :  { %v3476_v46 = vpop.f32.mrf.mxu1 }
 0xbdf   :  { %v3477_v6 = vadd.f32 %v3476_v46, %v6296_v11 }
 0xbe0   :  { %v5311_v44 = vpop.f32.mrf.mxu1 }
 0xbe1   :  { %v4486_v44 = vpop.permute.xlu1 %4485 }
 0xbe2   :  { %vm4500_vm13 = vcmp.eq.s32.totalorder %v4486_v44, 1 }
 0xbe8   :  { %v5562_v48 = vpop.eup %5561 }
 0xbe9   :  { %v3330_v49 = vadd.f32 1.0, %v5562_v48  ;;  %v5564_v0 = vpop.eup %5563 }
 0xbea   :  { %v3407_v2 = vadd.f32 1.0, %v5564_v0 }
 0xbeb   :  { %5565 = vrcp.f32 %v3330_v49  ;;  %v4446_v49 = vld [vmem:[%s6685_s1 + $0x30] sm:$0xff] }
 0xbec   :  { %5567 = vrcp.f32 %v3407_v2  ;;  %vm4454_vm14 = vcmp.ne.s32.totalorder %v4446_v49, 0  ;;  %v3726_v2 = vld [vmem:[#allocation2 + $0x28] sm:$0xff] }
 0xbed   :  { %v4470_v0 = vsel %vm4454_vm14, 1, %v5623_v23 }
 0xbee   :  { %4491 = vperm.xlu1 %5450, %v4470_v0  }
 0xbf8   :  { %v5566_v8 = vpop.eup %5565 }
 0xbf9   :  { %v3480_v24 = vmul.f32 %v5566_v8, %v3477_v6  ;;  %v5568_v52 = vpop.eup %5567 }
 0xbfa   :  { %v3483_v53 = vsub.f32 1.0, %v5568_v52  ;;  %v3485_v54 = vmul.f32 %v5568_v52, %v6434_v34 }
 0xbfb   :  { %v3481_v26 = vadd.f32 %v3480_v24, %v3252_v51 }
 0xbfd   :  { %5569 = vtanh.f32 %v3481_v26 }
 0xc0a   :  { %v5570_v19 = vpop.eup %5569 }
 0xc0b   :  { %v3484_v20 = vmul.f32 %v5570_v19, %v3483_v53  ;;  %v3727_v53 = vld [vmem:[#allocation3 + $0x28] sm:$0xff] }
 0xc0d   :  { %v6484_v21 = vadd.f32 %v3485_v54, %v3484_v20 }
 0xc0f   :  { %3487 = vst.msk [vmem:[#allocation5 + $0x18] sm:$0xff] %vm201_vm2, %v6484_v21  ;;  %5321 = vmatmul.mubr.msk.f32.vlgmr.msra.gmra.mxu0 %vm201_vm2, %v6484_v21  ;;  %5332 = vmatmul.mubr.msk.f32.vlgmr.msra.gmra.mxu1 %vm201_vm2, %v6484_v21 }
 0xc10   :  { %5335 = vmatpush3.msra.mxu0 %v6214_v62  ;;  %5342 = vmatprep.mubr.msk.f32.mxu0 %vm5620_vm1, %v5619_v3 }
 0xc11   :  { %5336 = vmatprep.subr.mxu0 %v5619_v3  ;;  %5346 = vmatpush3.msra.mxu1 %v6499_v56 }
 0xc12   :  { %5337 = vmatpush3.msra.mxu0 %v6216_v63  ;;  %5347 = vmatprep.subr.mxu1 %v5619_v3 }
 0xc13   :  { %5338 = vmatprep.subr.mxu0 %v5619_v3  ;;  %5348 = vmatpush3.msra.mxu1 %v6508_v57 }
 0xc14   :  { %5339 = vmatpush3.msra.mxu0 %v6221_v1  ;;  %5349 = vmatprep.subr.mxu1 %v5619_v3 }
 0xc15   :  { %5340 = vmatprep.subr.mxu0 %v5619_v3  ;;  %5350 = vmatpush3.msra.mxu1 %v6517_v5 }
 0xc16   :  { %v4459_v7 = vld [vmem:[#allocation5 + $0x18] sm:$0xff]  ;;  %5341 = vmatpush3.msra.mxu0 %v6224_v4  ;;  %5351 = vmatprep.subr.mxu1 %v5619_v3 }
 0xc17   :  { %v4507_v60 = vsel %vm4499_vm11, %v4459_v7, -1.0  ;;  %5343 = vmatmul.mubr.msk.f32.vlgmr.msra.gmra.mxu0 %vm201_vm2, %v6484_v21  ;;  %5356 = vmatprep.subr.mxu0 %v5619_v3 }
 0xc18   :  { %4515 = vst.msk [vmem:[%s6686_s10 + $0x18] sm:$0xff] %vm201_vm2, %v4507_v60  ;;  %5357 = vmatpush3.msra.mxu0 %v6179_v55  ;;  %5352 = vmatpush3.msra.mxu1 %v6533_v50 }
 0xc19   :  { %5358 = vmatprep.subr.mxu0 %v5619_v3  ;;  %5353 = vmatprep.mubr.msk.f32.mxu1 %vm5620_vm1, %v5619_v3 }
 0xc1a   :  { %5359 = vmatpush3.msra.mxu0 %v6184_v58  ;;  %5364 = vmatprep.mubr.msk.f32.mxu0 %vm5620_vm1, %v5619_v3 }
 0xc1b   :  { %5360 = vmatprep.subr.mxu0 %v5619_v3  ;;  %5367 = vmatprep.subr.mxu1 %v5619_v3 }
 0xc1c   :  { %5361 = vmatpush3.msra.mxu0 %v6193_v59 }
 0xc1d   :  { %5362 = vmatprep.subr.mxu0 %v5619_v3 }
 0xc1e   :  { %5363 = vmatpush3.msra.mxu0 %v6197_v61 }
 0xc1f   :  { %5378 = vmatprep.subr.mxu0 %v5619_v3 }
 0xccf   :  { %v3560_v13 = vpop.f32.mrf.mxu0  ;;  %v3637_v14 = vpop.f32.mrf.mxu1 }
 0xcd0   :  { %v3564_v25 = vadd.f32 %v3560_v13, %v3488_v12  ;;  %v3641_v31 = vadd.f32 %v3637_v14, %v3489_v30  ;;  %v3728_v14 = vld [vmem:[#allocation4 + $0x28] sm:$0xff] }
 0xcd1   :  { %v5322_v15 = vpop.f32.mrf.mxu0  ;;  %v5333_v28 = vpop.f32.mrf.mxu1 }
 0xcd2   :  { %v4599_v29 = vmul.f32 -1.442695, %v3564_v25  ;;  %v4601_v34 = vmul.f32 -1.442695, %v3641_v31 }
 0xcd4   :  { %5571 = vpow2.f32 %v4599_v29 }
 0xcd5   :  { %5573 = vpow2.f32 %v4601_v34 }
 0xcd7   :  { %v3714_v32 = vpop.f32.mrf.mxu0 }
 0xcd8   :  { %v3715_v18 = vadd.f32 %v3714_v32, %v6296_v11 }
 0xcd9   :  { %v5344_v33 = vpop.f32.mrf.mxu0 }
 0xcda   :  { %v4489_v33 = vpop.permute.xlu0 %4488 }
 0xcdb   :  { %vm4501_vm15 = vcmp.eq.s32.totalorder %v4489_v33, 1 }
 0xce1   :  { %v5572_v35 = vpop.eup %5571 }
 0xce2   :  { %v3568_v36 = vadd.f32 1.0, %v5572_v35  ;;  %v5574_v17 = vpop.eup %5573 }
 0xce3   :  { %v3645_v16 = vadd.f32 1.0, %v5574_v17 }
 0xce4   :  { %5575 = vrcp.f32 %v3568_v36 }
 0xce5   :  { %5577 = vrcp.f32 %v3645_v16 }
 0xcf1   :  { %v5576_v27 = vpop.eup %5575 }
 0xcf2   :  { %v3718_v37 = vmul.f32 %v5576_v27, %v3715_v18  ;;  %v5578_v40 = vpop.eup %5577 }
 0xcf3   :  { %v3721_v41 = vsub.f32 1.0, %v5578_v40  ;;  %v3723_v45 = vmul.f32 %v5578_v40, %v6484_v21 }
 0xcf4   :  { %v3719_v39 = vadd.f32 %v3718_v37, %v3490_v38 }
 0xcf6   :  { %5579 = vtanh.f32 %v3719_v39 }
 0xd03   :  { %v5580_v42 = vpop.eup %5579 }
 0xd04   :  { %v3722_v43 = vmul.f32 %v5580_v42, %v3721_v41 }
 0xd06   :  { %v6554_v46 = vadd.f32 %v3723_v45, %v3722_v43  ;;  %v3966_v45 = vld [vmem:[#allocation4 + $0x30] sm:$0xff] }
 0xd08   :  { %3725 = vst.msk [vmem:[#allocation5 + $0x20] sm:$0xff] %vm201_vm2, %v6554_v46  ;;  %5354 = vmatmul.mubr.msk.f32.vlgmr.msra.gmra.mxu1 %vm201_vm2, %v6554_v46  ;;  %5365 = vmatmul.mubr.msk.f32.vlgmr.msra.gmra.mxu0 %vm201_vm2, %v6554_v46 }
 0xd09   :  { %5368 = vmatpush3.msra.mxu1 %v6214_v62  ;;  %5375 = vmatprep.mubr.msk.f32.mxu1 %vm5620_vm1, %v5619_v3 }
 0xd0a   :  { %5369 = vmatprep.subr.mxu1 %v5619_v3  ;;  %5379 = vmatpush3.msra.mxu0 %v6499_v56 }
 0xd0b   :  { %5370 = vmatpush3.msra.mxu1 %v6216_v63  ;;  %5380 = vmatprep.subr.mxu0 %v5619_v3 }
 0xd0c   :  { %5371 = vmatprep.subr.mxu1 %v5619_v3  ;;  %5381 = vmatpush3.msra.mxu0 %v6508_v57 }
 0xd0d   :  { %5372 = vmatpush3.msra.mxu1 %v6221_v1  ;;  %5382 = vmatprep.subr.mxu0 %v5619_v3 }
 0xd0e   :  { %5373 = vmatprep.subr.mxu1 %v5619_v3  ;;  %5383 = vmatpush3.msra.mxu0 %v6517_v5 }
 0xd0f   :  { %v4460_v47 = vld [vmem:[#allocation5 + $0x20] sm:$0xff]  ;;  %5374 = vmatpush3.msra.mxu1 %v6224_v4  ;;  %5384 = vmatprep.subr.mxu0 %v5619_v3 }
 0xd10   :  { %v4508_v48 = vsel %vm4500_vm13, %v4460_v47, -1.0  ;;  %5376 = vmatmul.mubr.msk.f32.vlgmr.msra.gmra.mxu1 %vm201_vm2, %v6554_v46  ;;  %5389 = vmatprep.subr.mxu1 %v5619_v3 }
 0xd11   :  { %4516 = vst.msk [vmem:[%s6686_s10 + $0x20] sm:$0xff] %vm201_vm2, %v4508_v48  ;;  %5390 = vmatpush3.msra.mxu1 %v6179_v55  ;;  %5385 = vmatpush3.msra.mxu0 %v6533_v50 }
 0xd12   :  { %5391 = vmatprep.subr.mxu1 %v5619_v3  ;;  %5386 = vmatprep.mubr.msk.f32.mxu0 %vm5620_vm1, %v5619_v3 }
 0xd13   :  { %5392 = vmatpush3.msra.mxu1 %v6184_v58  ;;  %5397 = vmatprep.mubr.msk.f32.mxu1 %vm5620_vm1, %v5619_v3 }
 0xd14   :  { %5393 = vmatprep.subr.mxu1 %v5619_v3  ;;  %5400 = vmatprep.subr.mxu0 %v5619_v3 }
 0xd15   :  { %5394 = vmatpush3.msra.mxu1 %v6193_v59 }
 0xd16   :  { %5395 = vmatprep.subr.mxu1 %v5619_v3 }
 0xd17   :  { %5396 = vmatpush3.msra.mxu1 %v6197_v61 }
 0xd18   :  { %5411 = vmatprep.subr.mxu1 %v5619_v3 }
 0xdc8   :  { %v3798_v6 = vpop.f32.mrf.mxu1  ;;  %v3875_v8 = vpop.f32.mrf.mxu0 }
 0xdc9   :  { %v3802_v24 = vadd.f32 %v3798_v6, %v3726_v2  ;;  %v3879_v19 = vadd.f32 %v3875_v8, %v3727_v53  ;;  %v4492_v6 = vpop.permute.xlu1 %4491 }
 0xdca   :  { %v5355_v51 = vpop.f32.mrf.mxu1  ;;  %v5366_v26 = vpop.f32.mrf.mxu0  ;;  %vm4502_vm3 = vcmp.eq.s32.totalorder %v4492_v6, 1 }
 0xdcb   :  { %v4604_v52 = vmul.f32 -1.442695, %v3802_v24  ;;  %v4606_v21 = vmul.f32 -1.442695, %v3879_v19 }
 0xdcd   :  { %5581 = vpow2.f32 %v4604_v52 }
 0xdce   :  { %5583 = vpow2.f32 %v4606_v21 }
 0xdd0   :  { %v3952_v20 = vpop.f32.mrf.mxu1 }
 0xdd1   :  { %v3953_v10 = vadd.f32 %v3952_v20, %v6296_v11 }
 0xdd2   :  { %v5377_v54 = vpop.f32.mrf.mxu1 }
 0xdda   :  { %v5582_v22 = vpop.eup %5581 }
 0xddb   :  { %v3806_v7 = vadd.f32 1.0, %v5582_v22  ;;  %v5584_v60 = vpop.eup %5583 }
 0xddc   :  { %v3883_v9 = vadd.f32 1.0, %v5584_v60 }
 0xddd   :  { %5585 = vrcp.f32 %v3806_v7 }
 0xdde   :  { %5587 = vrcp.f32 %v3883_v9 }
 0xdea   :  { %v5586_v12 = vpop.eup %5585 }
 0xdeb   :  { %v3956_v13 = vmul.f32 %v5586_v12, %v3953_v10  ;;  %v5588_v15 = vpop.eup %5587 }
 0xdec   :  { %v3959_v28 = vsub.f32 1.0, %v5588_v15  ;;  %v3961_v31 = vmul.f32 %v5588_v15, %v6554_v46 }
 0xded   :  { %v3957_v25 = vadd.f32 %v3956_v13, %v3728_v14  ;;  %v4204_v13 = vld [vmem:[#allocation4 + $0x38] sm:$0xff] }
 0xdef   :  { %5589 = vtanh.f32 %v3957_v25 }
 0xdfc   :  { %v5590_v29 = vpop.eup %5589 }
 0xdfd   :  { %v3960_v30 = vmul.f32 %v5590_v29, %v3959_v28 }
 0xdff   :  { %v6604_v32 = vadd.f32 %v3961_v31, %v3960_v30 }
 0xe01   :  { %3963 = vst.msk [vmem:[#allocation5 + $0x28] sm:$0xff] %vm201_vm2, %v6604_v32  ;;  %5387 = vmatmul.mubr.msk.f32.vlgmr.msra.gmra.mxu0 %vm201_vm2, %v6604_v32  ;;  %5398 = vmatmul.mubr.msk.f32.vlgmr.msra.gmra.mxu1 %vm201_vm2, %v6604_v32 }
 0xe02   :  { %5401 = vmatpush3.msra.mxu0 %v6214_v62  ;;  %5408 = vmatprep.mubr.msk.f32.mxu0 %vm5620_vm1, %v5619_v3 }
 0xe03   :  { %5402 = vmatprep.subr.mxu0 %v5619_v3  ;;  %5412 = vmatpush3.msra.mxu1 %v6499_v56 }
 0xe04   :  { %5403 = vmatpush3.msra.mxu0 %v6216_v63  ;;  %5413 = vmatprep.subr.mxu1 %v5619_v3 }
 0xe05   :  { %5404 = vmatprep.subr.mxu0 %v5619_v3  ;;  %5414 = vmatpush3.msra.mxu1 %v6508_v57  ;;  %v3964_v57 = vld [vmem:[#allocation2 + $0x30] sm:$0xff] }
 0xe06   :  { %5405 = vmatpush3.msra.mxu0 %v6221_v1  ;;  %5415 = vmatprep.subr.mxu1 %v5619_v3 }
 0xe07   :  { %5406 = vmatprep.subr.mxu0 %v5619_v3  ;;  %5416 = vmatpush3.msra.mxu1 %v6517_v5 }
 0xe08   :  { %v4461_v34 = vld [vmem:[#allocation5 + $0x28] sm:$0xff]  ;;  %5407 = vmatpush3.msra.mxu0 %v6224_v4  ;;  %5417 = vmatprep.subr.mxu1 %v5619_v3 }
 0xe09   :  { %v4509_v56 = vsel %vm4501_vm15, %v4461_v34, -1.0  ;;  %5409 = vmatmul.mubr.msk.f32.vlgmr.msra.gmra.mxu0 %vm201_vm2, %v6604_v32  ;;  %5422 = vmatprep.subr.mxu0 %v5619_v3 }
 0xe0a   :  { %4517 = vst.msk [vmem:[%s6686_s10 + $0x28] sm:$0xff] %vm201_vm2, %v4509_v56  ;;  %5423 = vmatpush3.msra.mxu0 %v6179_v55  ;;  %5418 = vmatpush3.msra.mxu1 %v6533_v50  ;;  %v4447_v55 = vld [vmem:[%s6685_s1 + $0x38] sm:$0xff] }
 0xe0b   :  { %5424 = vmatprep.subr.mxu0 %v5619_v3  ;;  %5419 = vmatprep.mubr.msk.f32.mxu1 %vm5620_vm1, %v5619_v3  ;;  %vm4455_vm0 = vcmp.ne.s32.totalorder %v4447_v55, 0 }
 0xe0c   :  { %5425 = vmatpush3.msra.mxu0 %v6184_v58  ;;  %5430 = vmatprep.mubr.msk.f32.mxu0 %vm5620_vm1, %v5619_v3  ;;  %v4471_v58 = vsel %vm4455_vm0, 1, %v5623_v23 }
 0xe0d   :  { %5426 = vmatprep.subr.mxu0 %v5619_v3  ;;  %5433 = vmatprep.subr.mxu1 %v5619_v3 }
 0xe0e   :  { %5427 = vmatpush3.msra.mxu0 %v6193_v59  ;;  %4494 = vperm.xlu0 %5449, %v4471_v58   ;;  %v3965_v59 = vld [vmem:[#allocation3 + $0x30] sm:$0xff] }
 0xe0f   :  { %5428 = vmatprep.subr.mxu0 %v5619_v3 }
 0xe10   :  { %5429 = vmatpush3.msra.mxu0 %v6197_v61 }
 0xec1   :  { %v4036_v5 = vpop.f32.mrf.mxu0  ;;  %v4113_v50 = vpop.f32.mrf.mxu1 }
 0xec2   :  { %v4040_v35 = vadd.f32 %v4036_v5, %v3964_v57  ;;  %v4117_v18 = vadd.f32 %v4113_v50, %v3965_v59 }
 0xec3   :  { %v5388_v36 = vpop.f32.mrf.mxu0  ;;  %v5399_v17 = vpop.f32.mrf.mxu1 }
 0xec4   :  { %v4609_v16 = vmul.f32 -1.442695, %v4040_v35  ;;  %v4611_v37 = vmul.f32 -1.442695, %v4117_v18 }
 0xec6   :  { %5591 = vpow2.f32 %v4609_v16 }
 0xec7   :  { %5593 = vpow2.f32 %v4611_v37 }
 0xec9   :  { %v4190_v27 = vpop.f32.mrf.mxu0 }
 0xeca   :  { %v4191_v41 = vadd.f32 %v4190_v27, %v6296_v11 }
 0xecb   :  { %v5410_v61 = vpop.f32.mrf.mxu0 }
 0xed3   :  { %v5592_v38 = vpop.eup %5591 }
 0xed4   :  { %v4044_v39 = vadd.f32 1.0, %v5592_v38  ;;  %v5594_v40 = vpop.eup %5593 }
 0xed5   :  { %v4121_v23 = vadd.f32 1.0, %v5594_v40 }
 0xed6   :  { %5595 = vrcp.f32 %v4044_v39 }
 0xed7   :  { %5597 = vrcp.f32 %v4121_v23 }
 0xee3   :  { %v5596_v42 = vpop.eup %5595 }
 0xee4   :  { %v4194_v43 = vmul.f32 %v5596_v42, %v4191_v41  ;;  %v5598_v44 = vpop.eup %5597 }
 0xee5   :  { %v4197_v47 = vsub.f32 1.0, %v5598_v44  ;;  %v4199_v0 = vmul.f32 %v5598_v44, %v6604_v32  ;;  %v4495_v32 = vpop.permute.xlu0 %4494 }
 0xee6   :  { %v4195_v46 = vadd.f32 %v4194_v43, %v3966_v45 }
 0xee8   :  { %5599 = vtanh.f32 %v4195_v46 }
 0xef5   :  { %v5600_v48 = vpop.eup %5599 }
 0xef6   :  { %v4198_v49 = vmul.f32 %v5600_v48, %v4197_v47 }
 0xef8   :  { %v4200_v2 = vadd.f32 %v4199_v0, %v4198_v49 }
 0xefa   :  { %4201 = vst.msk [vmem:[#allocation5 + $0x30] sm:$0xff] %vm201_vm2, %v4200_v2  ;;  %5420 = vmatmul.mubr.msk.f32.vlgmr.msra.gmra.mxu1 %vm201_vm2, %v4200_v2  ;;  %5431 = vmatmul.mubr.msk.f32.vlgmr.msra.gmra.mxu0 %vm201_vm2, %v4200_v2 }
 0xefb   :  { %5434 = vmatpush3.msra.mxu1 %v6214_v62  ;;  %5441 = vmatprep.mubr.msk.f32.mxu1 %vm5620_vm1, %v5619_v3  ;;  %v4202_v62 = vld [vmem:[#allocation2 + $0x38] sm:$0xff]  ;;  %vm4503_vm1 = vcmp.eq.s32.totalorder %v4495_v32, 1 }
 0xefc   :  { %5435 = vmatprep.subr.mxu1 %v5619_v3 }
 0xefd   :  { %5436 = vmatpush3.msra.mxu1 %v6216_v63 }
 0xefe   :  { %5437 = vmatprep.subr.mxu1 %v5619_v3 }
 0xeff   :  { %5438 = vmatpush3.msra.mxu1 %v6221_v1 }
 0xf00   :  { %5439 = vmatprep.subr.mxu1 %v5619_v3  ;;  %v4203_v3 = vld [vmem:[#allocation3 + $0x38] sm:$0xff] }
 0xf01   :  { %v4462_v8 = vld [vmem:[#allocation5 + $0x30] sm:$0xff]  ;;  %5440 = vmatpush3.msra.mxu1 %v6224_v4 }
 0xf02   :  { %v4510_v24 = vsel %vm4502_vm3, %v4462_v8, -1.0  ;;  %5442 = vmatmul.mubr.msk.f32.vlgmr.msra.gmra.mxu1 %vm201_vm2, %v4200_v2 }
 0xf03   :  { %4518 = vst.msk [vmem:[%s6686_s10 + $0x30] sm:$0xff] %vm201_vm2, %v4510_v24 }
 0xfba   :  { %v4274_v63 = vpop.f32.mrf.mxu1  ;;  %v4351_v51 = vpop.f32.mrf.mxu0 }
 0xfbb   :  { %v4278_v26 = vadd.f32 %v4274_v63, %v4202_v62  ;;  %v4355_v19 = vadd.f32 %v4351_v51, %v4203_v3 }
 0xfbc   :  { %v5421_v52 = vpop.f32.mrf.mxu1  ;;  %v5432_v1 = vpop.f32.mrf.mxu0 }
 0xfbd   :  { %v4614_v53 = vmul.f32 -1.442695, %v4278_v26  ;;  %v4616_v54 = vmul.f32 -1.442695, %v4355_v19 }
 0xfbf   :  { %5601 = vpow2.f32 %v4614_v53 }
 0xfc0   :  { %5603 = vpow2.f32 %v4616_v54 }
 0xfc2   :  { %v4428_v20 = vpop.f32.mrf.mxu1 }
 0xfc3   :  { %v4429_v9 = vadd.f32 %v4428_v20, %v6296_v11 }
 0xfc4   :  { %v5443_v4 = vpop.f32.mrf.mxu1 }
 0xfcc   :  { %v5602_v21 = vpop.eup %5601 }
 0xfcd   :  { %v4282_v22 = vadd.f32 1.0, %v5602_v21  ;;  %v5604_v7 = vpop.eup %5603 }
 0xfce   :  { %v4359_v60 = vadd.f32 1.0, %v5604_v7 }
 0xfcf   :  { %5605 = vrcp.f32 %v4282_v22 }
 0xfd0   :  { %5607 = vrcp.f32 %v4359_v60 }
 0xfdc   :  { %v5606_v10 = vpop.eup %5605 }
 0xfdd   :  { %v4432_v12 = vmul.f32 %v5606_v10, %v4429_v9  ;;  %v5608_v25 = vpop.eup %5607 }
 0xfde   :  { %v4435_v15 = vsub.f32 1.0, %v5608_v25  ;;  %v4437_v29 = vmul.f32 %v5608_v25, %v4200_v2 }
 0xfdf   :  { %v4433_v14 = vadd.f32 %v4432_v12, %v4204_v13 }
 0xfe1   :  { %5609 = vtanh.f32 %v4433_v14 }
 0xfee   :  { %v5610_v28 = vpop.eup %5609 }
 0xfef   :  { %v4436_v30 = vmul.f32 %v5610_v28, %v4435_v15 }
 0xff1   :  { %v4438_v31 = vadd.f32 %v4437_v29, %v4436_v30 }
 0xff3   :  { %4439 = vst.msk [vmem:[#allocation5 + $0x38] sm:$0xff] %vm201_vm2, %v4438_v31 }
 0xffa   :  { %v4463_v33 = vld [vmem:[#allocation5 + $0x38] sm:$0xff] }
 0xffb   :  { %v4511_v34 = vsel %vm4503_vm1, %v4463_v33, -1.0 }
 0xffc   :  { %4519 = vst.msk [vmem:[%s6686_s10 + $0x38] sm:$0xff] %vm201_vm2, %v4511_v34 }

</bundles_post_ra>
